<compile_context>
chip_gen: v5e
topology: v5e:2x2
jax: 0.10.0
libtpu: 0.0.40
codegen_flags: <defaults>
</compile_context>

<pallas_src>
import math

import jax
import jax.numpy as jnp
from jax.experimental import pallas as pl
from jax.experimental.pallas import tpu as pltpu

# ----------------------- synthetic CLIP / S2 configuration -----------------------
IN_CH = 3
PATCH = 4
HIDDEN = 128               # lane-dense feature dim (multiple of 128)
HEADS = 4
HEAD_DIM = HIDDEN // HEADS
INTER = 4 * HIDDEN         # 512, CLIP's 4x MLP ratio, multiple of 128
LAYERS = 2
SELECT_LAYER = -2          # LLaVA default: hidden_states[-2]
SELECT_FEATURE = "patch"   # drop CLS token
S2_SCALES = [16, 32]       # small analogue of '336,672,1008' (sorted ascending)
SPLIT = S2_SCALES[0]       # s2_split_size = smallest scale
IMG = S2_SCALES[-1]        # s2_image_size = largest scale
NUM_PATCH = (SPLIT // PATCH) ** 2
NUM_POS = NUM_PATCH + 1
LN_EPS = 1e-5
DTYPE = jnp.float32

# Tile sizes (toy-scale demo values). Production CLIP (HIDDEN=1024, INTER=4096,
# rows = crops*577) would use TM=256-512, TN=512, TK=512, still under v7x's 64 MiB VMEM.
TM = 64
TN = 128
TK = 256
VMEM_LIMIT = 32 * 1024 * 1024


# ------------------------------------ helpers ------------------------------------
def _round_up(x, m):
    return ((x + m - 1) // m) * m


def _pad_rows(x, mp):
    m = x.shape[0]
    if mp == m:
        return x
    return jnp.pad(x, ((0, mp - m), (0, 0)))


def _pick_divisor(n, target):
    b = min(target, n)
    while n % b:
        b -= 1
    return b


# --------------------------------- Pallas kernels ---------------------------------
def _make_matmul_kernel(act, has_residual):
    """Tiled matmul, f32 VMEM accumulator over the K grid axis.
    Epilogue on the last K step: + bias [-> quick_gelu] [+ residual]."""
    def kernel(*refs):
        if has_residual:
            x_ref, w_ref, b_ref, r_ref, o_ref, acc_ref = refs
        else:
            x_ref, w_ref, b_ref, o_ref, acc_ref = refs
            r_ref = None
        kk = pl.program_id(2)

        @pl.when(kk == 0)
        def _init():
            acc_ref[...] = jnp.zeros_like(acc_ref)

        acc_ref[...] += jnp.dot(x_ref[...], w_ref[...],
                                preferred_element_type=jnp.float32)

        @pl.when(kk == pl.num_programs(2) - 1)
        def _flush():
            y = acc_ref[...] + b_ref[...].astype(jnp.float32)
            if act == "quick_gelu":            # CLIP hidden_act: x * sigmoid(1.702 x)
                y = y * jax.nn.sigmoid(1.702 * y)
            if has_residual:
                y = y + r_ref[...].astype(jnp.float32)
            o_ref[...] = y.astype(o_ref.dtype)

    return kernel


def _make_ln_matmul_kernel(act):
    """Fused LayerNorm (full feature dim kept in-block) -> matmul -> bias [-> quick_gelu].
    LN stats are recomputed per N-tile (cheap VPU work hidden under the MXU) to avoid
    an extra HBM round trip of the normalized activations."""
    def kernel(x_ref, g_ref, beta_ref, w_ref, b_ref, o_ref):
        x = x_ref[...].astype(jnp.float32)
        mu = jnp.mean(x, axis=-1, keepdims=True)
        var = jnp.mean(jnp.square(x - mu), axis=-1, keepdims=True)
        xn = (x - mu) * jax.lax.rsqrt(var + LN_EPS)
        xn = xn * g_ref[...].astype(jnp.float32) + beta_ref[...].astype(jnp.float32)
        y = jnp.dot(xn.astype(w_ref.dtype), w_ref[...],
                    preferred_element_type=jnp.float32)
        y = y + b_ref[...].astype(jnp.float32)
        if act == "quick_gelu":
            y = y * jax.nn.sigmoid(1.702 * y)
        o_ref[...] = y.astype(o_ref.dtype)

    return kernel


def _layernorm_kernel(x_ref, g_ref, b_ref, o_ref):
    x = x_ref[...].astype(jnp.float32)
    mu = jnp.mean(x, axis=-1, keepdims=True)
    var = jnp.mean(jnp.square(x - mu), axis=-1, keepdims=True)
    y = (x - mu) * jax.lax.rsqrt(var + LN_EPS)
    y = y * g_ref[...].astype(jnp.float32) + b_ref[...].astype(jnp.float32)
    o_ref[...] = y.astype(o_ref.dtype)


def _attn_kernel(q_ref, k_ref, v_ref, o_ref):
    # Keep MXU operands in the storage dtype (bf16-ready); accumulate in f32;
    # softmax statistics in f32.
    q = q_ref[...]
    k = k_ref[...]
    v = v_ref[...]
    scale = 1.0 / math.sqrt(q.shape[-1])
    s = jnp.einsum("bqd,bkd->bqk", q, k,
                   preferred_element_type=jnp.float32) * scale
    s = s - jnp.max(s, axis=-1, keepdims=True)
    p = jnp.exp(s)
    l = jnp.sum(p, axis=-1, keepdims=True)
    o = jnp.einsum("bqk,bkd->bqd", p.astype(v.dtype), v,
                   preferred_element_type=jnp.float32)
    o_ref[...] = (o * pl.reciprocal(l, approx=True)).astype(o_ref.dtype)


# ------------------------------ Pallas-call wrappers ------------------------------
def linear(x, w, b, *, residual=None, act=None, tm=TM, tn=TN, tk=TK):
    """y = act(x @ w + b) [+ residual].  x: [M, K], w: [K, N], b: [1, N]."""
    M, K = x.shape
    _, N = w.shape
    tn = tn if N % tn == 0 else N
    if K % 128 == 0:
        tk = min(tk, K)
        while K % tk:
            tk -= 128
    else:
        tk = K                                   # small / unaligned K: single K step
    mp = _round_up(M, tm)
    xp = _pad_rows(x, mp)

    operands = [xp, w, b]
    in_specs = [
        pl.BlockSpec((tm, tk), lambda i, j, kk: (i, kk)),
        pl.BlockSpec((tk, tn), lambda i, j, kk: (kk, j)),
        pl.BlockSpec((1, tn), lambda i, j, kk: (0, j)),
    ]
    if residual is not None:
        operands.append(_pad_rows(residual, mp))
        in_specs.append(pl.BlockSpec((tm, tn), lambda i, j, kk: (i, j)))

    out = pl.pallas_call(
        _make_matmul_kernel(act, residual is not None),
        out_shape=jax.ShapeDtypeStruct((mp, N), x.dtype),
        grid=(mp // tm, N // tn, K // tk),
        in_specs=in_specs,
        out_specs=pl.BlockSpec((tm, tn), lambda i, j, kk: (i, j)),
        scratch_shapes=[pltpu.VMEM((tm, tn), jnp.float32)],
        compiler_params=pltpu.CompilerParams(
            dimension_semantics=("parallel", "parallel", "arbitrary"),
            vmem_limit_bytes=VMEM_LIMIT),
        cost_estimate=pl.CostEstimate(
            flops=2 * mp * N * K, transcendentals=0,
            bytes_accessed=4 * (mp * K + K * N + mp * N)),
    )(*operands)
    return out[:M]


def ln_linear(x, g, beta, w, b, *, act=None, tm=TM, tn=TN):
    """y = act(LayerNorm(x) @ w + b).  Full feature dim stays in-block for LN stats."""
    M, K = x.shape
    _, N = w.shape
    tn = tn if N % tn == 0 else N
    mp = _round_up(M, tm)
    xp = _pad_rows(x, mp)
    out = pl.pallas_call(
        _make_ln_matmul_kernel(act),
        out_shape=jax.ShapeDtypeStruct((mp, N), x.dtype),
        grid=(mp // tm, N // tn),
        in_specs=[
            pl.BlockSpec((tm, K), lambda i, j: (i, 0)),
            pl.BlockSpec((1, K), lambda i, j: (0, 0)),
            pl.BlockSpec((1, K), lambda i, j: (0, 0)),
            pl.BlockSpec((K, tn), lambda i, j: (0, j)),
            pl.BlockSpec((1, tn), lambda i, j: (0, j)),
        ],
        out_specs=pl.BlockSpec((tm, tn), lambda i, j: (i, j)),
        compiler_params=pltpu.CompilerParams(
            dimension_semantics=("parallel", "parallel"),
            vmem_limit_bytes=VMEM_LIMIT),
        cost_estimate=pl.CostEstimate(
            flops=2 * mp * N * K, transcendentals=0,
            bytes_accessed=4 * (mp * K + K * N + mp * N)),
    )(xp, g, beta, w, b)
    return out[:M]


def layernorm(x, g, b, *, tm=TM):
    """x: [M, D], g/b: [1, D]."""
    M, D = x.shape
    mp = _round_up(M, tm)
    xp = _pad_rows(x, mp)
    out = pl.pallas_call(
        _layernorm_kernel,
        out_shape=jax.ShapeDtypeStruct((mp, D), x.dtype),
        grid=(mp // tm,),
        in_specs=[
            pl.BlockSpec((tm, D), lambda i: (i, 0)),
            pl.BlockSpec((1, D), lambda i: (0, 0)),
            pl.BlockSpec((1, D), lambda i: (0, 0)),
        ],
        out_specs=pl.BlockSpec((tm, D), lambda i: (i, 0)),
        compiler_params=pltpu.CompilerParams(
            dimension_semantics=("parallel",),
            vmem_limit_bytes=VMEM_LIMIT),
    )(xp, g, b)
    return out[:M]


def attention(q, k, v, *, bh_target=8):
    """q/k/v: [crops*heads, T, Dh] -> same shape; grid over the (crop, head) axis."""
    BH, T, Dh = q.shape
    bh_blk = _pick_divisor(BH, bh_target)
    spec = pl.BlockSpec((bh_blk, T, Dh), lambda i: (i, 0, 0))
    # TODO(synk): at production CLIP scale (T=577, 16 heads) this should become a
    # flash-style kernel tiling K/V along T with m/l/acc scratch, with the head
    # split/merge and o-projection fused in-kernel to keep D lane-dense.
    return pl.pallas_call(
        _attn_kernel,
        out_shape=jax.ShapeDtypeStruct((BH, T, Dh), q.dtype),
        grid=(BH // bh_blk,),
        in_specs=[spec, spec, spec],
        out_specs=spec,
        compiler_params=pltpu.CompilerParams(
            dimension_semantics=("parallel",),
            vmem_limit_bytes=VMEM_LIMIT),
    )(q, k, v)


# --------------------------------- CLIP vision model -------------------------------
def encoder_layer(hf, lp, crops, tokens):
    """One CLIP encoder layer on token-flattened activations hf: [crops*tokens, HIDDEN]."""
    # fused LN1 + QKV projection (single MXU pass, weights concatenated to [D, 3D])
    qkv = ln_linear(hf, lp["ln1_g"], lp["ln1_b"], lp["qkv_w"], lp["qkv_b"])
    q, k, v = jnp.split(qkv, 3, axis=-1)

    # TODO(synk): head split/merge transposes still run as XLA ops between kernels;
    # at production scale they (and the o-projection) belong inside the attention kernel.
    def split_heads(t):
        return (t.reshape(crops, tokens, HEADS, HEAD_DIM)
                 .transpose(0, 2, 1, 3)
                 .reshape(crops * HEADS, tokens, HEAD_DIM))

    o = attention(split_heads(q), split_heads(k), split_heads(v))
    o = (o.reshape(crops, HEADS, tokens, HEAD_DIM)
          .transpose(0, 2, 1, 3)
          .reshape(crops * tokens, HIDDEN))

    # o-projection with the residual add fused into the kernel epilogue
    hf = linear(o, lp["o_w"], lp["o_b"], residual=hf)

    # fused LN2 + FC1 (quick_gelu), then FC2 with the residual add fused
    x = ln_linear(hf, lp["ln2_g"], lp["ln2_b"], lp["fc1_w"], lp["fc1_b"],
                  act="quick_gelu")
    hf = linear(x, lp["fc2_w"], lp["fc2_b"], residual=hf)
    return hf


def forward_feature(images, params):
    """CLIPVisionModel(output_hidden_states=True) + feature_select.
    images: [Bc, 3, S, S] = all crops of all scales batched together."""
    Bc, C, S, _ = images.shape
    g = S // PATCH
    # patch-embed conv (stride = kernel = PATCH, no bias) as a tiled matmul
    patches = (images.reshape(Bc, C, g, PATCH, g, PATCH)
                     .transpose(0, 2, 4, 1, 3, 5)
                     .reshape(Bc * g * g, C * PATCH * PATCH))
    x = linear(patches, params["patch_w"], params["patch_b"])
    x = x.reshape(Bc, g * g, HIDDEN)

    cls = jnp.broadcast_to(params["cls"].reshape(1, 1, HIDDEN), (Bc, 1, HIDDEN))
    h = jnp.concatenate([cls, x], axis=1) + params["pos"][None]
    T = h.shape[1]

    hf = layernorm(h.reshape(Bc * T, HIDDEN), params["pre_ln_g"], params["pre_ln_b"])

    # hidden_states[SELECT_LAYER] only depends on the first n_needed layers; the trailing
    # layer(s) CLIPVisionModel would still compute never affect the selected features,
    # so they are skipped (output-identical).
    n_needed = LAYERS + 1 + SELECT_LAYER if SELECT_LAYER < 0 else SELECT_LAYER
    for lp in params["layers"][:n_needed]:
        hf = encoder_layer(hf, lp, Bc, T)

    feats = hf.reshape(Bc, T, HIDDEN)
    if SELECT_FEATURE == "patch":
        feats = feats[:, 1:]  # drop CLS
    return feats


# ------------------------------- s2wrapper.forward glue -----------------------------
def resize_bicubic(x, size):
    B, C, H, W = x.shape
    if H == size and W == size:
        return x
    # TODO(synk): PyTorch F.interpolate(mode='bicubic') uses cubic a=-0.75; jax 'bicubic'
    # uses Keys a=-0.5, so this resize is a close but not bit-exact match.
    return jax.image.resize(x.astype(jnp.float32), (B, C, size, size),
                            method="bicubic", antialias=False).astype(x.dtype)


def split_chessboard(x, n):
    # space-to-batch as one reshape+transpose; crop (i, j) -> batch block (i*n + j),
    # matching s2wrapper's per-crop slice order.
    B, C, H, W = x.shape
    h, w = H // n, W // n
    return (x.reshape(B, C, n, h, n, w)
             .transpose(2, 4, 0, 1, 3, 5)
             .reshape(n * n * B, C, h, w))


def merge_chessboard(x, n):
    # inverse of split_chessboard (single reshape+transpose, no python-list concat)
    B, C, h, w = x.shape
    b = B // (n * n)
    return (x.reshape(n, n, b, C, h, w)
             .transpose(2, 3, 0, 4, 1, 5)
             .reshape(b, C, n * h, n * w))


def area_interp(x, out_size):
    # F.interpolate(mode='area') with an integer ratio == average pooling (our case).
    B, C, H, W = x.shape
    k = H // out_size
    if k == 1:
        return x
    return x.reshape(B, C, out_size, k, out_size, k).mean(axis=(3, 5))


def cf_tower_s2_forward(images, params):
    """CFTowerS2.forward for a batched tensor input. images: [B, 3, IMG, IMG] (NCHW)."""
    b = images.shape[0]
    num_splits = [max(math.ceil(s / SPLIT), 1) for s in S2_SCALES]

    # Every scale produces SPLIT x SPLIT crops -> batch all crops of all scales through
    # ONE CLIP forward (amortizes kernel launches, grows M per matmul).
    crop_batches = []
    for size, n in zip(S2_SCALES, num_splits):
        x = resize_bicubic(images, size)
        crop_batches.append(split_chessboard(x, n))
    counts = [c.shape[0] for c in crop_batches]
    feats = forward_feature(jnp.concatenate(crop_batches, axis=0), params)

    g = int(round(math.sqrt(feats.shape[1])))
    outs, off = [], 0
    for n, cnt in zip(num_splits, counts):
        f = feats[off:off + cnt]
        off += cnt
        f = f.reshape(cnt, g, g, feats.shape[-1]).transpose(0, 3, 1, 2)  # NCHW features
        outs.append(merge_chessboard(f, n))                              # [b, C, n*g, n*g]
    out_size = outs[0].shape[-1]
    # TODO(synk): merge_chessboard + area_interp are tiny XLA glue ops here; at larger
    # scales they could be one Pallas pooling kernel over a channels-last layout.
    out = jnp.concatenate([area_interp(o, out_size) for o in outs], axis=1)
    out = out.transpose(0, 2, 3, 1).reshape(b, out_size * out_size, -1)
    return out  # [B, NUM_PATCH, HIDDEN * len(S2_SCALES)]


# ---------------------------------- parameter init ----------------------------------
def init_params(key):
    keys = iter(jax.random.split(key, 4 * LAYERS + 4))

    def nrm(shape, std=0.02):
        return std * jax.random.normal(next(keys), shape, DTYPE)

    p = {
        "patch_w": nrm((IN_CH * PATCH * PATCH, HIDDEN)),   # flattened conv weight [K, N]
        "patch_b": jnp.zeros((1, HIDDEN), DTYPE),          # conv has no bias
        "cls": nrm((HIDDEN,)),
        "pos": nrm((NUM_POS, HIDDEN)),
        "pre_ln_g": jnp.ones((1, HIDDEN), DTYPE),
        "pre_ln_b": jnp.zeros((1, HIDDEN), DTYPE),
        "layers": [],
    }
    for _ in range(LAYERS):
        p["layers"].append({
            "ln1_g": jnp.ones((1, HIDDEN), DTYPE), "ln1_b": jnp.zeros((1, HIDDEN), DTYPE),
            # q/k/v projections fused into one [D, 3D] weight (and [1, 3D] bias)
            "qkv_w": nrm((HIDDEN, 3 * HIDDEN)), "qkv_b": jnp.zeros((1, 3 * HIDDEN), DTYPE),
            "o_w": nrm((HIDDEN, HIDDEN)), "o_b": jnp.zeros((1, HIDDEN), DTYPE),
            "ln2_g": jnp.ones((1, HIDDEN), DTYPE), "ln2_b": jnp.zeros((1, HIDDEN), DTYPE),
            "fc1_w": nrm((HIDDEN, INTER)), "fc1_b": jnp.zeros((1, INTER), DTYPE),
            "fc2_w": nrm((INTER, HIDDEN)), "fc2_b": jnp.zeros((1, HIDDEN), DTYPE),
        })
    return p


# -------------------------------------- main ----------------------------------------
if __name__ == "__main__":
    key = jax.random.PRNGKey(0)
    pkey, xkey = jax.random.split(key)
    params = init_params(pkey)
    images = jax.random.normal(xkey, (2, IN_CH, IMG, IMG), DTYPE)

    fwd = jax.jit(cf_tower_s2_forward)
    out = jax.block_until_ready(fwd(images, params))

    expected = (2, NUM_PATCH, HIDDEN * len(S2_SCALES))
    assert out.shape == expected, (out.shape, expected)
    assert bool(jnp.all(jnp.isfinite(out)))
    print("KERNEL_OK")
</pallas_src>

<mosaic_0001>
module attributes {stable_mosaic.version = 11 : i64} {
  func.func @kernel(%arg0: i32, %arg1: i32, %arg2: i32, %arg3: memref<64x48xf32, #tpu.memory_space<vmem>>, %arg4: memref<48x128xf32, #tpu.memory_space<vmem>>, %arg5: memref<1x128xf32, #tpu.memory_space<vmem>>, %arg6: memref<64x128xf32, #tpu.memory_space<vmem>>, %arg7: memref<64x128xf32, #tpu.memory_space<vmem>>) attributes {dimension_semantics = [#tpu.dimension_semantics<parallel>, #tpu.dimension_semantics<parallel>, #tpu.dimension_semantics<arbitrary>], iteration_bounds = array<i64: 3, 1, 1>, scalar_prefetch = 0 : i64, scratch_operands = 1 : i64, tpu.core_type = #tpu.core_type<tc>, window_params = [{transform_indices = @transform_0, window_bounds = array<i64: 64, 48>}, {transform_indices = @transform_1, window_bounds = array<i64: 48, 128>}, {transform_indices = @transform_2, window_bounds = array<i64: 1, 128>}, {transform_indices = @transform_3, window_bounds = array<i64: 64, 128>}]} {
    %c0_i32 = arith.constant 0 : i32
    %0 = arith.cmpi eq, %arg2, %c0_i32 : i32
    %1 = arith.extui %0 : i1 to i32
    %c0_i32_0 = arith.constant 0 : i32
    %2 = arith.cmpi ne, %1, %c0_i32_0 : i32
    scf.if %2 {
      %cst_10 = arith.constant 0.000000e+00 : f32
      %12 = vector.broadcast %cst_10 : f32 to vector<64x128xf32>
      %c0_11 = arith.constant 0 : index
      %c0_12 = arith.constant 0 : index
      %13 = vector.load %arg7[%c0_11, %c0_12] : memref<64x128xf32, #tpu.memory_space<vmem>>, vector<64x128xf32>
      tpu.vector_store %arg7[%c0_11, %c0_12], %12 {strides = array<i32>} : memref<64x128xf32, #tpu.memory_space<vmem>>, vector<64x128xf32>,
    } else {
    }
    %c0 = arith.constant 0 : index
    %c0_1 = arith.constant 0 : index
    %3 = vector.load %arg7[%c0, %c0_1] : memref<64x128xf32, #tpu.memory_space<vmem>>, vector<64x128xf32>
    %c0_2 = arith.constant 0 : index
    %c0_3 = arith.constant 0 : index
    %4 = vector.load %arg3[%c0_2, %c0_3] : memref<64x48xf32, #tpu.memory_space<vmem>>, vector<64x48xf32>
    %c0_4 = arith.constant 0 : index
    %c0_5 = arith.constant 0 : index
    %5 = vector.load %arg4[%c0_4, %c0_5] : memref<48x128xf32, #tpu.memory_space<vmem>>, vector<48x128xf32>
    %cst = arith.constant dense<0.000000e+00> : vector<64x128xf32>
    %6 = tpu.matmul %4, %5, %cst {dimension_numbers = #tpu.dot_dimension_numbers<[1], [0], [0], [1], [0, 0, 1, 1], [], []>} : vector<64x48xf32>, vector<48x128xf32>, vector<64x128xf32> -> vector<64x128xf32>
    %7 = arith.addf %3, %6 : vector<64x128xf32>
    %c0_6 = arith.constant 0 : index
    %c0_7 = arith.constant 0 : index
    %8 = vector.load %arg7[%c0_6, %c0_7] : memref<64x128xf32, #tpu.memory_space<vmem>>, vector<64x128xf32>
    tpu.vector_store %arg7[%c0_6, %c0_7], %7 {strides = array<i32>} : memref<64x128xf32, #tpu.memory_space<vmem>>, vector<64x128xf32>,
    %c0_i32_8 = arith.constant 0 : i32
    %9 = arith.cmpi eq, %arg2, %c0_i32_8 : i32
    %10 = arith.extui %9 : i1 to i32
    %c0_i32_9 = arith.constant 0 : i32
    %11 = arith.cmpi ne, %10, %c0_i32_9 : i32
    scf.if %11 {
      %c0_10 = arith.constant 0 : index
      %c0_11 = arith.constant 0 : index
      %12 = vector.load %arg7[%c0_10, %c0_11] : memref<64x128xf32, #tpu.memory_space<vmem>>, vector<64x128xf32>
      %c0_12 = arith.constant 0 : index
      %c0_13 = arith.constant 0 : index
      %13 = vector.load %arg5[%c0_12, %c0_13] : memref<1x128xf32, #tpu.memory_space<vmem>>, vector<1x128xf32>
      %14 = vector.broadcast %13 : vector<1x128xf32> to vector<64x128xf32>
      %15 = arith.addf %12, %14 : vector<64x128xf32>
      %c0_14 = arith.constant 0 : index
      %c0_15 = arith.constant 0 : index
      %16 = vector.load %arg6[%c0_14, %c0_15] : memref<64x128xf32, #tpu.memory_space<vmem>>, vector<64x128xf32>
      tpu.vector_store %arg6[%c0_14, %c0_15], %15 {strides = array<i32>} : memref<64x128xf32, #tpu.memory_space<vmem>>, vector<64x128xf32>,
    } else {
    }
    return
  }
  func.func @transform_0(%arg0: i32, %arg1: i32, %arg2: i32) -> (i32, i32) {
    %c0_i32 = arith.constant 0 : i32
    return %arg0, %arg2 : i32, i32
  }
  func.func @transform_1(%arg0: i32, %arg1: i32, %arg2: i32) -> (i32, i32) {
    %c0_i32 = arith.constant 0 : i32
    return %arg2, %arg1 : i32, i32
  }
  func.func @transform_2(%arg0: i32, %arg1: i32, %arg2: i32) -> (i32, i32) {
    %c0_i32 = arith.constant 0 : i32
    %c0_i32_0 = arith.constant 0 : i32
    return %c0_i32, %arg1 : i32, i32
  }
  func.func @transform_3(%arg0: i32, %arg1: i32, %arg2: i32) -> (i32, i32) {
    %c0_i32 = arith.constant 0 : i32
    return %arg0, %arg1 : i32, i32
  }
}

module attributes {stable_mosaic.version = 11 : i64} {
  func.func @_layernorm_kernel(%arg0: i32, %arg1: memref<64x128xf32, #tpu.memory_space<vmem>>, %arg2: memref<1x128xf32, #tpu.memory_space<vmem>>, %arg3: memref<1x128xf32, #tpu.memory_space<vmem>>, %arg4: memref<64x128xf32, #tpu.memory_space<vmem>>) attributes {dimension_semantics = [#tpu.dimension_semantics<parallel>], iteration_bounds = array<i64: 3>, scalar_prefetch = 0 : i64, scratch_operands = 0 : i64, tpu.core_type = #tpu.core_type<tc>, window_params = [{transform_indices = @transform_0, window_bounds = array<i64: 64, 128>}, {pipeline_mode = #tpu.pipeline_mode<synchronous>, transform_indices = @transform_1, window_bounds = array<i64: 1, 128>}, {pipeline_mode = #tpu.pipeline_mode<synchronous>, transform_indices = @transform_2, window_bounds = array<i64: 1, 128>}, {transform_indices = @transform_3, window_bounds = array<i64: 64, 128>}]} {
    %c0 = arith.constant 0 : index
    %c0_0 = arith.constant 0 : index
    %0 = vector.load %arg1[%c0, %c0_0] : memref<64x128xf32, #tpu.memory_space<vmem>>, vector<64x128xf32>
    %cst = arith.constant dense<0.000000e+00> : vector<64xf32>
    %1 = vector.multi_reduction <add>, %0, %cst [1] : vector<64x128xf32> to vector<64xf32>
    %2 = vector.shape_cast %1 : vector<64xf32> to vector<64x1xf32>
    %cst_1 = arith.constant 1.280000e+02 : f32
    %3 = vector.broadcast %cst_1 : f32 to vector<64x1xf32>
    %4 = arith.divf %2, %3 : vector<64x1xf32>
    %5 = vector.broadcast %4 : vector<64x1xf32> to vector<64x128xf32>
    %6 = arith.subf %0, %5 : vector<64x128xf32>
    %7 = arith.mulf %6, %6 : vector<64x128xf32>
    %cst_2 = arith.constant dense<0.000000e+00> : vector<64xf32>
    %8 = vector.multi_reduction <add>, %7, %cst_2 [1] : vector<64x128xf32> to vector<64xf32>
    %9 = vector.shape_cast %8 : vector<64xf32> to vector<64x1xf32>
    %cst_3 = arith.constant 1.280000e+02 : f32
    %10 = vector.broadcast %cst_3 : f32 to vector<64x1xf32>
    %11 = arith.divf %9, %10 : vector<64x1xf32>
    %12 = vector.broadcast %4 : vector<64x1xf32> to vector<64x128xf32>
    %13 = arith.subf %0, %12 : vector<64x128xf32>
    %cst_4 = arith.constant 9.99999974E-6 : f32
    %14 = vector.broadcast %cst_4 : f32 to vector<64x1xf32>
    %15 = arith.addf %11, %14 : vector<64x1xf32>
    %16 = math.rsqrt %15 : vector<64x1xf32>
    %17 = vector.broadcast %16 : vector<64x1xf32> to vector<64x128xf32>
    %18 = arith.mulf %13, %17 : vector<64x128xf32>
    %c0_5 = arith.constant 0 : index
    %c0_6 = arith.constant 0 : index
    %19 = vector.load %arg2[%c0_5, %c0_6] : memref<1x128xf32, #tpu.memory_space<vmem>>, vector<1x128xf32>
    %20 = vector.broadcast %19 : vector<1x128xf32> to vector<64x128xf32>
    %21 = arith.mulf %18, %20 : vector<64x128xf32>
    %c0_7 = arith.constant 0 : index
    %c0_8 = arith.constant 0 : index
    %22 = vector.load %arg3[%c0_7, %c0_8] : memref<1x128xf32, #tpu.memory_space<vmem>>, vector<1x128xf32>
    %23 = vector.broadcast %22 : vector<1x128xf32> to vector<64x128xf32>
    %24 = arith.addf %21, %23 : vector<64x128xf32>
    %c0_9 = arith.constant 0 : index
    %c0_10 = arith.constant 0 : index
    %25 = vector.load %arg4[%c0_9, %c0_10] : memref<64x128xf32, #tpu.memory_space<vmem>>, vector<64x128xf32>
    tpu.vector_store %arg4[%c0_9, %c0_10], %24 {strides = array<i32>} : memref<64x128xf32, #tpu.memory_space<vmem>>, vector<64x128xf32>,
    return
  }
  func.func @transform_0(%arg0: i32) -> (i32, i32) {
    %c0_i32 = arith.constant 0 : i32
    %c0_i32_0 = arith.constant 0 : i32
    return %arg0, %c0_i32 : i32, i32
  }
  func.func @transform_1(%arg0: i32) -> (i32, i32) {
    %c0_i32 = arith.constant 0 : i32
    %c0_i32_0 = arith.constant 0 : i32
    %c0_i32_1 = arith.constant 0 : i32
    return %c0_i32, %c0_i32_0 : i32, i32
  }
  func.func @transform_2(%arg0: i32) -> (i32, i32) {
    %c0_i32 = arith.constant 0 : i32
    %c0_i32_0 = arith.constant 0 : i32
    %c0_i32_1 = arith.constant 0 : i32
    return %c0_i32, %c0_i32_0 : i32, i32
  }
  func.func @transform_3(%arg0: i32) -> (i32, i32) {
    %c0_i32 = arith.constant 0 : i32
    %c0_i32_0 = arith.constant 0 : i32
    return %arg0, %c0_i32 : i32, i32
  }
}

module attributes {stable_mosaic.version = 11 : i64} {
  func.func @kernel(%arg0: i32, %arg1: i32, %arg2: memref<64x128xf32, #tpu.memory_space<vmem>>, %arg3: memref<1x128xf32, #tpu.memory_space<vmem>>, %arg4: memref<1x128xf32, #tpu.memory_space<vmem>>, %arg5: memref<128x128xf32, #tpu.memory_space<vmem>>, %arg6: memref<1x128xf32, #tpu.memory_space<vmem>>, %arg7: memref<64x128xf32, #tpu.memory_space<vmem>>) attributes {dimension_semantics = [#tpu.dimension_semantics<parallel>, #tpu.dimension_semantics<parallel>], iteration_bounds = array<i64: 3, 3>, scalar_prefetch = 0 : i64, scratch_operands = 0 : i64, tpu.core_type = #tpu.core_type<tc>, window_params = [{transform_indices = @transform_0, window_bounds = array<i64: 64, 128>}, {pipeline_mode = #tpu.pipeline_mode<synchronous>, transform_indices = @transform_1, window_bounds = array<i64: 1, 128>}, {pipeline_mode = #tpu.pipeline_mode<synchronous>, transform_indices = @transform_2, window_bounds = array<i64: 1, 128>}, {transform_indices = @transform_3, window_bounds = array<i64: 128, 128>}, {transform_indices = @transform_4, window_bounds = array<i64: 1, 128>}, {transform_indices = @transform_5, window_bounds = array<i64: 64, 128>}]} {
    %c0 = arith.constant 0 : index
    %c0_0 = arith.constant 0 : index
    %0 = vector.load %arg2[%c0, %c0_0] : memref<64x128xf32, #tpu.memory_space<vmem>>, vector<64x128xf32>
    %cst = arith.constant dense<0.000000e+00> : vector<64xf32>
    %1 = vector.multi_reduction <add>, %0, %cst [1] : vector<64x128xf32> to vector<64xf32>
    %2 = vector.shape_cast %1 : vector<64xf32> to vector<64x1xf32>
    %cst_1 = arith.constant 1.280000e+02 : f32
    %3 = vector.broadcast %cst_1 : f32 to vector<64x1xf32>
    %4 = arith.divf %2, %3 : vector<64x1xf32>
    %5 = vector.broadcast %4 : vector<64x1xf32> to vector<64x128xf32>
    %6 = arith.subf %0, %5 : vector<64x128xf32>
    %7 = arith.mulf %6, %6 : vector<64x128xf32>
    %cst_2 = arith.constant dense<0.000000e+00> : vector<64xf32>
    %8 = vector.multi_reduction <add>, %7, %cst_2 [1] : vector<64x128xf32> to vector<64xf32>
    %9 = vector.shape_cast %8 : vector<64xf32> to vector<64x1xf32>
    %cst_3 = arith.constant 1.280000e+02 : f32
    %10 = vector.broadcast %cst_3 : f32 to vector<64x1xf32>
    %11 = arith.divf %9, %10 : vector<64x1xf32>
    %12 = vector.broadcast %4 : vector<64x1xf32> to vector<64x128xf32>
    %13 = arith.subf %0, %12 : vector<64x128xf32>
    %cst_4 = arith.constant 9.99999974E-6 : f32
    %14 = vector.broadcast %cst_4 : f32 to vector<64x1xf32>
    %15 = arith.addf %11, %14 : vector<64x1xf32>
    %16 = math.rsqrt %15 : vector<64x1xf32>
    %17 = vector.broadcast %16 : vector<64x1xf32> to vector<64x128xf32>
    %18 = arith.mulf %13, %17 : vector<64x128xf32>
    %c0_5 = arith.constant 0 : index
    %c0_6 = arith.constant 0 : index
    %19 = vector.load %arg3[%c0_5, %c0_6] : memref<1x128xf32, #tpu.memory_space<vmem>>, vector<1x128xf32>
    %20 = vector.broadcast %19 : vector<1x128xf32> to vector<64x128xf32>
    %21 = arith.mulf %18, %20 : vector<64x128xf32>
    %c0_7 = arith.constant 0 : index
    %c0_8 = arith.constant 0 : index
    %22 = vector.load %arg4[%c0_7, %c0_8] : memref<1x128xf32, #tpu.memory_space<vmem>>, vector<1x128xf32>
    %23 = vector.broadcast %22 : vector<1x128xf32> to vector<64x128xf32>
    %24 = arith.addf %21, %23 : vector<64x128xf32>
    %c0_9 = arith.constant 0 : index
    %c0_10 = arith.constant 0 : index
    %25 = vector.load %arg5[%c0_9, %c0_10] : memref<128x128xf32, #tpu.memory_space<vmem>>, vector<128x128xf32>
    %cst_11 = arith.constant dense<0.000000e+00> : vector<64x128xf32>
    %26 = tpu.matmul %24, %25, %cst_11 {dimension_numbers = #tpu.dot_dimension_numbers<[1], [0], [0], [1], [0, 0, 1, 1], [], []>} : vector<64x128xf32>, vector<128x128xf32>, vector<64x128xf32> -> vector<64x128xf32>
    %c0_12 = arith.constant 0 : index
    %c0_13 = arith.constant 0 : index
    %27 = vector.load %arg6[%c0_12, %c0_13] : memref<1x128xf32, #tpu.memory_space<vmem>>, vector<1x128xf32>
    %28 = vector.broadcast %27 : vector<1x128xf32> to vector<64x128xf32>
    %29 = arith.addf %26, %28 : vector<64x128xf32>
    %c0_14 = arith.constant 0 : index
    %c0_15 = arith.constant 0 : index
    %30 = vector.load %arg7[%c0_14, %c0_15] : memref<64x128xf32, #tpu.memory_space<vmem>>, vector<64x128xf32>
    tpu.vector_store %arg7[%c0_14, %c0_15], %29 {strides = array<i32>} : memref<64x128xf32, #tpu.memory_space<vmem>>, vector<64x128xf32>,
    return
  }
  func.func @transform_0(%arg0: i32, %arg1: i32) -> (i32, i32) {
    %c0_i32 = arith.constant 0 : i32
    %c0_i32_0 = arith.constant 0 : i32
    return %arg0, %c0_i32 : i32, i32
  }
  func.func @transform_1(%arg0: i32, %arg1: i32) -> (i32, i32) {
    %c0_i32 = arith.constant 0 : i32
    %c0_i32_0 = arith.constant 0 : i32
    %c0_i32_1 = arith.constant 0 : i32
    return %c0_i32, %c0_i32_0 : i32, i32
  }
  func.func @transform_2(%arg0: i32, %arg1: i32) -> (i32, i32) {
    %c0_i32 = arith.constant 0 : i32
    %c0_i32_0 = arith.constant 0 : i32
    %c0_i32_1 = arith.constant 0 : i32
    return %c0_i32, %c0_i32_0 : i32, i32
  }
  func.func @transform_3(%arg0: i32, %arg1: i32) -> (i32, i32) {
    %c0_i32 = arith.constant 0 : i32
    %c0_i32_0 = arith.constant 0 : i32
    return %c0_i32, %arg1 : i32, i32
  }
  func.func @transform_4(%arg0: i32, %arg1: i32) -> (i32, i32) {
    %c0_i32 = arith.constant 0 : i32
    %c0_i32_0 = arith.constant 0 : i32
    return %c0_i32, %arg1 : i32, i32
  }
  func.func @transform_5(%arg0: i32, %arg1: i32) -> (i32, i32) {
    %c0_i32 = arith.constant 0 : i32
    return %arg0, %arg1 : i32, i32
  }
}

module attributes {stable_mosaic.version = 11 : i64} {
  func.func @_attn_kernel(%arg0: i32, %arg1: memref<8x17x32xf32, #tpu.memory_space<vmem>>, %arg2: memref<8x17x32xf32, #tpu.memory_space<vmem>>, %arg3: memref<8x17x32xf32, #tpu.memory_space<vmem>>, %arg4: memref<8x17x32xf32, #tpu.memory_space<vmem>>) attributes {dimension_semantics = [#tpu.dimension_semantics<parallel>], iteration_bounds = array<i64: 5>, scalar_prefetch = 0 : i64, scratch_operands = 0 : i64, tpu.core_type = #tpu.core_type<tc>, window_params = [{transform_indices = @transform_0, window_bounds = array<i64: 8, 17, 32>}, {transform_indices = @transform_1, window_bounds = array<i64: 8, 17, 32>}, {transform_indices = @transform_2, window_bounds = array<i64: 8, 17, 32>}, {transform_indices = @transform_3, window_bounds = array<i64: 8, 17, 32>}]} {
    %c0 = arith.constant 0 : index
    %c0_0 = arith.constant 0 : index
    %c0_1 = arith.constant 0 : index
    %0 = vector.load %arg1[%c0, %c0_0, %c0_1] : memref<8x17x32xf32, #tpu.memory_space<vmem>>, vector<8x17x32xf32>
    %c0_2 = arith.constant 0 : index
    %c0_3 = arith.constant 0 : index
    %c0_4 = arith.constant 0 : index
    %1 = vector.load %arg2[%c0_2, %c0_3, %c0_4] : memref<8x17x32xf32, #tpu.memory_space<vmem>>, vector<8x17x32xf32>
    %c0_5 = arith.constant 0 : index
    %c0_6 = arith.constant 0 : index
    %c0_7 = arith.constant 0 : index
    %2 = vector.load %arg3[%c0_5, %c0_6, %c0_7] : memref<8x17x32xf32, #tpu.memory_space<vmem>>, vector<8x17x32xf32>
    "tpu.trace_start"() <{level = 10 : i32, message = "bqd,bkd->bqk"}> : () -> ()
    %cst = arith.constant dense<0.000000e+00> : vector<8x17x17xf32>
    %3 = tpu.matmul %0, %1, %cst {dimension_numbers = #tpu.dot_dimension_numbers<[2], [2], [1], [1], [0, 0, 0, 1, 1, 1], [0], [0]>} : vector<8x17x32xf32>, vector<8x17x32xf32>, vector<8x17x17xf32> -> vector<8x17x17xf32>
    "tpu.trace_stop"() : () -> ()
    %cst_8 = arith.constant 0.176776692 : f32
    %4 = vector.broadcast %cst_8 : f32 to vector<8x17x17xf32>
    %5 = arith.mulf %3, %4 : vector<8x17x17xf32>
    %cst_9 = arith.constant dense<0xFF800000> : vector<8x17xf32>
    %6 = vector.multi_reduction <maximumf>, %5, %cst_9 [2] : vector<8x17x17xf32> to vector<8x17xf32>
    %7 = vector.shape_cast %6 : vector<8x17xf32> to vector<8x17x1xf32>
    %8 = vector.broadcast %7 : vector<8x17x1xf32> to vector<8x17x17xf32>
    %9 = arith.subf %5, %8 : vector<8x17x17xf32>
    %10 = math.exp %9 : vector<8x17x17xf32>
    %cst_10 = arith.constant dense<0.000000e+00> : vector<8x17xf32>
    %11 = vector.multi_reduction <add>, %10, %cst_10 [2] : vector<8x17x17xf32> to vector<8x17xf32>
    %12 = vector.shape_cast %11 : vector<8x17xf32> to vector<8x17x1xf32>
    "tpu.trace_start"() <{level = 10 : i32, message = "bqk,bkd->bqd"}> : () -> ()
    %cst_11 = arith.constant dense<0.000000e+00> : vector<8x17x32xf32>
    %13 = tpu.matmul %10, %2, %cst_11 {dimension_numbers = #tpu.dot_dimension_numbers<[2], [1], [1], [2], [0, 0, 0, 1, 1, 2], [0], [0]>} : vector<8x17x17xf32>, vector<8x17x32xf32>, vector<8x17x32xf32> -> vector<8x17x32xf32>
    "tpu.trace_stop"() : () -> ()
    %14 = tpu.reciprocal %12 {approx = true} : vector<8x17x1xf32> -> vector<8x17x1xf32>
    %15 = vector.broadcast %14 : vector<8x17x1xf32> to vector<8x17x32xf32>
    %16 = arith.mulf %13, %15 : vector<8x17x32xf32>
    %c0_12 = arith.constant 0 : index
    %c0_13 = arith.constant 0 : index
    %c0_14 = arith.constant 0 : index
    %17 = vector.load %arg4[%c0_12, %c0_13, %c0_14] : memref<8x17x32xf32, #tpu.memory_space<vmem>>, vector<8x17x32xf32>
    tpu.vector_store %arg4[%c0_12, %c0_13, %c0_14], %16 {strides = array<i32>} : memref<8x17x32xf32, #tpu.memory_space<vmem>>, vector<8x17x32xf32>,
    return
  }
  func.func @transform_0(%arg0: i32) -> (i32, i32, i32) {
    %c0_i32 = arith.constant 0 : i32
    %c0_i32_0 = arith.constant 0 : i32
    %c0_i32_1 = arith.constant 0 : i32
    return %arg0, %c0_i32, %c0_i32_0 : i32, i32, i32
  }
  func.func @transform_1(%arg0: i32) -> (i32, i32, i32) {
    %c0_i32 = arith.constant 0 : i32
    %c0_i32_0 = arith.constant 0 : i32
    %c0_i32_1 = arith.constant 0 : i32
    return %arg0, %c0_i32, %c0_i32_0 : i32, i32, i32
  }
  func.func @transform_2(%arg0: i32) -> (i32, i32, i32) {
    %c0_i32 = arith.constant 0 : i32
    %c0_i32_0 = arith.constant 0 : i32
    %c0_i32_1 = arith.constant 0 : i32
    return %arg0, %c0_i32, %c0_i32_0 : i32, i32, i32
  }
  func.func @transform_3(%arg0: i32) -> (i32, i32, i32) {
    %c0_i32 = arith.constant 0 : i32
    %c0_i32_0 = arith.constant 0 : i32
    %c0_i32_1 = arith.constant 0 : i32
    return %arg0, %c0_i32, %c0_i32_0 : i32, i32, i32
  }
}

module attributes {stable_mosaic.version = 11 : i64} {
  func.func @kernel(%arg0: i32, %arg1: i32, %arg2: i32, %arg3: memref<64x128xf32, #tpu.memory_space<vmem>>, %arg4: memref<128x128xf32, #tpu.memory_space<vmem>>, %arg5: memref<1x128xf32, #tpu.memory_space<vmem>>, %arg6: memref<64x128xf32, #tpu.memory_space<vmem>>, %arg7: memref<64x128xf32, #tpu.memory_space<vmem>>, %arg8: memref<64x128xf32, #tpu.memory_space<vmem>>) attributes {dimension_semantics = [#tpu.dimension_semantics<parallel>, #tpu.dimension_semantics<parallel>, #tpu.dimension_semantics<arbitrary>], iteration_bounds = array<i64: 3, 1, 1>, scalar_prefetch = 0 : i64, scratch_operands = 1 : i64, tpu.core_type = #tpu.core_type<tc>, window_params = [{transform_indices = @transform_0, window_bounds = array<i64: 64, 128>}, {transform_indices = @transform_1, window_bounds = array<i64: 128, 128>}, {transform_indices = @transform_2, window_bounds = array<i64: 1, 128>}, {transform_indices = @transform_3, window_bounds = array<i64: 64, 128>}, {transform_indices = @transform_4, window_bounds = array<i64: 64, 128>}]} {
    %c0_i32 = arith.constant 0 : i32
    %0 = arith.cmpi eq, %arg2, %c0_i32 : i32
    %1 = arith.extui %0 : i1 to i32
    %c0_i32_0 = arith.constant 0 : i32
    %2 = arith.cmpi ne, %1, %c0_i32_0 : i32
    scf.if %2 {
      %cst_10 = arith.constant 0.000000e+00 : f32
      %12 = vector.broadcast %cst_10 : f32 to vector<64x128xf32>
      %c0_11 = arith.constant 0 : index
      %c0_12 = arith.constant 0 : index
      %13 = vector.load %arg8[%c0_11, %c0_12] : memref<64x128xf32, #tpu.memory_space<vmem>>, vector<64x128xf32>
      tpu.vector_store %arg8[%c0_11, %c0_12], %12 {strides = array<i32>} : memref<64x128xf32, #tpu.memory_space<vmem>>, vector<64x128xf32>,
    } else {
    }
    %c0 = arith.constant 0 : index
    %c0_1 = arith.constant 0 : index
    %3 = vector.load %arg8[%c0, %c0_1] : memref<64x128xf32, #tpu.memory_space<vmem>>, vector<64x128xf32>
    %c0_2 = arith.constant 0 : index
    %c0_3 = arith.constant 0 : index
    %4 = vector.load %arg3[%c0_2, %c0_3] : memref<64x128xf32, #tpu.memory_space<vmem>>, vector<64x128xf32>
    %c0_4 = arith.constant 0 : index
    %c0_5 = arith.constant 0 : index
    %5 = vector.load %arg4[%c0_4, %c0_5] : memref<128x128xf32, #tpu.memory_space<vmem>>, vector<128x128xf32>
    %cst = arith.constant dense<0.000000e+00> : vector<64x128xf32>
    %6 = tpu.matmul %4, %5, %cst {dimension_numbers = #tpu.dot_dimension_numbers<[1], [0], [0], [1], [0, 0, 1, 1], [], []>} : vector<64x128xf32>, vector<128x128xf32>, vector<64x128xf32> -> vector<64x128xf32>
    %7 = arith.addf %3, %6 : vector<64x128xf32>
    %c0_6 = arith.constant 0 : index
    %c0_7 = arith.constant 0 : index
    %8 = vector.load %arg8[%c0_6, %c0_7] : memref<64x128xf32, #tpu.memory_space<vmem>>, vector<64x128xf32>
    tpu.vector_store %arg8[%c0_6, %c0_7], %7 {strides = array<i32>} : memref<64x128xf32, #tpu.memory_space<vmem>>, vector<64x128xf32>,
    %c0_i32_8 = arith.constant 0 : i32
    %9 = arith.cmpi eq, %arg2, %c0_i32_8 : i32
    %10 = arith.extui %9 : i1 to i32
    %c0_i32_9 = arith.constant 0 : i32
    %11 = arith.cmpi ne, %10, %c0_i32_9 : i32
    scf.if %11 {
      %c0_10 = arith.constant 0 : index
      %c0_11 = arith.constant 0 : index
      %12 = vector.load %arg8[%c0_10, %c0_11] : memref<64x128xf32, #tpu.memory_space<vmem>>, vector<64x128xf32>
      %c0_12 = arith.constant 0 : index
      %c0_13 = arith.constant 0 : index
      %13 = vector.load %arg5[%c0_12, %c0_13] : memref<1x128xf32, #tpu.memory_space<vmem>>, vector<1x128xf32>
      %14 = vector.broadcast %13 : vector<1x128xf32> to vector<64x128xf32>
      %15 = arith.addf %12, %14 : vector<64x128xf32>
      %c0_14 = arith.constant 0 : index
      %c0_15 = arith.constant 0 : index
      %16 = vector.load %arg6[%c0_14, %c0_15] : memref<64x128xf32, #tpu.memory_space<vmem>>, vector<64x128xf32>
      %17 = arith.addf %15, %16 : vector<64x128xf32>
      %c0_16 = arith.constant 0 : index
      %c0_17 = arith.constant 0 : index
      %18 = vector.load %arg7[%c0_16, %c0_17] : memref<64x128xf32, #tpu.memory_space<vmem>>, vector<64x128xf32>
      tpu.vector_store %arg7[%c0_16, %c0_17], %17 {strides = array<i32>} : memref<64x128xf32, #tpu.memory_space<vmem>>, vector<64x128xf32>,
    } else {
    }
    return
  }
  func.func @transform_0(%arg0: i32, %arg1: i32, %arg2: i32) -> (i32, i32) {
    %c0_i32 = arith.constant 0 : i32
    return %arg0, %arg2 : i32, i32
  }
  func.func @transform_1(%arg0: i32, %arg1: i32, %arg2: i32) -> (i32, i32) {
    %c0_i32 = arith.constant 0 : i32
    return %arg2, %arg1 : i32, i32
  }
  func.func @transform_2(%arg0: i32, %arg1: i32, %arg2: i32) -> (i32, i32) {
    %c0_i32 = arith.constant 0 : i32
    %c0_i32_0 = arith.constant 0 : i32
    return %c0_i32, %arg1 : i32, i32
  }
  func.func @transform_3(%arg0: i32, %arg1: i32, %arg2: i32) -> (i32, i32) {
    %c0_i32 = arith.constant 0 : i32
    return %arg0, %arg1 : i32, i32
  }
  func.func @transform_4(%arg0: i32, %arg1: i32, %arg2: i32) -> (i32, i32) {
    %c0_i32 = arith.constant 0 : i32
    return %arg0, %arg1 : i32, i32
  }
}

module attributes {stable_mosaic.version = 11 : i64} {
  func.func @kernel(%arg0: i32, %arg1: i32, %arg2: memref<64x128xf32, #tpu.memory_space<vmem>>, %arg3: memref<1x128xf32, #tpu.memory_space<vmem>>, %arg4: memref<1x128xf32, #tpu.memory_space<vmem>>, %arg5: memref<128x128xf32, #tpu.memory_space<vmem>>, %arg6: memref<1x128xf32, #tpu.memory_space<vmem>>, %arg7: memref<64x128xf32, #tpu.memory_space<vmem>>) attributes {dimension_semantics = [#tpu.dimension_semantics<parallel>, #tpu.dimension_semantics<parallel>], iteration_bounds = array<i64: 3, 4>, scalar_prefetch = 0 : i64, scratch_operands = 0 : i64, tpu.core_type = #tpu.core_type<tc>, window_params = [{transform_indices = @transform_0, window_bounds = array<i64: 64, 128>}, {pipeline_mode = #tpu.pipeline_mode<synchronous>, transform_indices = @transform_1, window_bounds = array<i64: 1, 128>}, {pipeline_mode = #tpu.pipeline_mode<synchronous>, transform_indices = @transform_2, window_bounds = array<i64: 1, 128>}, {transform_indices = @transform_3, window_bounds = array<i64: 128, 128>}, {transform_indices = @transform_4, window_bounds = array<i64: 1, 128>}, {transform_indices = @transform_5, window_bounds = array<i64: 64, 128>}]} {
    %c0 = arith.constant 0 : index
    %c0_0 = arith.constant 0 : index
    %0 = vector.load %arg2[%c0, %c0_0] : memref<64x128xf32, #tpu.memory_space<vmem>>, vector<64x128xf32>
    %cst = arith.constant dense<0.000000e+00> : vector<64xf32>
    %1 = vector.multi_reduction <add>, %0, %cst [1] : vector<64x128xf32> to vector<64xf32>
    %2 = vector.shape_cast %1 : vector<64xf32> to vector<64x1xf32>
    %cst_1 = arith.constant 1.280000e+02 : f32
    %3 = vector.broadcast %cst_1 : f32 to vector<64x1xf32>
    %4 = arith.divf %2, %3 : vector<64x1xf32>
    %5 = vector.broadcast %4 : vector<64x1xf32> to vector<64x128xf32>
    %6 = arith.subf %0, %5 : vector<64x128xf32>
    %7 = arith.mulf %6, %6 : vector<64x128xf32>
    %cst_2 = arith.constant dense<0.000000e+00> : vector<64xf32>
    %8 = vector.multi_reduction <add>, %7, %cst_2 [1] : vector<64x128xf32> to vector<64xf32>
    %9 = vector.shape_cast %8 : vector<64xf32> to vector<64x1xf32>
    %cst_3 = arith.constant 1.280000e+02 : f32
    %10 = vector.broadcast %cst_3 : f32 to vector<64x1xf32>
    %11 = arith.divf %9, %10 : vector<64x1xf32>
    %12 = vector.broadcast %4 : vector<64x1xf32> to vector<64x128xf32>
    %13 = arith.subf %0, %12 : vector<64x128xf32>
    %cst_4 = arith.constant 9.99999974E-6 : f32
    %14 = vector.broadcast %cst_4 : f32 to vector<64x1xf32>
    %15 = arith.addf %11, %14 : vector<64x1xf32>
    %16 = math.rsqrt %15 : vector<64x1xf32>
    %17 = vector.broadcast %16 : vector<64x1xf32> to vector<64x128xf32>
    %18 = arith.mulf %13, %17 : vector<64x128xf32>
    %c0_5 = arith.constant 0 : index
    %c0_6 = arith.constant 0 : index
    %19 = vector.load %arg3[%c0_5, %c0_6] : memref<1x128xf32, #tpu.memory_space<vmem>>, vector<1x128xf32>
    %20 = vector.broadcast %19 : vector<1x128xf32> to vector<64x128xf32>
    %21 = arith.mulf %18, %20 : vector<64x128xf32>
    %c0_7 = arith.constant 0 : index
    %c0_8 = arith.constant 0 : index
    %22 = vector.load %arg4[%c0_7, %c0_8] : memref<1x128xf32, #tpu.memory_space<vmem>>, vector<1x128xf32>
    %23 = vector.broadcast %22 : vector<1x128xf32> to vector<64x128xf32>
    %24 = arith.addf %21, %23 : vector<64x128xf32>
    %c0_9 = arith.constant 0 : index
    %c0_10 = arith.constant 0 : index
    %25 = vector.load %arg5[%c0_9, %c0_10] : memref<128x128xf32, #tpu.memory_space<vmem>>, vector<128x128xf32>
    %cst_11 = arith.constant dense<0.000000e+00> : vector<64x128xf32>
    %26 = tpu.matmul %24, %25, %cst_11 {dimension_numbers = #tpu.dot_dimension_numbers<[1], [0], [0], [1], [0, 0, 1, 1], [], []>} : vector<64x128xf32>, vector<128x128xf32>, vector<64x128xf32> -> vector<64x128xf32>
    %c0_12 = arith.constant 0 : index
    %c0_13 = arith.constant 0 : index
    %27 = vector.load %arg6[%c0_12, %c0_13] : memref<1x128xf32, #tpu.memory_space<vmem>>, vector<1x128xf32>
    %28 = vector.broadcast %27 : vector<1x128xf32> to vector<64x128xf32>
    %29 = arith.addf %26, %28 : vector<64x128xf32>
    %cst_14 = arith.constant 1.702000e+00 : f32
    %30 = vector.broadcast %cst_14 : f32 to vector<64x128xf32>
    %31 = arith.mulf %30, %29 : vector<64x128xf32>
    %32 = arith.negf %31 : vector<64x128xf32>
    %33 = math.exp %32 : vector<64x128xf32>
    %cst_15 = arith.constant 1.000000e+00 : f32
    %34 = vector.broadcast %cst_15 : f32 to vector<64x128xf32>
    %35 = arith.addf %34, %33 : vector<64x128xf32>
    %36 = arith.divf %34, %35 : vector<64x128xf32>
    %37 = arith.mulf %29, %36 : vector<64x128xf32>
    %c0_16 = arith.constant 0 : index
    %c0_17 = arith.constant 0 : index
    %38 = vector.load %arg7[%c0_16, %c0_17] : memref<64x128xf32, #tpu.memory_space<vmem>>, vector<64x128xf32>
    tpu.vector_store %arg7[%c0_16, %c0_17], %37 {strides = array<i32>} : memref<64x128xf32, #tpu.memory_space<vmem>>, vector<64x128xf32>,
    return
  }
  func.func @transform_0(%arg0: i32, %arg1: i32) -> (i32, i32) {
    %c0_i32 = arith.constant 0 : i32
    %c0_i32_0 = arith.constant 0 : i32
    return %arg0, %c0_i32 : i32, i32
  }
  func.func @transform_1(%arg0: i32, %arg1: i32) -> (i32, i32) {
    %c0_i32 = arith.constant 0 : i32
    %c0_i32_0 = arith.constant 0 : i32
    %c0_i32_1 = arith.constant 0 : i32
    return %c0_i32, %c0_i32_0 : i32, i32
  }
  func.func @transform_2(%arg0: i32, %arg1: i32) -> (i32, i32) {
    %c0_i32 = arith.constant 0 : i32
    %c0_i32_0 = arith.constant 0 : i32
    %c0_i32_1 = arith.constant 0 : i32
    return %c0_i32, %c0_i32_0 : i32, i32
  }
  func.func @transform_3(%arg0: i32, %arg1: i32) -> (i32, i32) {
    %c0_i32 = arith.constant 0 : i32
    %c0_i32_0 = arith.constant 0 : i32
    return %c0_i32, %arg1 : i32, i32
  }
  func.func @transform_4(%arg0: i32, %arg1: i32) -> (i32, i32) {
    %c0_i32 = arith.constant 0 : i32
    %c0_i32_0 = arith.constant 0 : i32
    return %c0_i32, %arg1 : i32, i32
  }
  func.func @transform_5(%arg0: i32, %arg1: i32) -> (i32, i32) {
    %c0_i32 = arith.constant 0 : i32
    return %arg0, %arg1 : i32, i32
  }
}

module attributes {stable_mosaic.version = 11 : i64} {
  func.func @kernel(%arg0: i32, %arg1: i32, %arg2: i32, %arg3: memref<64x256xf32, #tpu.memory_space<vmem>>, %arg4: memref<256x128xf32, #tpu.memory_space<vmem>>, %arg5: memref<1x128xf32, #tpu.memory_space<vmem>>, %arg6: memref<64x128xf32, #tpu.memory_space<vmem>>, %arg7: memref<64x128xf32, #tpu.memory_space<vmem>>, %arg8: memref<64x128xf32, #tpu.memory_space<vmem>>) attributes {dimension_semantics = [#tpu.dimension_semantics<parallel>, #tpu.dimension_semantics<parallel>, #tpu.dimension_semantics<arbitrary>], iteration_bounds = array<i64: 3, 1, 2>, scalar_prefetch = 0 : i64, scratch_operands = 1 : i64, tpu.core_type = #tpu.core_type<tc>, window_params = [{transform_indices = @transform_0, window_bounds = array<i64: 64, 256>}, {transform_indices = @transform_1, window_bounds = array<i64: 256, 128>}, {transform_indices = @transform_2, window_bounds = array<i64: 1, 128>}, {transform_indices = @transform_3, window_bounds = array<i64: 64, 128>}, {transform_indices = @transform_4, window_bounds = array<i64: 64, 128>}]} {
    %c0_i32 = arith.constant 0 : i32
    %0 = arith.cmpi eq, %arg2, %c0_i32 : i32
    %1 = arith.extui %0 : i1 to i32
    %c0_i32_0 = arith.constant 0 : i32
    %2 = arith.cmpi ne, %1, %c0_i32_0 : i32
    scf.if %2 {
      %cst_9 = arith.constant 0.000000e+00 : f32
      %12 = vector.broadcast %cst_9 : f32 to vector<64x128xf32>
      %c0_10 = arith.constant 0 : index
      %c0_11 = arith.constant 0 : index
      %13 = vector.load %arg8[%c0_10, %c0_11] : memref<64x128xf32, #tpu.memory_space<vmem>>, vector<64x128xf32>
      tpu.vector_store %arg8[%c0_10, %c0_11], %12 {strides = array<i32>} : memref<64x128xf32, #tpu.memory_space<vmem>>, vector<64x128xf32>,
    } else {
    }
    %c0 = arith.constant 0 : index
    %c0_1 = arith.constant 0 : index
    %3 = vector.load %arg8[%c0, %c0_1] : memref<64x128xf32, #tpu.memory_space<vmem>>, vector<64x128xf32>
    %c0_2 = arith.constant 0 : index
    %c0_3 = arith.constant 0 : index
    %4 = vector.load %arg3[%c0_2, %c0_3] : memref<64x256xf32, #tpu.memory_space<vmem>>, vector<64x256xf32>
    %c0_4 = arith.constant 0 : index
    %c0_5 = arith.constant 0 : index
    %5 = vector.load %arg4[%c0_4, %c0_5] : memref<256x128xf32, #tpu.memory_space<vmem>>, vector<256x128xf32>
    %cst = arith.constant dense<0.000000e+00> : vector<64x128xf32>
    %6 = tpu.matmul %4, %5, %cst {dimension_numbers = #tpu.dot_dimension_numbers<[1], [0], [0], [1], [0, 0, 1, 1], [], []>} : vector<64x256xf32>, vector<256x128xf32>, vector<64x128xf32> -> vector<64x128xf32>
    %7 = arith.addf %3, %6 : vector<64x128xf32>
    %c0_6 = arith.constant 0 : index
    %c0_7 = arith.constant 0 : index
    %8 = vector.load %arg8[%c0_6, %c0_7] : memref<64x128xf32, #tpu.memory_space<vmem>>, vector<64x128xf32>
    tpu.vector_store %arg8[%c0_6, %c0_7], %7 {strides = array<i32>} : memref<64x128xf32, #tpu.memory_space<vmem>>, vector<64x128xf32>,
    %c1_i32 = arith.constant 1 : i32
    %9 = arith.cmpi eq, %arg2, %c1_i32 : i32
    %10 = arith.extui %9 : i1 to i32
    %c0_i32_8 = arith.constant 0 : i32
    %11 = arith.cmpi ne, %10, %c0_i32_8 : i32
    scf.if %11 {
      %c0_9 = arith.constant 0 : index
      %c0_10 = arith.constant 0 : index
      %12 = vector.load %arg8[%c0_9, %c0_10] : memref<64x128xf32, #tpu.memory_space<vmem>>, vector<64x128xf32>
      %c0_11 = arith.constant 0 : index
      %c0_12 = arith.constant 0 : index
      %13 = vector.load %arg5[%c0_11, %c0_12] : memref<1x128xf32, #tpu.memory_space<vmem>>, vector<1x128xf32>
      %14 = vector.broadcast %13 : vector<1x128xf32> to vector<64x128xf32>
      %15 = arith.addf %12, %14 : vector<64x128xf32>
      %c0_13 = arith.constant 0 : index
      %c0_14 = arith.constant 0 : index
      %16 = vector.load %arg6[%c0_13, %c0_14] : memref<64x128xf32, #tpu.memory_space<vmem>>, vector<64x128xf32>
      %17 = arith.addf %15, %16 : vector<64x128xf32>
      %c0_15 = arith.constant 0 : index
      %c0_16 = arith.constant 0 : index
      %18 = vector.load %arg7[%c0_15, %c0_16] : memref<64x128xf32, #tpu.memory_space<vmem>>, vector<64x128xf32>
      tpu.vector_store %arg7[%c0_15, %c0_16], %17 {strides = array<i32>} : memref<64x128xf32, #tpu.memory_space<vmem>>, vector<64x128xf32>,
    } else {
    }
    return
  }
  func.func @transform_0(%arg0: i32, %arg1: i32, %arg2: i32) -> (i32, i32) {
    %c0_i32 = arith.constant 0 : i32
    return %arg0, %arg2 : i32, i32
  }
  func.func @transform_1(%arg0: i32, %arg1: i32, %arg2: i32) -> (i32, i32) {
    %c0_i32 = arith.constant 0 : i32
    return %arg2, %arg1 : i32, i32
  }
  func.func @transform_2(%arg0: i32, %arg1: i32, %arg2: i32) -> (i32, i32) {
    %c0_i32 = arith.constant 0 : i32
    %c0_i32_0 = arith.constant 0 : i32
    return %c0_i32, %arg1 : i32, i32
  }
  func.func @transform_3(%arg0: i32, %arg1: i32, %arg2: i32) -> (i32, i32) {
    %c0_i32 = arith.constant 0 : i32
    return %arg0, %arg1 : i32, i32
  }
  func.func @transform_4(%arg0: i32, %arg1: i32, %arg2: i32) -> (i32, i32) {
    %c0_i32 = arith.constant 0 : i32
    return %arg0, %arg1 : i32, i32
  }
}

</mosaic_0001>

<bundles_post_ra>
// kernel: cf_tower_s2_forward.7
= control target key start
LH: loop header
LB: loop body
LE: loop exit
PB: predicated region body
PF: predicated region fallthrough
CT: control target
= control target key end

     0   :  { %s625_s12 = smov 0   ;;  %s627_s13 = smov 0   ;;  %s694_s0 = inlined_call_operand.vmem [shape: f32[192,48], index: 0, kind: input, shape index: {}]   ;;  %s695_s1 = inlined_call_operand.vmem [shape: f32[48,128], index: 1, kind: input, shape index: {}]   ;;  %s696_s2 = inlined_call_operand.vmem [shape: f32[1,128], index: 2, kind: input, shape index: {}]   ;;  %s697_s3 = inlined_call_operand.vmem [shape: f32[192,128], index: 3, kind: output, shape index: {}]  }
   0x1   :  { %s629_s14 = smov 0  }
   0x2 LB: > { %s32_s15 = sadd.s32 1, %s599_s13  ;;  %p523_p0 = scmp.ge.s32.totalorder %s603_s14, 1  ;;  %s603_s14 = sphi %s629_s14, %s13_s14   ;;  %s599_s13 = sphi %s627_s13, %s699_s13   ;;  %s595_s12 = sphi %s625_s12, %s698_s12  }
   0x3   : > { %p34_p1 = scmp.ge.s32.totalorder %s32_s15, 3  ;;  %p188_p2 = scmp.lt.s32.totalorder %s603_s14, 4 }
   0x5   : > { %s701_s15 = smov (%p34_p1, %s32_s15), 0  ;;  %p189_p3 = pnand %p523_p0, %p188_p2 }
   0x6   : > { %s524_s20 = sshll.u32 (!%p189_p3), %s595_s12, 3 }
   0x7   : > { %192 = sbr.rel (%p189_p3) target bundleno = 168 (0xa8), region = 32  ;;  %p230_p4 = scmp.lt.s32.totalorder (!%p189_p3), %s524_s20, 23 }
   0xc   : > { %v292_v0 = vld [vmem:[%s695_s1 + $0x28] sm:$0xff]  ;;  %v291_v1 = vld [vmem:[%s695_s1 + $0x20] sm:$0xff]  ;;  %v290_v2 = vld [vmem:[%s695_s1 + $0x18] sm:$0xff]  ;;  %s703_s20 = smov (!%p230_p4, %s524_s20), 23  ;;  %vm293_vm0 = vcmask 392192  }
   0xd   : > { %539 = vmatpush.msra.mxu2 %v292_v0  ;;  %540 = vmatpush.msra.mxu3 %v292_v0  ;;  %v289_v3 = vld [vmem:[%s695_s1 + $0x10] sm:$0xff]  ;;  %s525_s25 = sshll.u32 %s703_s20, 3  ;;  %v288_v4 = vld [vmem:[%s695_s1 + $0x8] sm:$0xff]  ;;  %v287_v5 = vld [vmem:[%s695_s1] sm:$0xff] }
   0xe   : > { %328 = vmatpush.msra.mxu0 %v292_v0  ;;  %538 = vmatpush.msra.mxu1 %v292_v0  ;;  %s236_s30 = scalar_lea.vmem %s694_s0, %s525_s25  ;;  %v580_v14 = vld [vmem:[%s696_s2] ss:$0 sm:$0xff]  ;;  %s257_s10 = scalar_lea.vmem %s697_s3, %s525_s25 }
   0xf   : > { %542 = vmatpush.msra.mxu2 %v291_v1  ;;  %543 = vmatpush.msra.mxu3 %v291_v1  ;;  %v283_v6 = vld [vmem:[%s236_s30 + $0x20] sm:$0xff]  ;;  %v285_v7 = vld [vmem:[%s236_s30 + $0x30] sm:$0xff]  ;;  %v284_v10 = vld [vmem:[%s236_s30 + $0x28] sm:$0xff] }
  0x10   : > { %329 = vmatpush.msra.mxu0 %v291_v1  ;;  %541 = vmatpush.msra.mxu1 %v291_v1  ;;  %v279_v8 = vld [vmem:[%s236_s30] sm:$0xff]  ;;  %v281_v9 = vld [vmem:[%s236_s30 + $0x10] sm:$0xff]  ;;  %v286_v11 = vld [vmem:[%s236_s30 + $0x38] sm:$0xff] }
  0x11   : > { %545 = vmatpush.msra.mxu2 %v290_v2  ;;  %546 = vmatpush.msra.mxu3 %v290_v2  ;;  %v280_v12 = vld [vmem:[%s236_s30 + $0x8] sm:$0xff]  ;;  %v282_v13 = vld [vmem:[%s236_s30 + $0x18] sm:$0xff] }
  0x12   : > { %330 = vmatpush.msra.mxu0 %v290_v2  ;;  %544 = vmatpush.msra.mxu1 %v290_v2 }
  0x13   : > { %548 = vmatpush.msra.mxu2 %v289_v3  ;;  %549 = vmatpush.msra.mxu3 %v289_v3 }
  0x14   : > { %331 = vmatpush.msra.mxu0 %v289_v3  ;;  %547 = vmatpush.msra.mxu1 %v289_v3 }
  0x15   : > { %551 = vmatpush.msra.mxu2 %v288_v4  ;;  %552 = vmatpush.msra.mxu3 %v288_v4 }
  0x16   : > { %332 = vmatpush.msra.mxu0 %v288_v4  ;;  %550 = vmatpush.msra.mxu1 %v288_v4 }
  0x17   : > { %554 = vmatpush.msra.mxu2 %v287_v5  ;;  %555 = vmatpush.msra.mxu3 %v287_v5 }
  0x18   : > { %532 = vmatmul.msk.f32.vlgmr.msra.gmra.mxu2 %vm293_vm0, %v283_v6  ;;  %534 = vmatmul.msk.f32.vlgmr.msra.gmra.mxu3 %vm293_vm0, %v285_v7 }
  0x19   : > { %333 = vmatpush.msra.mxu0 %v287_v5  ;;  %553 = vmatpush.msra.mxu1 %v287_v5 }
  0x1a   : > { %528 = vmatmul.msk.f32.vlgmr.msra.gmra.mxu0 %vm293_vm0, %v279_v8  ;;  %530 = vmatmul.msk.f32.vlgmr.msra.gmra.mxu1 %vm293_vm0, %v281_v9 }
  0x20   : > { %533 = vmatmul.msk.f32.gmra.mxu2 %vm293_vm0, %v284_v10  ;;  %535 = vmatmul.msk.f32.gmra.mxu3 %vm293_vm0, %v286_v11 }
  0x22   : > { %529 = vmatmul.msk.f32.gmra.mxu0 %vm293_vm0, %v280_v12  ;;  %531 = vmatmul.msk.f32.gmra.mxu1 %vm293_vm0, %v282_v13 }
  0x97   : > { %v335_v15 = vpop.f32.mrf.mxu0  ;;  %v341_v16 = vpop.f32.mrf.mxu1 }
  0x98   : > { %v390_v17 = vadd.f32 %v580_v14, %v335_v15  ;;  %v392_v18 = vadd.f32 %v580_v14, %v341_v16 }
  0x9a   : > { %398 = vst [vmem:[%s257_s10] sm:$0xff] %v390_v17 }
  0x9b   : > { %400 = vst [vmem:[%s257_s10 + $0x10] sm:$0xff] %v392_v18  ;;  %v347_v19 = vpop.f32.mrf.mxu2  ;;  %v353_v20 = vpop.f32.mrf.mxu3 }
  0x9c   : > { %v394_v21 = vadd.f32 %v580_v14, %v347_v19  ;;  %v396_v22 = vadd.f32 %v580_v14, %v353_v20 }
  0x9e   : > { %402 = vst [vmem:[%s257_s10 + $0x20] sm:$0xff] %v394_v21 }
  0x9f   : > { %404 = vst [vmem:[%s257_s10 + $0x30] sm:$0xff] %v396_v22  ;;  %v338_v23 = vpop.f32.mrf.mxu0  ;;  %v344_v24 = vpop.f32.mrf.mxu1 }
  0xa0   : > { %v391_v25 = vadd.f32 %v580_v14, %v338_v23  ;;  %v393_v26 = vadd.f32 %v580_v14, %v344_v24 }
  0xa2   : > { %399 = vst [vmem:[%s257_s10 + $0x8] sm:$0xff] %v391_v25 }
  0xa3   : > { %401 = vst [vmem:[%s257_s10 + $0x18] sm:$0xff] %v393_v26  ;;  %v350_v27 = vpop.f32.mrf.mxu2  ;;  %v356_v28 = vpop.f32.mrf.mxu3 }
  0xa4   : > { %v395_v29 = vadd.f32 %v580_v14, %v350_v27  ;;  %v397_v30 = vadd.f32 %v580_v14, %v356_v28 }
  0xa6   : > { %403 = vst [vmem:[%s257_s10 + $0x28] sm:$0xff] %v395_v29 }
  0xa7   : > { %405 = vst [vmem:[%s257_s10 + $0x38] sm:$0xff] %v397_v30 }
  0xa8 PF: > { %s13_s14 = sadd.s32 1, %s603_s14   ;;  %s698_s12 = smov %s599_s13 }
  0xa9   : > { %p10_p5 = scmp.ge.s32.totalorder %s13_s14, 5   ;;  %s699_s13 = smov %s701_s15 }
  0xab   :  { %12 = sbr.rel (!%p10_p5) target bundleno = 2 (0x2), region = 76 }

// kernel: cf_tower_s2_forward.8
= control target key start
LH: loop header
LB: loop body
LE: loop exit
PB: predicated region body
PF: predicated region fallthrough
CT: control target
= control target key end

     0   :  { %s506_s12 = smov 0   ;;  %s655_s0 = inlined_call_operand.vmem [shape: f32[192,128], index: 0, kind: input, shape index: {}]   ;;  %s656_s1 = inlined_call_operand.vmem [shape: f32[1,128], index: 1, kind: input, shape index: {}]   ;;  %s657_s2 = inlined_call_operand.vmem [shape: f32[1,128], index: 2, kind: input, shape index: {}]   ;;  %s658_s3 = inlined_call_operand.vmem [shape: f32[192,128], index: 3, kind: output, shape index: {}]  }
   0x1 LB: > { %s437_s13 = sadd.s32 4294967295, %s483_s12   ;;  %p441_p0 = scmp.ge.s32.totalorder %s483_s12, 1  ;;  %s483_s12 = sphi %s506_s12, %s13_s12  }
   0x2   : > { %p138_p1 = scmp.lt.s32.totalorder %s483_s12, 4 }
   0x4   : > { %p139_p2 = pnand %p441_p0, %p138_p1 }
   0x5   : > { %s442_s14 = sshll.u32 (!%p139_p2), %s437_s13, 3 }
   0x6   : > { %142 = sbr.rel (%p139_p2) target bundleno = 307 (0x133), region = 32  ;;  %p163_p3 = scmp.lt.s32.totalorder (!%p139_p2), %s442_s14, 23 }
   0xb   : > { %s662_s14 = smov (!%p163_p3, %s442_s14), 23  ;;  %v485_v8 = vmov 128.0  }
   0xc   : > { %s443_s15 = sshll.u32 %s662_s14, 3  ;;  %459 = vrcp.f32 %v485_v8 }
   0xd   : > { %s166_s18 = scalar_lea.vmem %s655_s0, %s443_s15  ;;  %s605_s25 = scalar_lea.vmem %s658_s3, %s443_s15 }
   0xe   : > { %v178_v0 = vld [vmem:[%s166_s18 + $0x20] sm:$0xff]  ;;  %v176_v1 = vld [vmem:[%s166_s18 + $0x10] sm:$0xff]  ;;  %v179_v3 = vld [vmem:[%s166_s18 + $0x28] sm:$0xff] }
   0xf   : > { %v174_v2 = vld [vmem:[%s166_s18] sm:$0xff]  ;;  %190 = vadd.xlane.f32.xlu2 %v178_v0  ;;  %186 = vadd.xlane.f32.xlu1 %v176_v1  ;;  %v177_v4 = vld [vmem:[%s166_s18 + $0x18] sm:$0xff]  ;;  %v175_v5 = vld [vmem:[%s166_s18 + $0x8] sm:$0xff] }
  0x10   : > { %182 = vadd.xlane.f32.xlu0 %v174_v2  ;;  %v181_v6 = vld [vmem:[%s166_s18 + $0x38] sm:$0xff]  ;;  %v180_v7 = vld [vmem:[%s166_s18 + $0x30] sm:$0xff] }
  0x12   : > { %v460_v9 = vpop.eup %459 }
  0x13   : > { %v199_v10 = vmul.f32 128.0, %v460_v9  ;;  %vm203_vm0 = vweird.f32 %v460_v9 }
  0x15   : > { %v200_v11 = vsub.f32 1.0, %v199_v10 }
  0x17   : > { %192 = vadd.xlane.f32.xlu2 %v179_v3  ;;  %188 = vadd.xlane.f32.xlu1 %v177_v4  ;;  %v201_v12 = vmul.f32 %v460_v9, %v200_v11 }
  0x18   : > { %184 = vadd.xlane.f32.xlu0 %v175_v5 }
  0x19   : > { %v202_v13 = vadd.f32 %v460_v9, %v201_v12 }
  0x1b   : > { %v522_v14 = vsel %vm203_vm0, %v460_v9, %v202_v13 }
  0x1f   : > { %196 = vadd.xlane.f32.xlu1 %v181_v6 }
  0x20   : > { %194 = vadd.xlane.f32.xlu0 %v180_v7 }
  0x82   : > { %v191_v15 = vpop.xlane.xlu2 %190  ;;  %v187_v16 = vpop.xlane.xlu1 %186 }
  0x83   : > { %v207_v17 = vmul.f32 %v522_v14, %v187_v16  ;;  %v183_v18 = vpop.xlane.xlu0 %182  ;;  %v209_v32 = vmul.f32 %v522_v14, %v191_v15 }
  0x84   : > { %v205_v19 = vmul.f32 %v522_v14, %v183_v18 }
  0x85   : > { %v526_v20 = vsub.f32 %v176_v1, %v207_v17  ;;  %v550_v37 = vsub.f32 %v178_v0, %v209_v32 }
  0x86   : > { %v528_v21 = vsub.f32 %v174_v2, %v205_v19  ;;  %v582_v19 = vld [vmem:[%s656_s1] ss:$0 sm:$0xff] }
  0x87   : > { %v223_v22 = vmul.f32 %v526_v20, %v526_v20  ;;  %v225_v42 = vmul.f32 %v550_v37, %v550_v37 }
  0x88   : > { %v221_v23 = vmul.f32 %v528_v21, %v528_v21 }
  0x89   : > { %233 = vadd.xlane.f32.xlu1 %v223_v22 }
  0x8a   : > { %229 = vadd.xlane.f32.xlu2 %v221_v23  ;;  %v193_v24 = vpop.xlane.xlu2 %192  ;;  %v189_v25 = vpop.xlane.xlu1 %188 }
  0x8b   : > { %v210_v26 = vmul.f32 %v522_v14, %v193_v24  ;;  %v208_v27 = vmul.f32 %v522_v14, %v189_v25  ;;  %v185_v28 = vpop.xlane.xlu0 %184 }
  0x8c   : > { %v206_v29 = vmul.f32 %v522_v14, %v185_v28  ;;  %v592_v28 = vld [vmem:[%s657_s2] ss:$0 sm:$0xff] }
  0x8d   : > { %v537_v30 = vsub.f32 %v179_v3, %v210_v26  ;;  %v539_v31 = vsub.f32 %v177_v4, %v208_v27 }
  0x8e   : > { %v542_v33 = vsub.f32 %v175_v5, %v206_v29 }
  0x8f   : > { %v226_v34 = vmul.f32 %v537_v30, %v537_v30  ;;  %v224_v35 = vmul.f32 %v539_v31, %v539_v31 }
  0x90   : > { %v222_v36 = vmul.f32 %v542_v33, %v542_v33 }
  0x91   : > { %239 = vadd.xlane.f32.xlu1 %v226_v34 }
  0x92   : > { %235 = vadd.xlane.f32.xlu2 %v224_v35  ;;  %231 = vadd.xlane.f32.xlu0 %v222_v36  ;;  %v197_v39 = vpop.xlane.xlu1 %196 }
  0x93   : > { %v195_v38 = vpop.xlane.xlu0 %194  ;;  %v212_v43 = vmul.f32 %v522_v14, %v197_v39 }
  0x94   : > { %v211_v40 = vmul.f32 %v522_v14, %v195_v38 }
  0x95   : > { %v560_v45 = vsub.f32 %v181_v6, %v212_v43 }
  0x96   : > { %v553_v41 = vsub.f32 %v180_v7, %v211_v40 }
  0x97   : > { %v228_v46 = vmul.f32 %v560_v45, %v560_v45 }
  0x98   : > { %v227_v44 = vmul.f32 %v553_v41, %v553_v41 }
  0x9a   : > { %237 = vadd.xlane.f32.xlu0 %v225_v42  ;;  %241 = vadd.xlane.f32.xlu2 %v227_v44 }
  0xa2   : > { %243 = vadd.xlane.f32.xlu0 %v228_v46 }
  0xfc   : > { %v234_v47 = vpop.xlane.xlu1 %233 }
  0xfd   : > { %v247_v48 = vmul.f32 %v234_v47, %v522_v14  ;;  %v230_v49 = vpop.xlane.xlu2 %229 }
  0xfe   : > { %v245_v50 = vmul.f32 %v230_v49, %v522_v14 }
  0xff   : > { %v255_v51 = vadd.f32 1e-05, %v247_v48 }
 0x100   : > { %v253_v52 = vadd.f32 1e-05, %v245_v50 }
 0x101   : > { %461 = vrsqrt.f32 %v255_v51  ;;  %vm287_vm1 = vweird.f32 %v255_v51 }
 0x102   : > { %463 = vrsqrt.f32 %v253_v52  ;;  %vm267_vm5 = vweird.f32 %v253_v52 }
 0x104   : > { %v240_v53 = vpop.xlane.xlu1 %239 }
 0x105   : > { %v250_v54 = vmul.f32 %v240_v53, %v522_v14  ;;  %v236_v55 = vpop.xlane.xlu2 %235  ;;  %v232_v56 = vpop.xlane.xlu0 %231 }
 0x106   : > { %v248_v57 = vmul.f32 %v236_v55, %v522_v14  ;;  %v246_v58 = vmul.f32 %v232_v56, %v522_v14 }
 0x107   : > { %v462_v59 = vpop.eup %461  ;;  %v258_v60 = vadd.f32 1e-05, %v250_v54 }
 0x108   : > { %v464_v61 = vpop.eup %463  ;;  %v282_v62 = vmul.f32 %v462_v59, %v255_v51  ;;  %v569_v63 = vadd.f32 1e-05, %v248_v57  ;;  %v571_v0 = vadd.f32 1e-05, %v246_v58  ;;  %vm288_vm2 = vweird.f32 %v462_v59 }
 0x109   : > { %v262_v1 = vmul.f32 %v464_v61, %v253_v52  ;;  %465 = vrsqrt.f32 %v258_v60  ;;  %vm268_vm3 = vweird.f32 %v464_v61  ;;  %vm289_vm4 = vmor %vm287_vm1, %vm288_vm2  ;;  %vm317_vm7 = vweird.f32 %v258_v60 }
 0x10a   : > { %v283_v2 = vmul.f32 %v462_v59, %v282_v62  ;;  %467 = vrsqrt.f32 %v569_v63  ;;  %vm269_vm6 = vmor %vm267_vm5, %vm268_vm3  ;;  %vm297_vm9 = vweird.f32 %v569_v63  ;;  %vm277_vm14 = vweird.f32 %v571_v0 }
 0x10b   : > { %v263_v3 = vmul.f32 %v464_v61, %v262_v1  ;;  %469 = vrsqrt.f32 %v571_v0 }
 0x10c   : > { %v284_v4 = vmul.f32 0.5, %v283_v2 }
 0x10d   : > { %v264_v5 = vmul.f32 0.5, %v263_v3  ;;  %v242_v6 = vpop.xlane.xlu2 %241  ;;  %v238_v7 = vpop.xlane.xlu0 %237 }
 0x10e   : > { %v285_v8 = vsub.f32 1.5, %v284_v4  ;;  %v251_v9 = vmul.f32 %v242_v6, %v522_v14  ;;  %v249_v10 = vmul.f32 %v238_v7, %v522_v14 }
 0x10f   : > { %v466_v11 = vpop.eup %465  ;;  %v265_v12 = vsub.f32 1.5, %v264_v5 }
 0x110   : > { %v468_v13 = vpop.eup %467  ;;  %v286_v15 = vmul.f32 %v462_v59, %v285_v8  ;;  %v312_v16 = vmul.f32 %v466_v11, %v258_v60  ;;  %v577_v17 = vadd.f32 1e-05, %v251_v9  ;;  %v586_v24 = vadd.f32 1e-05, %v249_v10 }
 0x111   : > { %v470_v18 = vpop.eup %469  ;;  %v266_v22 = vmul.f32 %v464_v61, %v265_v12  ;;  %v292_v23 = vmul.f32 %v468_v13, %v569_v63  ;;  %vm318_vm8 = vweird.f32 %v466_v11  ;;  %vm298_vm11 = vweird.f32 %v468_v13 }
 0x112   : > { %v290_v25 = vsel %vm289_vm4, %v462_v59, %v286_v15  ;;  %v313_v26 = vmul.f32 %v466_v11, %v312_v16  ;;  %v272_v27 = vmul.f32 %v470_v18, %v571_v0  ;;  %471 = vrsqrt.f32 %v577_v17  ;;  %vm611_vm10 = vmor %vm317_vm7, %vm318_vm8 }
 0x113   : > { %v343_v29 = vmul.f32 %v290_v25, %v526_v20  ;;  %v270_v32 = vsel %vm269_vm6, %v464_v61, %v266_v22  ;;  %v293_v34 = vmul.f32 %v468_v13, %v292_v23  ;;  %473 = vrsqrt.f32 %v586_v24  ;;  %vm299_vm13 = vmor %vm297_vm9, %vm298_vm11 }
 0x114   : > { %v341_v35 = vmul.f32 %v270_v32, %v528_v21  ;;  %v314_v36 = vmul.f32 0.5, %v313_v26  ;;  %v273_v38 = vmul.f32 %v470_v18, %v272_v27  ;;  %vm278_vm12 = vweird.f32 %v470_v18 }
 0x115   : > { %v355_v39 = vmul.f32 %v582_v19, %v343_v29  ;;  %v294_v40 = vmul.f32 0.5, %v293_v34  ;;  %v244_v42 = vpop.xlane.xlu0 %243  ;;  %vm279_vm15 = vmor %vm277_vm14, %vm278_vm12  ;;  %vm327_vm0 = vweird.f32 %v577_v17  ;;  %vm307_vm4 = vweird.f32 %v586_v24 }
 0x116   : > { %v353_v20 = vmul.f32 %v582_v19, %v341_v35  ;;  %v315_v21 = vsub.f32 1.5, %v314_v36  ;;  %v274_v43 = vmul.f32 0.5, %v273_v38  ;;  %v252_v44 = vmul.f32 %v244_v42, %v522_v14 }
 0x117   : > { %v367_v46 = vadd.f32 %v592_v28, %v355_v39  ;;  %v295_v48 = vsub.f32 1.5, %v294_v40 }
 0x118   : > { %v365_v49 = vadd.f32 %v592_v28, %v353_v20  ;;  %v316_v50 = vmul.f32 %v466_v11, %v315_v21  ;;  %v275_v51 = vsub.f32 1.5, %v274_v43  ;;  %v260_v52 = vadd.f32 1e-05, %v252_v44  ;;  %v472_v53 = vpop.eup %471 }
 0x119   : > { %375 = vst [vmem:[%s605_s25 + $0x10] sm:$0xff] %v367_v46  ;;  %v296_v54 = vmul.f32 %v468_v13, %v295_v48  ;;  %v322_v56 = vmul.f32 %v472_v53, %v577_v17  ;;  %v474_v57 = vpop.eup %473  ;;  %vm328_vm1 = vweird.f32 %v472_v53 }
 0x11a   : > { %373 = vst [vmem:[%s605_s25] sm:$0xff] %v365_v49  ;;  %v320_v14 = vsel %vm611_vm10, %v466_v11, %v316_v50  ;;  %v276_v55 = vmul.f32 %v470_v18, %v275_v51  ;;  %475 = vrsqrt.f32 %v260_v52  ;;  %v302_v63 = vmul.f32 %v474_v57, %v586_v24  ;;  %vm329_vm3 = vmor %vm327_vm0, %vm328_vm1 }
 0x11b   : > { %v346_v58 = vmul.f32 %v320_v14, %v537_v30  ;;  %v300_v59 = vsel %vm299_vm13, %v468_v13, %v296_v54  ;;  %v323_v62 = vmul.f32 %v472_v53, %v322_v56  ;;  %vm308_vm2 = vweird.f32 %v474_v57 }
 0x11c   : > { %v344_v60 = vmul.f32 %v300_v59, %v539_v31  ;;  %v280_v61 = vsel %vm279_vm15, %v470_v18, %v276_v55  ;;  %v303_v30 = vmul.f32 %v474_v57, %v302_v63  ;;  %vm309_vm5 = vmor %vm307_vm4, %vm308_vm2  ;;  %vm337_vm7 = vweird.f32 %v260_v52 }
 0x11d   : > { %v358_v1 = vmul.f32 %v582_v19, %v346_v58  ;;  %v342_v0 = vmul.f32 %v280_v61, %v542_v33  ;;  %v324_v3 = vmul.f32 0.5, %v323_v62 }
 0x11e   : > { %v356_v2 = vmul.f32 %v582_v19, %v344_v60  ;;  %v304_v7 = vmul.f32 0.5, %v303_v30 }
 0x11f   : > { %v370_v4 = vadd.f32 %v592_v28, %v358_v1  ;;  %v354_v5 = vmul.f32 %v582_v19, %v342_v0  ;;  %v325_v6 = vsub.f32 1.5, %v324_v3 }
 0x120   : > { %v368_v31 = vadd.f32 %v592_v28, %v356_v2  ;;  %v476_v8 = vpop.eup %475  ;;  %v305_v10 = vsub.f32 1.5, %v304_v7 }
 0x121   : > { %378 = vst [vmem:[%s605_s25 + $0x28] sm:$0xff] %v370_v4  ;;  %v366_v33 = vadd.f32 %v592_v28, %v354_v5  ;;  %v326_v9 = vmul.f32 %v472_v53, %v325_v6  ;;  %v332_v11 = vmul.f32 %v476_v8, %v260_v52  ;;  %vm338_vm6 = vweird.f32 %v476_v8 }
 0x122   : > { %376 = vst [vmem:[%s605_s25 + $0x18] sm:$0xff] %v368_v31  ;;  %v306_v13 = vmul.f32 %v474_v57, %v305_v10  ;;  %vm339_vm8 = vmor %vm337_vm7, %vm338_vm6 }
 0x123   : > { %374 = vst [vmem:[%s605_s25 + $0x8] sm:$0xff] %v366_v33  ;;  %v330_v12 = vsel %vm329_vm3, %v472_v53, %v326_v9  ;;  %v333_v15 = vmul.f32 %v476_v8, %v332_v11 }
 0x124   : > { %v347_v16 = vmul.f32 %v330_v12, %v553_v41  ;;  %v310_v17 = vsel %vm309_vm5, %v474_v57, %v306_v13 }
 0x125   : > { %v334_v18 = vmul.f32 0.5, %v333_v15  ;;  %v345_v23 = vmul.f32 %v310_v17, %v550_v37 }
 0x126   : > { %v359_v22 = vmul.f32 %v582_v19, %v347_v16 }
 0x127   : > { %v335_v25 = vsub.f32 1.5, %v334_v18  ;;  %v357_v27 = vmul.f32 %v582_v19, %v345_v23 }
 0x128   : > { %v371_v26 = vadd.f32 %v592_v28, %v359_v22 }
 0x129   : > { %v336_v29 = vmul.f32 %v476_v8, %v335_v25  ;;  %v369_v41 = vadd.f32 %v592_v28, %v357_v27 }
 0x12a   : > { %379 = vst [vmem:[%s605_s25 + $0x30] sm:$0xff] %v371_v26 }
 0x12b   : > { %v340_v24 = vsel %vm339_vm8, %v476_v8, %v336_v29  ;;  %377 = vst [vmem:[%s605_s25 + $0x20] sm:$0xff] %v369_v41 }
 0x12c   : > { %v348_v32 = vmul.f32 %v340_v24, %v560_v45 }
 0x12e   : > { %v360_v34 = vmul.f32 %v582_v19, %v348_v32 }
 0x130   : > { %v372_v37 = vadd.f32 %v592_v28, %v360_v34 }
 0x132   : > { %380 = vst [vmem:[%s605_s25 + $0x38] sm:$0xff] %v372_v37 }
 0x133 PF: > { %s13_s12 = sadd.s32 1, %s483_s12  }
 0x134   : > { %p10_p4 = scmp.ge.s32.totalorder %s13_s12, 5  }
 0x136   :  { %12 = sbr.rel (!%p10_p4) target bundleno = 1 (0x1), region = 62 }

// kernel: cf_tower_s2_forward.9
= control target key start
LH: loop header
LB: loop body
LE: loop exit
PB: predicated region body
PF: predicated region fallthrough
CT: control target
= control target key end

     0   :  { %s1060_s18 = smov 0   ;;  %s1062_s19 = smov 0   ;;  %s1390_s0 = inlined_call_operand.vmem [shape: f32[192,128], index: 0, kind: input, shape index: {}]   ;;  %s1391_s1 = inlined_call_operand.vmem [shape: f32[1,128], index: 1, kind: input, shape index: {}]   ;;  %s1392_s2 = inlined_call_operand.vmem [shape: f32[1,128], index: 2, kind: input, shape index: {}]   ;;  %s1393_s3 = inlined_call_operand.vmem [shape: f32[128,384], index: 3, kind: input, shape index: {}]   ;;  %s1394_s4 = inlined_call_operand.vmem [shape: f32[1,384], index: 4, kind: input, shape index: {}]   ;;  %s1395_s5 = inlined_call_operand.vmem [shape: f32[192,384], index: 5, kind: output, shape index: {}]  }
   0x1   :  { %s1064_s20 = smov 0   ;;  %s1066_s21 = smov 0  }
   0x2   :  { %s1068_s22 = smov 0   ;;  %s1070_s23 = smov 0  }
   0x3   :  { %s1072_s24 = smov 0   ;;  %s1074_s25 = smov 0  }
   0x4   :  { %s1076_s26 = smov 0  }
   0x5 LB: > { %s797_s27 = sadd.s32 4294967295, %s1027_s26   ;;  %s24_s28 = sadd.s32 1, %s1019_s24  ;;  %s1027_s26 = sphi %s1076_s26, %s15_s26   ;;  %s1023_s25 = sphi %s1074_s25, %s1408_s25   ;;  %s1019_s24 = sphi %s1072_s24, %s1407_s24   ;;  %s1015_s23 = sphi %s1070_s23, %s1406_s23   ;;  %s1011_s22 = sphi %s1068_s22, %s1405_s22   ;;  %s1007_s21 = sphi %s1066_s21, %s1404_s21   ;;  %s1003_s20 = sphi %s1064_s20, %s1403_s20   ;;  %s999_s19 = sphi %s1062_s19, %s1402_s19   ;;  %s995_s18 = sphi %s1060_s18, %s1401_s18  }
   0x6   : > { %p25_p0 = scmp.ge.s32.totalorder %s24_s28, 3  ;;  %s27_s29 = sadd.s32 1, %s1023_s25 }
   0x7   : > { %s102_s30 = sadd.s32 1, %s1007_s21  ;;  %p109_p1 = scmp.ne.s32.totalorder %s1007_s21, %s1003_s20 }
   0x8   : > { %s1410_s28 = smov (%p25_p0, %s24_s28), 0  ;;  %s1412_s29 = smov (!%p25_p0, %s27_s29), %s1023_s25 }
   0x9   : > { %s99_s6 = ssub.s32 %s1019_s24, %s1410_s28  ;;  %p110_p2 = scmp.eq.s32.totalorder %s1027_s26, 0 }
   0xa   : > { %p29_p3 = scmp.ge.s32.totalorder %s1412_s29, 3  ;;  %p100_p4 = scmp.eq.s32.totalorder %s99_s6, 0 }
   0xb   : > { %p111_p5 = por %p110_p2, %p109_p1  ;;  %s156_s7 = sadd.s32 1, %s999_s19 }
   0xc   : > { %s1414_s29 = smov (%p29_p3, %s1412_s29), 0  ;;  %p166_p6 = scmp.ne.s32.totalorder %s999_s19, %s995_s18 }
   0xd   : > { %s1121_s8 = scalar_select %p100_p4, %s1007_s21, %s102_s30  }
   0xe   : > { %s151_s9 = ssub.s32 %s1023_s25, %s1414_s29  ;;  %p167_p7 = scmp.eq.s32.totalorder %s797_s27, 8 }
   0xf   : > { %s153_s10 = sor.u32 %s151_s9, %s99_s6  ;;  %p800_p10 = scmp.ge.s32.totalorder %s1027_s26, 9 }
  0x10   : > { %p154_p8 = scmp.eq.s32.totalorder %s153_s10, 0  ;;  %p1127_p9 = por %p167_p7, %p166_p6 }
  0x11   : > { %195 = sbr.rel (%p800_p10) target bundleno = 42 (0x2a), region = 24 }
  0x12   : > { %s1132_s12 = scalar_select %p154_p8, %s999_s19, %s156_s7  }
  0x16   : > { %207 = sbr.rel (!%p111_p5) target bundleno = 42 (0x2a), region = 32  ;;  %s209_s13 = sand.u32 (%p111_p5), 1, %s1007_s21  }
  0x17   : > { %s802_s14 = sshll.u32 (%p111_p5), %s1019_s24, 3  ;;  %s801_s15 = sshll.u32 (%p111_p5), %s209_s13, 7 }
  0x18   : > { %s1140_s27 = scalar_lea.vmem (%p111_p5), %s1393_s3, %s802_s14  ;;  %s211_s30 = scalar_lea.vmem (%p111_p5), [#allocation2], %s801_s15 }
  0x19   : > { %v272_v0 = vld [vmem:[%s1140_s27] sm:$0xff] (%p111_p5)  ;;  %v274_v1 = vld [vmem:[%s1140_s27 + $0x18] sm:$0xff] (%p111_p5)  ;;  %v276_v2 = vld [vmem:[%s1140_s27 + $0x30] sm:$0xff] (%p111_p5) }
  0x1a   : > { %273 = vst [vmem:[%s211_s30] sm:$0xff] (%p111_p5), %v272_v0  ;;  %v278_v3 = vld [vmem:[%s1140_s27 + $0x48] sm:$0xff] (%p111_p5)  ;;  %v280_v4 = vld [vmem:[%s1140_s27 + $0x60] sm:$0xff] (%p111_p5)  ;;  %v282_v5 = vld [vmem:[%s1140_s27 + $0x78] sm:$0xff] (%p111_p5) }
  0x1b   : > { %275 = vst [vmem:[%s211_s30 + $0x8] sm:$0xff] %v274_v1  ;;  %v284_v6 = vld [vmem:[%s1140_s27 + $0x90] sm:$0xff]  ;;  %v286_v7 = vld [vmem:[%s1140_s27 + $0xa8] sm:$0xff]  ;;  %v288_v8 = vld [vmem:[%s1140_s27 + $0xc0] sm:$0xff] }
  0x1c   : > { %277 = vst [vmem:[%s211_s30 + $0x10] sm:$0xff] %v276_v2  ;;  %v290_v9 = vld [vmem:[%s1140_s27 + $0xd8] sm:$0xff]  ;;  %v292_v10 = vld [vmem:[%s1140_s27 + $0xf0] sm:$0xff]  ;;  %v294_v11 = vld [vmem:[%s1140_s27 + $0x108] sm:$0xff] }
  0x1d   : > { %279 = vst [vmem:[%s211_s30 + $0x18] sm:$0xff] %v278_v3  ;;  %v296_v12 = vld [vmem:[%s1140_s27 + $0x120] sm:$0xff]  ;;  %v298_v13 = vld [vmem:[%s1140_s27 + $0x138] sm:$0xff]  ;;  %v300_v14 = vld [vmem:[%s1140_s27 + $0x150] sm:$0xff] }
  0x1e   : > { %281 = vst [vmem:[%s211_s30 + $0x20] sm:$0xff] %v280_v4  ;;  %v302_v15 = vld [vmem:[%s1140_s27 + $0x168] sm:$0xff] }
  0x1f   : > { %283 = vst [vmem:[%s211_s30 + $0x28] sm:$0xff] %v282_v5 }
  0x20   : > { %285 = vst [vmem:[%s211_s30 + $0x30] sm:$0xff] %v284_v6 }
  0x21   : > { %287 = vst [vmem:[%s211_s30 + $0x38] sm:$0xff] %v286_v7 }
  0x22   : > { %289 = vst [vmem:[%s211_s30 + $0x40] sm:$0xff] %v288_v8 }
  0x23   : > { %291 = vst [vmem:[%s211_s30 + $0x48] sm:$0xff] %v290_v9 }
  0x24   : > { %293 = vst [vmem:[%s211_s30 + $0x50] sm:$0xff] %v292_v10 }
  0x25   : > { %295 = vst [vmem:[%s211_s30 + $0x58] sm:$0xff] %v294_v11 }
  0x26   : > { %297 = vst [vmem:[%s211_s30 + $0x60] sm:$0xff] %v296_v12 }
  0x27   : > { %299 = vst [vmem:[%s211_s30 + $0x68] sm:$0xff] %v298_v13 }
  0x28   : > { %301 = vst [vmem:[%s211_s30 + $0x70] sm:$0xff] %v300_v14 }
  0x29   : > { %303 = vst [vmem:[%s211_s30 + $0x78] sm:$0xff] %v302_v15 }
  0x2a PF: > { %p803_p11 = scmp.ge.s32.totalorder %s1027_s26, 1  ;;  %p314_p12 = scmp.lt.s32.totalorder %s1027_s26, 10 }
  0x2c   : > { %p315_p13 = pnand %p803_p11, %p314_p12 }
  0x2d   : > { %s806_s6 = sshll.u32 (!%p315_p13), %s1015_s23, 3  ;;  %s321_s14 = sand.u32 (!%p315_p13), 1, %s1003_s20  }
  0x2e   : > { %318 = sbr.rel (%p315_p13) target bundleno = 482 (0x1e2), region = 74  ;;  %p356_p0 = scmp.lt.s32.totalorder (!%p315_p13), %s806_s6, 23 }
  0x2f   : > { %s804_s15 = sshll.u32 (!%p315_p13), %s321_s14, 7  ;;  %p361_p1 = scmp.lt.s32.totalorder (!%p315_p13), %s1011_s22, 2 }
  0x30   : > { %s1167_s16 = scalar_lea.vmem (!%p315_p13), [#allocation2], %s804_s15 }
  0x33   : > { %s1416_s6 = smov (!%p356_p0, %s806_s6), 23  ;;  %v1029_v24 = vmov 128.0   ;;  %v579_v31 = vld [vmem:[%s1167_s16 + $0x78] sm:$0xff]  ;;  %v578_v0 = vld [vmem:[%s1167_s16 + $0x70] sm:$0xff]  ;;  %v577_v1 = vld [vmem:[%s1167_s16 + $0x68] sm:$0xff] }
  0x34   : > { %s807_s7 = sshll.u32 %s1416_s6, 3  ;;  %939 = vrcp.f32 %v1029_v24  ;;  %584 = vmatpush.msra.mxu0 %v579_v31  ;;  %815 = vmatpush.msra.mxu2 %v579_v31  ;;  %v576_v2 = vld [vmem:[%s1167_s16 + $0x60] sm:$0xff]  ;;  %v575_v3 = vld [vmem:[%s1167_s16 + $0x58] sm:$0xff]  ;;  %v574_v4 = vld [vmem:[%s1167_s16 + $0x50] sm:$0xff] }
  0x35   : > { %s359_s13 = scalar_lea.vmem %s1390_s0, %s807_s7  ;;  %814 = vmatpush.msra.mxu1 %v579_v31  ;;  %816 = vmatpush.msra.mxu3 %v579_v31  ;;  %v573_v5 = vld [vmem:[%s1167_s16 + $0x48] sm:$0xff]  ;;  %v572_v6 = vld [vmem:[%s1167_s16 + $0x40] sm:$0xff]  ;;  %v571_v7 = vld [vmem:[%s1167_s16 + $0x38] sm:$0xff] }
  0x36   : > { %v370_v16 = vld [vmem:[%s359_s13 + $0x28] sm:$0xff]  ;;  %v369_v17 = vld [vmem:[%s359_s13 + $0x20] sm:$0xff]  ;;  %v372_v19 = vld [vmem:[%s359_s13 + $0x38] sm:$0xff]  ;;  %s1212_s20 = scalar_select %p361_p1, %s1011_s22, 2  ;;  %585 = vmatpush.msra.mxu0 %v578_v0  ;;  %818 = vmatpush.msra.mxu2 %v578_v0 }
  0x37   : > { %v365_v18 = vld [vmem:[%s359_s13] sm:$0xff]  ;;  %383 = vadd.xlane.f32.xlu2 %v370_v16  ;;  %381 = vadd.xlane.f32.xlu0 %v369_v17  ;;  %v371_v20 = vld [vmem:[%s359_s13 + $0x30] sm:$0xff]  ;;  %v366_v22 = vld [vmem:[%s359_s13 + $0x8] sm:$0xff] }
  0x38   : > { %373 = vadd.xlane.f32.xlu1 %v365_v18  ;;  %v367_v21 = vld [vmem:[%s359_s13 + $0x10] sm:$0xff]  ;;  %v368_v23 = vld [vmem:[%s359_s13 + $0x18] sm:$0xff]  ;;  %s363_s30 = scalar_lea.vmem %s1394_s4, %s1212_s20  ;;  %817 = vmatpush.msra.mxu1 %v578_v0  ;;  %v569_v9 = vld [vmem:[%s1167_s16 + $0x28] sm:$0xff]  ;;  %s352_s13 = sand.u32 1, %s995_s18  }
  0x39   : > { %819 = vmatpush.msra.mxu3 %v578_v0  ;;  %586 = vmatpush.msra.mxu0 %v577_v1  ;;  %v570_v8 = vld [vmem:[%s1167_s16 + $0x30] sm:$0xff]  ;;  %v568_v10 = vld [vmem:[%s1167_s16 + $0x20] sm:$0xff]  ;;  %v567_v11 = vld [vmem:[%s1167_s16 + $0x18] sm:$0xff]  ;;  %s805_s14 = sshll.u32 %s352_s13, 6  ;;  %s862_s18 = smul.u32 (%p1127_p9), 24, %s1015_s23 }
  0x3a   : > { %v940_v25 = vpop.eup %939  ;;  %821 = vmatpush.msra.mxu2 %v577_v1  ;;  %820 = vmatpush.msra.mxu1 %v577_v1  ;;  %v566_v12 = vld [vmem:[%s1167_s16 + $0x10] sm:$0xff]  ;;  %v565_v13 = vld [vmem:[%s1167_s16 + $0x8] sm:$0xff]  ;;  %v564_v14 = vld [vmem:[%s1167_s16] sm:$0xff]  ;;  %s1338_s17 = scalar_lea.vmem [#allocation3], %s805_s14 }
  0x3b   : > { %v390_v26 = vmul.f32 128.0, %v940_v25  ;;  %vm394_vm0 = vweird.f32 %v940_v25  ;;  %822 = vmatpush.msra.mxu3 %v577_v1  ;;  %587 = vmatpush.msra.mxu0 %v576_v2  ;;  %v1267_v0 = vld [vmem:[%s1391_s1] ss:$0 sm:$0xff]  ;;  %s642_s20 = sadd.s32 (%p1127_p9), %s1011_s22, %s862_s18 }
  0x3c   : > { %824 = vmatpush.msra.mxu2 %v576_v2  ;;  %823 = vmatpush.msra.mxu1 %v576_v2  ;;  %s811_s27 = sshll.u32 (%p1127_p9), %s642_s20, 3 }
  0x3d   : > { %v391_v27 = vsub.f32 1.0, %v390_v26  ;;  %825 = vmatpush.msra.mxu3 %v576_v2  ;;  %588 = vmatpush.msra.mxu0 %v575_v3  ;;  %s644_s11 = scalar_lea.vmem (%p1127_p9), %s1395_s5, %s811_s27 }
  0x3e   : > { %827 = vmatpush.msra.mxu2 %v575_v3  ;;  %826 = vmatpush.msra.mxu1 %v575_v3 }
  0x3f   : > { %387 = vadd.xlane.f32.xlu2 %v372_v19  ;;  %385 = vadd.xlane.f32.xlu0 %v371_v20  ;;  %v392_v28 = vmul.f32 %v940_v25, %v391_v27 }
  0x40   : > { %377 = vadd.xlane.f32.xlu1 %v367_v21  ;;  %828 = vmatpush.msra.mxu3 %v575_v3 }
  0x41   : > { %v393_v29 = vadd.f32 %v940_v25, %v392_v28  ;;  %589 = vmatpush.msra.mxu0 %v574_v4  ;;  %830 = vmatpush.msra.mxu2 %v574_v4 }
  0x42   : > { %829 = vmatpush.msra.mxu1 %v574_v4  ;;  %831 = vmatpush.msra.mxu3 %v574_v4 }
  0x43   : > { %v1165_v30 = vsel %vm394_vm0, %v940_v25, %v393_v29  ;;  %590 = vmatpush.msra.mxu0 %v573_v5  ;;  %833 = vmatpush.msra.mxu2 %v573_v5 }
  0x44   : > { %832 = vmatpush.msra.mxu1 %v573_v5  ;;  %834 = vmatpush.msra.mxu3 %v573_v5 }
  0x45   : > { %591 = vmatpush.msra.mxu0 %v572_v6  ;;  %836 = vmatpush.msra.mxu2 %v572_v6 }
  0x46   : > { %835 = vmatpush.msra.mxu1 %v572_v6  ;;  %837 = vmatpush.msra.mxu3 %v572_v6 }
  0x47   : > { %375 = vadd.xlane.f32.xlu0 %v366_v22  ;;  %592 = vmatpush.msra.mxu0 %v571_v7 }
  0x48   : > { %379 = vadd.xlane.f32.xlu1 %v368_v23  ;;  %839 = vmatpush.msra.mxu2 %v571_v7 }
  0x49   : > { %838 = vmatpush.msra.mxu1 %v571_v7  ;;  %840 = vmatpush.msra.mxu3 %v571_v7 }
  0x4a   : > { %593 = vmatpush.msra.mxu0 %v570_v8  ;;  %842 = vmatpush.msra.mxu2 %v570_v8 }
  0x4b   : > { %841 = vmatpush.msra.mxu1 %v570_v8  ;;  %843 = vmatpush.msra.mxu3 %v570_v8 }
  0x4c   : > { %594 = vmatpush.msra.mxu0 %v569_v9  ;;  %845 = vmatpush.msra.mxu2 %v569_v9 }
  0x4d   : > { %844 = vmatpush.msra.mxu1 %v569_v9  ;;  %846 = vmatpush.msra.mxu3 %v569_v9 }
  0x4e   : > { %595 = vmatpush.msra.mxu0 %v568_v10  ;;  %848 = vmatpush.msra.mxu2 %v568_v10 }
  0x4f   : > { %847 = vmatpush.msra.mxu1 %v568_v10  ;;  %849 = vmatpush.msra.mxu3 %v568_v10  ;;  %v1278_v10 = vld [vmem:[%s1392_s2] ss:$0 sm:$0xff] }
  0x50   : > { %596 = vmatpush.msra.mxu0 %v567_v11  ;;  %851 = vmatpush.msra.mxu2 %v567_v11 }
  0x51   : > { %850 = vmatpush.msra.mxu1 %v567_v11  ;;  %852 = vmatpush.msra.mxu3 %v567_v11 }
  0x52   : > { %597 = vmatpush.msra.mxu0 %v566_v12  ;;  %854 = vmatpush.msra.mxu2 %v566_v12 }
  0x53   : > { %853 = vmatpush.msra.mxu1 %v566_v12  ;;  %855 = vmatpush.msra.mxu3 %v566_v12 }
  0x54   : > { %598 = vmatpush.msra.mxu0 %v565_v13  ;;  %857 = vmatpush.msra.mxu2 %v565_v13 }
  0x55   : > { %856 = vmatpush.msra.mxu1 %v565_v13  ;;  %858 = vmatpush.msra.mxu3 %v565_v13 }
  0x56   : > { %599 = vmatpush.msra.mxu0 %v564_v14  ;;  %860 = vmatpush.msra.mxu2 %v564_v14 }
  0x57   : > { %859 = vmatpush.msra.mxu1 %v564_v14  ;;  %861 = vmatpush.msra.mxu3 %v564_v14 }
  0xaa   : > { %v384_v32 = vpop.xlane.xlu2 %383  ;;  %v382_v33 = vpop.xlane.xlu0 %381 }
  0xab   : > { %v400_v34 = vmul.f32 %v1165_v30, %v382_v33  ;;  %v374_v35 = vpop.xlane.xlu1 %373  ;;  %v401_v50 = vmul.f32 %v1165_v30, %v384_v32 }
  0xac   : > { %v396_v36 = vmul.f32 %v1165_v30, %v374_v35 }
  0xad   : > { %v1172_v37 = vsub.f32 %v369_v17, %v400_v34  ;;  %v1196_v55 = vsub.f32 %v370_v16, %v401_v50 }
  0xae   : > { %v1174_v38 = vsub.f32 %v365_v18, %v396_v36 }
  0xaf   : > { %v416_v39 = vmul.f32 %v1172_v37, %v1172_v37  ;;  %v417_v60 = vmul.f32 %v1196_v55, %v1196_v55 }
  0xb0   : > { %v412_v40 = vmul.f32 %v1174_v38, %v1174_v38 }
  0xb1   : > { %428 = vadd.xlane.f32.xlu2 %v416_v39 }
  0xb2   : > { %420 = vadd.xlane.f32.xlu1 %v412_v40  ;;  %v388_v41 = vpop.xlane.xlu2 %387  ;;  %v386_v42 = vpop.xlane.xlu0 %385 }
  0xb3   : > { %v403_v43 = vmul.f32 %v1165_v30, %v388_v41  ;;  %v402_v44 = vmul.f32 %v1165_v30, %v386_v42  ;;  %v378_v45 = vpop.xlane.xlu1 %377 }
  0xb4   : > { %v398_v46 = vmul.f32 %v1165_v30, %v378_v45 }
  0xb5   : > { %v1183_v47 = vsub.f32 %v372_v19, %v403_v43  ;;  %v1185_v48 = vsub.f32 %v371_v20, %v402_v44 }
  0xb6   : > { %v1187_v49 = vsub.f32 %v367_v21, %v398_v46 }
  0xb7   : > { %v418_v51 = vmul.f32 %v1185_v48, %v1185_v48  ;;  %v419_v52 = vmul.f32 %v1183_v47, %v1183_v47 }
  0xb8   : > { %v414_v53 = vmul.f32 %v1187_v49, %v1187_v49 }
  0xb9   : > { %432 = vadd.xlane.f32.xlu0 %v418_v51 }
  0xba   : > { %434 = vadd.xlane.f32.xlu1 %v419_v52  ;;  %424 = vadd.xlane.f32.xlu2 %v414_v53  ;;  %v376_v54 = vpop.xlane.xlu0 %375 }
  0xbb   : > { %v397_v56 = vmul.f32 %v1165_v30, %v376_v54  ;;  %v380_v57 = vpop.xlane.xlu1 %379 }
  0xbc   : > { %v399_v59 = vmul.f32 %v1165_v30, %v380_v57 }
  0xbd   : > { %v1199_v58 = vsub.f32 %v366_v22, %v397_v56 }
  0xbe   : > { %v1206_v62 = vsub.f32 %v368_v23, %v399_v59 }
  0xbf   : > { %v413_v61 = vmul.f32 %v1199_v58, %v1199_v58 }
  0xc0   : > { %v415_v63 = vmul.f32 %v1206_v62, %v1206_v62 }
  0xc1   : > { %430 = vadd.xlane.f32.xlu0 %v417_v60 }
  0xc2   : > { %422 = vadd.xlane.f32.xlu2 %v413_v61 }
  0xc9   : > { %426 = vadd.xlane.f32.xlu0 %v415_v63 }
 0x124   : > { %v429_v15 = vpop.xlane.xlu2 %428 }
 0x125   : > { %v440_v16 = vmul.f32 %v429_v15, %v1165_v30  ;;  %v421_v17 = vpop.xlane.xlu1 %420 }
 0x126   : > { %v436_v18 = vmul.f32 %v421_v17, %v1165_v30 }
 0x127   : > { %v448_v19 = vadd.f32 1e-05, %v440_v16 }
 0x128   : > { %v444_v20 = vadd.f32 1e-05, %v436_v18 }
 0x129   : > { %941 = vrsqrt.f32 %v448_v19  ;;  %vm498_vm4 = vweird.f32 %v448_v19 }
 0x12a   : > { %943 = vrsqrt.f32 %v444_v20  ;;  %vm458_vm1 = vweird.f32 %v444_v20 }
 0x12c   : > { %v433_v21 = vpop.xlane.xlu0 %432 }
 0x12d   : > { %v442_v22 = vmul.f32 %v433_v21, %v1165_v30  ;;  %v425_v23 = vpop.xlane.xlu2 %424  ;;  %v435_v24 = vpop.xlane.xlu1 %434 }
 0x12e   : > { %v438_v25 = vmul.f32 %v425_v23, %v1165_v30  ;;  %v443_v26 = vmul.f32 %v435_v24, %v1165_v30 }
 0x12f   : > { %v942_v27 = vpop.eup %941  ;;  %v1238_v28 = vadd.f32 1e-05, %v442_v22 }
 0x130   : > { %v944_v29 = vpop.eup %943  ;;  %v493_v31 = vmul.f32 %v942_v27, %v448_v19  ;;  %v1240_v32 = vadd.f32 1e-05, %v438_v25  ;;  %v1242_v33 = vadd.f32 1e-05, %v443_v26  ;;  %vm499_vm3 = vweird.f32 %v942_v27 }
 0x131   : > { %v453_v34 = vmul.f32 %v944_v29, %v444_v20  ;;  %945 = vrsqrt.f32 %v1238_v28  ;;  %vm459_vm2 = vweird.f32 %v944_v29  ;;  %vm500_vm6 = vmor %vm498_vm4, %vm499_vm3  ;;  %vm518_vm7 = vweird.f32 %v1238_v28 }
 0x132   : > { %v494_v35 = vmul.f32 %v942_v27, %v493_v31  ;;  %947 = vrsqrt.f32 %v1240_v32  ;;  %vm460_vm5 = vmor %vm458_vm1, %vm459_vm2  ;;  %vm478_vm8 = vweird.f32 %v1240_v32  ;;  %vm528_vm11 = vweird.f32 %v1242_v33 }
 0x133   : > { %v454_v36 = vmul.f32 %v944_v29, %v453_v34  ;;  %949 = vrsqrt.f32 %v1242_v33 }
 0x134   : > { %v495_v39 = vmul.f32 0.5, %v494_v35  ;;  %v431_v40 = vpop.xlane.xlu0 %430 }
 0x135   : > { %v455_v41 = vmul.f32 0.5, %v454_v36  ;;  %v441_v42 = vmul.f32 %v431_v40, %v1165_v30  ;;  %v423_v43 = vpop.xlane.xlu2 %422 }
 0x136   : > { %v496_v44 = vsub.f32 1.5, %v495_v39  ;;  %v437_v45 = vmul.f32 %v423_v43, %v1165_v30 }
 0x137   : > { %v1249_v46 = vpop.eup %945  ;;  %v456_v50 = vsub.f32 1.5, %v455_v41  ;;  %v1251_v51 = vadd.f32 1e-05, %v441_v42 }
 0x138   : > { %v948_v52 = vpop.eup %947  ;;  %v497_v53 = vmul.f32 %v942_v27, %v496_v44  ;;  %v513_v54 = vmul.f32 %v1249_v46, %v1238_v28  ;;  %v1255_v56 = vadd.f32 1e-05, %v437_v45  ;;  %vm519_vm9 = vweird.f32 %v1249_v46 }
 0x139   : > { %v1257_v57 = vpop.eup %949  ;;  %v457_v59 = vmul.f32 %v944_v29, %v456_v50  ;;  %v473_v60 = vmul.f32 %v948_v52, %v1240_v32  ;;  %951 = vrsqrt.f32 %v1251_v51  ;;  %vm479_vm10 = vweird.f32 %v948_v52  ;;  %vm1289_vm12 = vmor %vm518_vm7, %vm519_vm9 }
 0x13a   : > { %v514_v61 = vmul.f32 %v1249_v46, %v513_v54  ;;  %v523_v63 = vmul.f32 %v1257_v57, %v1242_v33  ;;  %953 = vrsqrt.f32 %v1255_v56  ;;  %v501_v7 = vsel %vm500_vm6, %v942_v27, %v497_v53  ;;  %vm480_vm14 = vmor %vm478_vm8, %vm479_vm10 }
 0x13b   : > { %v474_v1 = vmul.f32 %v948_v52, %v473_v60  ;;  %v461_v2 = vsel %vm460_vm5, %v944_v29, %v457_v59  ;;  %v536_v11 = vmul.f32 %v501_v7, %v1172_v37  ;;  %vm529_vm13 = vweird.f32 %v1257_v57 }
 0x13c   : > { %v515_v3 = vmul.f32 0.5, %v514_v61  ;;  %v524_v4 = vmul.f32 %v1257_v57, %v523_v63  ;;  %v427_v5 = vpop.xlane.xlu0 %426  ;;  %v532_v6 = vmul.f32 %v461_v2, %v1174_v38  ;;  %vm1305_vm15 = vmor %vm528_vm11, %vm529_vm13  ;;  %vm508_vm1 = vweird.f32 %v1251_v51 }
 0x13d   : > { %v475_v8 = vmul.f32 0.5, %v474_v1  ;;  %v439_v9 = vmul.f32 %v427_v5, %v1165_v30  ;;  %v548_v17 = vmul.f32 %v1267_v0, %v536_v11  ;;  %vm468_vm2 = vweird.f32 %v1255_v56 }
 0x13e   : > { %v516_v12 = vsub.f32 1.5, %v515_v3  ;;  %v525_v13 = vmul.f32 0.5, %v524_v4  ;;  %v544_v14 = vmul.f32 %v1267_v0, %v532_v6  ;;  %v938_v6 = vld [vmem:[%s363_s30] ss:$0 sm:$0xff] }
 0x13f   : > { %v952_v38 = vpop.eup %951  ;;  %v476_v15 = vsub.f32 1.5, %v475_v8  ;;  %v447_v16 = vadd.f32 1e-05, %v439_v9  ;;  %v560_v26 = vadd.f32 %v1278_v10, %v548_v17 }
 0x140   : > { %v517_v30 = vmul.f32 %v1249_v46, %v516_v12  ;;  %v526_v18 = vsub.f32 1.5, %v525_v13  ;;  %v503_v19 = vmul.f32 %v952_v38, %v1251_v51  ;;  %v954_v37 = vpop.eup %953  ;;  %v556_v22 = vadd.f32 %v1278_v10, %v544_v14 }
 0x141   : > { %v477_v21 = vmul.f32 %v948_v52, %v476_v15  ;;  %955 = vrsqrt.f32 %v447_v16  ;;  %v463_v25 = vmul.f32 %v954_v37, %v1255_v56  ;;  %vm509_vm0 = vweird.f32 %v952_v38  ;;  %612 = vmatmul.f32.vlgmr.msra.gmra.mxu2 %v560_v26 }
 0x142   : > { %v527_v23 = vmul.f32 %v1257_v57, %v526_v18  ;;  %v504_v24 = vmul.f32 %v952_v38, %v503_v19  ;;  %600 = vmatmul.f32.vlgmr.msra.gmra.mxu0 %v556_v22  ;;  %v521_v28 = vsel %vm1289_vm12, %v1249_v46, %v517_v30  ;;  %vm469_vm3 = vweird.f32 %v954_v37  ;;  %vm510_vm4 = vmor %vm508_vm1, %vm509_vm0 }
 0x143   : > { %v481_v27 = vsel %vm480_vm14, %v948_v52, %v477_v21  ;;  %v464_v32 = vmul.f32 %v954_v37, %v463_v25  ;;  %v538_v35 = vmul.f32 %v521_v28, %v1185_v48  ;;  %vm470_vm5 = vmor %vm468_vm2, %vm469_vm3  ;;  %vm488_vm7 = vweird.f32 %v447_v16 }
 0x144   : > { %v505_v31 = vmul.f32 0.5, %v504_v24  ;;  %v534_v34 = vmul.f32 %v481_v27, %v1187_v49  ;;  %v531_v36 = vsel %vm1305_vm15, %v1257_v57, %v527_v23 }
 0x145   : > { %v465_v40 = vmul.f32 0.5, %v464_v32  ;;  %v550_v41 = vmul.f32 %v1267_v0, %v538_v35  ;;  %v539_v46 = vmul.f32 %v531_v36, %v1183_v47 }
 0x146   : > { %v506_v39 = vsub.f32 1.5, %v505_v31  ;;  %v546_v33 = vmul.f32 %v1267_v0, %v534_v34 }
 0x147   : > { %v956_v42 = vpop.eup %955  ;;  %v466_v43 = vsub.f32 1.5, %v465_v40  ;;  %v562_v45 = vadd.f32 %v1278_v10, %v550_v41  ;;  %v551_v60 = vmul.f32 %v1267_v0, %v539_v46 }
 0x148   : > { %v507_v49 = vmul.f32 %v952_v38, %v506_v39  ;;  %v483_v48 = vmul.f32 %v956_v42, %v447_v16  ;;  %v558_v44 = vadd.f32 %v1278_v10, %v546_v33  ;;  %vm489_vm6 = vweird.f32 %v956_v42 }
 0x149   : > { %v467_v50 = vmul.f32 %v954_v37, %v466_v43  ;;  %618 = vmatmul.f32.vlgmr.msra.gmra.mxu3 %v562_v45  ;;  %vm490_vm8 = vmor %vm488_vm7, %vm489_vm6 }
 0x14a   : > { %v484_v52 = vmul.f32 %v956_v42, %v483_v48  ;;  %v511_v53 = vsel %vm510_vm4, %v952_v38, %v507_v49  ;;  %606 = vmatmul.f32.vlgmr.msra.gmra.mxu1 %v558_v44 }
 0x14b   : > { %v537_v51 = vmul.f32 %v511_v53, %v1196_v55  ;;  %v471_v56 = vsel %vm470_vm5, %v954_v37, %v467_v50 }
 0x14c   : > { %v485_v54 = vmul.f32 0.5, %v484_v52  ;;  %v533_v57 = vmul.f32 %v471_v56, %v1199_v58  ;;  %v563_v58 = vadd.f32 %v1278_v10, %v551_v60 }
 0x14d   : > { %v549_v59 = vmul.f32 %v1267_v0, %v537_v51 }
 0x14e   : > { %v486_v61 = vsub.f32 1.5, %v485_v54  ;;  %v545_v47 = vmul.f32 %v1267_v0, %v533_v57 }
 0x14f   : > { %v561_v63 = vadd.f32 %v1278_v10, %v549_v59 }
 0x150   : > { %v487_v1 = vmul.f32 %v956_v42, %v486_v61  ;;  %v557_v55 = vadd.f32 %v1278_v10, %v545_v47 }
 0x151   : > { %615 = vmatmul.f32.gmra.mxu2 %v561_v63  ;;  %621 = vmatmul.f32.gmra.mxu3 %v563_v58 }
 0x152   : > { %v491_v2 = vsel %vm490_vm8, %v956_v42, %v487_v1  ;;  %603 = vmatmul.f32.gmra.mxu0 %v557_v55 }
 0x153   : > { %v535_v3 = vmul.f32 %v491_v2, %v1206_v62 }
 0x155   : > { %v547_v4 = vmul.f32 %v1267_v0, %v535_v3 }
 0x157   : > { %v559_v5 = vadd.f32 %v1278_v10, %v547_v4 }
 0x159   : > { %609 = vmatmul.f32.gmra.mxu1 %v559_v5 }
 0x1bf   : > { %v601_v7 = vpop.f32.mrf.mxu0 }
 0x1c0   : > { %v602_v8 = vadd.f32 %v938_v6, %v601_v7 }
 0x1c2   : > { %625 = vst [vmem:[%s1338_s17] sm:$0xff] %v602_v8 }
 0x1c4   : > { %v613_v62 = vpop.f32.mrf.mxu2 }
 0x1c5   : > { %v614_v9 = vadd.f32 %v938_v6, %v613_v62 }
 0x1c7   : > { %v607_v0 = vpop.f32.mrf.mxu1  ;;  %629 = vst [vmem:[%s1338_s17 + $0x20] sm:$0xff] %v614_v9 }
 0x1c8   : > { %v608_v10 = vadd.f32 %v938_v6, %v607_v0 }
 0x1c9   : > { %v687_v19 = vld [vmem:[%s1338_s17] sm:$0xff] (%p1127_p9) }
 0x1ca   : > { %627 = vst [vmem:[%s1338_s17 + $0x10] sm:$0xff] %v608_v10 }
 0x1cb   : > { %688 = vst [vmem:[%s644_s11] sm:$0xff] (%p1127_p9), %v687_v19 }
 0x1cc   : > { %v619_v11 = vpop.f32.mrf.mxu3 }
 0x1cd   : > { %v620_v12 = vadd.f32 %v938_v6, %v619_v11 }
 0x1ce   : > { %v695_v22 = vld [vmem:[%s1338_s17 + $0x20] sm:$0xff] (%p1127_p9) }
 0x1cf   : > { %v604_v13 = vpop.f32.mrf.mxu0  ;;  %631 = vst [vmem:[%s1338_s17 + $0x30] sm:$0xff] %v620_v12 }
 0x1d0   : > { %v605_v14 = vadd.f32 %v938_v6, %v604_v13  ;;  %696 = vst [vmem:[%s644_s11 + $0x60] sm:$0xff] (%p1127_p9), %v695_v22 }
 0x1d1   : > { %v691_v20 = vld [vmem:[%s1338_s17 + $0x10] sm:$0xff] (%p1127_p9) }
 0x1d2   : > { %626 = vst [vmem:[%s1338_s17 + $0x8] sm:$0xff] %v605_v14 }
 0x1d3   : > { %692 = vst [vmem:[%s644_s11 + $0x30] sm:$0xff] (%p1127_p9), %v691_v20 }
 0x1d4   : > { %v616_v38 = vpop.f32.mrf.mxu2  ;;  %v622_v16 = vpop.f32.mrf.mxu3 }
 0x1d5   : > { %v617_v15 = vadd.f32 %v938_v6, %v616_v38  ;;  %v623_v30 = vadd.f32 %v938_v6, %v622_v16  ;;  %639 = sbr.rel (!%p1127_p9) target bundleno = 482 (0x1e2), region = 82 }
 0x1d6   : > { %v610_v17 = vpop.f32.mrf.mxu1  ;;  %v699_v24 = vld [vmem:[%s1338_s17 + $0x30] sm:$0xff] (%p1127_p9) }
 0x1d7   : > { %630 = vst [vmem:[%s1338_s17 + $0x28] sm:$0xff] %v617_v15  ;;  %v611_v18 = vadd.f32 %v938_v6, %v610_v17 }
 0x1d8   : > { %632 = vst [vmem:[%s1338_s17 + $0x38] sm:$0xff] %v623_v30 }
 0x1d9   : > { %628 = vst [vmem:[%s1338_s17 + $0x18] sm:$0xff] %v611_v18  ;;  %v689_v37 = vld [vmem:[%s1338_s17 + $0x8] sm:$0xff] (%p1127_p9) }
 0x1da   : > { %690 = vst [vmem:[%s644_s11 + $0x18] sm:$0xff] %v689_v37 }
 0x1db   : > { %700 = vst [vmem:[%s644_s11 + $0x90] sm:$0xff] %v699_v24 }
 0x1de   : > { %v697_v23 = vld [vmem:[%s1338_s17 + $0x28] sm:$0xff] }
 0x1df   : > { %v701_v25 = vld [vmem:[%s1338_s17 + $0x38] sm:$0xff]  ;;  %698 = vst [vmem:[%s644_s11 + $0x78] sm:$0xff] %v697_v23 }
 0x1e0   : > { %v693_v21 = vld [vmem:[%s1338_s17 + $0x18] sm:$0xff]  ;;  %702 = vst [vmem:[%s644_s11 + $0xa8] sm:$0xff] %v701_v25 }
 0x1e1   : > { %694 = vst [vmem:[%s644_s11 + $0x48] sm:$0xff] %v693_v21 }
 0x1e2 PF: > { %s15_s26 = sadd.s32 1, %s1027_s26   ;;  %s1401_s18 = smov %s999_s19 }
 0x1e3   : > { %p12_p2 = scmp.ge.s32.totalorder %s15_s26, 11   ;;  %s1402_s19 = smov %s1132_s12 }
 0x1e4   : > { %s1403_s20 = smov %s1007_s21  ;;  %s1404_s21 = smov %s1121_s8 }
 0x1e5   : > { %s1405_s22 = smov %s1019_s24  ;;  %s1406_s23 = smov %s1023_s25 }
 0x1e6   : > { %s1407_s24 = smov %s1410_s28  ;;  %s1408_s25 = smov %s1414_s29 }
 0x1e7   :  { %14 = sbr.rel (!%p12_p2) target bundleno = 5 (0x5), region = 157 }

// kernel: cf_tower_s2_forward.10
= control target key start
LH: loop header
LB: loop body
LE: loop exit
PB: predicated region body
PF: predicated region fallthrough
CT: control target
= control target key end

     0   :  { %s1584_s12 = smov 0   ;;  %s1977_s0 = inlined_call_operand.vmem [shape: f32[40,17,32], index: 0, kind: input, shape index: {}]   ;;  %s1978_s1 = inlined_call_operand.vmem [shape: f32[40,17,32], index: 1, kind: input, shape index: {}]   ;;  %s1979_s2 = inlined_call_operand.vmem [shape: f32[40,17,32], index: 2, kind: input, shape index: {}]   ;;  %s1980_s3 = inlined_call_operand.vmem [shape: f32[40,17,32], index: 3, kind: output, shape index: {}]  }
   0x1 LB: > { %s1356_s13 = sadd.s32 4294967295, %s1562_s12   ;;  %p1360_p0 = scmp.ge.s32.totalorder %s1562_s12, 1  ;;  %s1562_s12 = sphi %s1584_s12, %s13_s12  }
   0x2   : > { %p163_p1 = scmp.lt.s32.totalorder %s1562_s12, 6 }
   0x4   : > { %p164_p2 = pnand %p1360_p0, %p163_p1 }
   0x5   : > { %s1361_s14 = sshll.u32 (!%p164_p2), %s1356_s13, 3 }
   0x6   : > { %167 = sbr.rel (%p164_p2) target bundleno = 496 (0x1f0), region = 32  ;;  %p202_p3 = scmp.lt.s32.totalorder (!%p164_p2), %s1361_s14, 39 }
   0xb   : > { %s1982_s14 = smov (!%p202_p3, %s1361_s14), 39  ;;  %vm301_vm0 = vcmask 261120   ;;  %vm678_vm1 = vcmask 138240   ;;  %vm685_vm2 = vcmask 131072   ;;  %vm905_vm3 = vcmask 1040384  }
   0xc   : > { %s1592_s15 = smul.u32 24, %s1982_s14  ;;  %vm1251_vm4 = vcmask 253952  }
   0xe   : > { %s1598_s18 = scalar_lea.vmem %s1978_s1, %s1592_s15  ;;  %s1621_s21 = scalar_lea.vmem %s1977_s0, %s1592_s15 }
   0xf   : > { %v255_v0 = vld [vmem:[%s1598_s18 + $0x10] sm:$0x1]  ;;  %v261_v1 = vld [vmem:[%s1598_s18 + $0x40] sm:$0x1]  ;;  %v264_v2 = vld [vmem:[%s1598_s18 + $0x58] sm:$0x1]  ;;  %s1802_s24 = scalar_lea.vmem %s1979_s2, %s1592_s15  ;;  %s1924_s27 = scalar_lea.vmem %s1980_s3, %s1592_s15 }
  0x10   : > { %1369 = vmatpush.xpose.msk.msra.mxu0 %vm301_vm0, %v255_v0  ;;  %1381 = vmatpush.xpose.msk.msra.mxu2 %vm301_vm0, %v261_v1  ;;  %v254_v3 = vld [vmem:[%s1598_s18 + $0x8] sm:$0xff]  ;;  %v260_v4 = vld [vmem:[%s1598_s18 + $0x38] sm:$0xff]  ;;  %v263_v6 = vld [vmem:[%s1598_s18 + $0x50] sm:$0xff] }
  0x11   : > { %1387 = vmatpush.xpose.msk.msra.mxu3 %vm301_vm0, %v264_v2  ;;  %v258_v5 = vld [vmem:[%s1598_s18 + $0x28] sm:$0x1]  ;;  %v257_v7 = vld [vmem:[%s1598_s18 + $0x20] sm:$0xff]  ;;  %v259_v9 = vld [vmem:[%s1598_s18 + $0x30] sm:$0xff] }
  0x12   : > { %1375 = vmatpush.xpose.msk.msra.mxu1 %vm301_vm0, %v258_v5  ;;  %v253_v8 = vld [vmem:[%s1598_s18] sm:$0xff]  ;;  %v262_v10 = vld [vmem:[%s1598_s18 + $0x48] sm:$0xff]  ;;  %v256_v12 = vld [vmem:[%s1598_s18 + $0x18] sm:$0xff] }
  0x13   : > { %v273_v11 = vld [vmem:[%s1598_s18 + $0xa0] sm:$0x1]  ;;  %v276_v13 = vld [vmem:[%s1598_s18 + $0xb8] sm:$0x1]  ;;  %v235_v15 = vld [vmem:[%s1621_s21 + $0x30] sm:$0xff] }
  0x14   : > { %1370 = vmatpush.xpose.msk.msra.mxu0 %vm301_vm0, %v254_v3  ;;  %1382 = vmatpush.xpose.msk.msra.mxu2 %vm301_vm0, %v260_v4  ;;  %v229_v14 = vld [vmem:[%s1621_s21] sm:$0xff]  ;;  %v238_v16 = vld [vmem:[%s1621_s21 + $0x48] sm:$0xff]  ;;  %v267_v17 = vld [vmem:[%s1598_s18 + $0x70] sm:$0x1] }
  0x15   : > { %1388 = vmatpush.xpose.msk.msra.mxu3 %vm301_vm0, %v263_v6  ;;  %v232_v18 = vld [vmem:[%s1621_s21 + $0x18] sm:$0xff]  ;;  %v275_v20 = vld [vmem:[%s1598_s18 + $0xb0] sm:$0xff]  ;;  %v270_v21 = vld [vmem:[%s1598_s18 + $0x88] sm:$0x1] }
  0x16   : > { %1376 = vmatpush.xpose.msk.msra.mxu1 %vm301_vm0, %v257_v7  ;;  %v272_v19 = vld [vmem:[%s1598_s18 + $0x98] sm:$0xff]  ;;  %v266_v22 = vld [vmem:[%s1598_s18 + $0x68] sm:$0xff]  ;;  %v271_v23 = vld [vmem:[%s1598_s18 + $0x90] sm:$0xff] }
  0x17   : > { %v274_v24 = vld [vmem:[%s1598_s18 + $0xa8] sm:$0xff]  ;;  %v269_v25 = vld [vmem:[%s1598_s18 + $0x80] sm:$0xff]  ;;  %v236_v26 = vld [vmem:[%s1621_s21 + $0x38] sm:$0xff] }
  0x18   : > { %1371 = vmatpush.xpose.msk.msra.mxu0 %vm301_vm0, %v253_v8  ;;  %1383 = vmatpush.xpose.msk.msra.mxu2 %vm301_vm0, %v259_v9  ;;  %v230_v27 = vld [vmem:[%s1621_s21 + $0x8] sm:$0xff]  ;;  %v239_v28 = vld [vmem:[%s1621_s21 + $0x50] sm:$0xff]  ;;  %v265_v29 = vld [vmem:[%s1598_s18 + $0x60] sm:$0xff] }
  0x19   : > { %1389 = vmatpush.xpose.msk.msra.mxu3 %vm301_vm0, %v262_v10  ;;  %v233_v30 = vld [vmem:[%s1621_s21 + $0x20] sm:$0xff]  ;;  %v268_v31 = vld [vmem:[%s1598_s18 + $0x78] sm:$0xff]  ;;  %v231_v33 = vld [vmem:[%s1621_s21 + $0x10] sm:$0x1] }
  0x1a   : > { %1377 = vmatpush.xpose.msk.msra.mxu1 %vm301_vm0, %v256_v12  ;;  %v237_v32 = vld [vmem:[%s1621_s21 + $0x40] sm:$0x1]  ;;  %v240_v34 = vld [vmem:[%s1621_s21 + $0x58] sm:$0x1]  ;;  %v234_v35 = vld [vmem:[%s1621_s21 + $0x28] sm:$0x1] }
  0x1b   : > { %1372 = vmatmul.msk.f32.vlgmr.msra.gmra.mxu0 %vm301_vm0, %v229_v14  ;;  %1384 = vmatmul.msk.f32.vlgmr.msra.gmra.mxu2 %vm301_vm0, %v235_v15  ;;  %v247_v36 = vld [vmem:[%s1621_s21 + $0x90] sm:$0xff]  ;;  %v241_v37 = vld [vmem:[%s1621_s21 + $0x60] sm:$0xff]  ;;  %v250_v38 = vld [vmem:[%s1621_s21 + $0xa8] sm:$0xff] }
  0x1c   : > { %1405 = vmatpush.xpose.msk.msrb.mxu2 %vm301_vm0, %v273_v11  ;;  %1390 = vmatmul.msk.f32.vlgmr.msra.gmra.mxu3 %vm301_vm0, %v238_v16  ;;  %v244_v39 = vld [vmem:[%s1621_s21 + $0x78] sm:$0xff]  ;;  %v242_v41 = vld [vmem:[%s1621_s21 + $0x68] sm:$0xff]  ;;  %v251_v42 = vld [vmem:[%s1621_s21 + $0xb0] sm:$0xff] }
  0x1d   : > { %1411 = vmatpush.xpose.msk.msrb.mxu3 %vm301_vm0, %v276_v13  ;;  %1393 = vmatpush.xpose.msk.msrb.mxu0 %vm301_vm0, %v267_v17  ;;  %v248_v40 = vld [vmem:[%s1621_s21 + $0x98] sm:$0xff]  ;;  %v245_v43 = vld [vmem:[%s1621_s21 + $0x80] sm:$0xff]  ;;  %v243_v44 = vld [vmem:[%s1621_s21 + $0x70] sm:$0x1] }
  0x1e   : > { %1378 = vmatmul.msk.f32.vlgmr.msra.gmra.mxu1 %vm301_vm0, %v232_v18  ;;  %v249_v45 = vld [vmem:[%s1621_s21 + $0xa0] sm:$0x1]  ;;  %v252_v46 = vld [vmem:[%s1621_s21 + $0xb8] sm:$0x1]  ;;  %v246_v47 = vld [vmem:[%s1621_s21 + $0x88] sm:$0x1] }
  0x1f   : > { %1399 = vmatpush.xpose.msk.msrb.mxu1 %vm301_vm0, %v270_v21 }
  0x20   : > { %1406 = vmatpush.xpose.msk.msrb.mxu2 %vm301_vm0, %v272_v19 }
  0x21   : > { %1412 = vmatpush.xpose.msk.msrb.mxu3 %vm301_vm0, %v275_v20  ;;  %1394 = vmatpush.xpose.msk.msrb.mxu0 %vm301_vm0, %v266_v22 }
  0x23   : > { %1400 = vmatpush.xpose.msk.msrb.mxu1 %vm301_vm0, %v269_v25  ;;  %1385 = vmatmul.msk.f32.gmra.mxu2 %vm301_vm0, %v236_v26 }
  0x24   : > { %1407 = vmatpush.xpose.msk.msrb.mxu2 %vm301_vm0, %v271_v23  ;;  %1373 = vmatmul.msk.f32.gmra.mxu0 %vm301_vm0, %v230_v27 }
  0x25   : > { %1413 = vmatpush.xpose.msk.msrb.mxu3 %vm301_vm0, %v274_v24  ;;  %1395 = vmatpush.xpose.msk.msrb.mxu0 %vm301_vm0, %v265_v29 }
  0x26   : > { %1391 = vmatmul.msk.f32.gmra.mxu3 %vm301_vm0, %v239_v28  ;;  %1379 = vmatmul.msk.f32.gmra.mxu1 %vm301_vm0, %v233_v30 }
  0x27   : > { %1401 = vmatpush.xpose.msk.msrb.mxu1 %vm301_vm0, %v268_v31 }
  0x2b   : > { %1386 = vmatmul.msk.f32.gmra.mxu2 %vm301_vm0, %v237_v32 }
  0x2c   : > { %1374 = vmatmul.msk.f32.gmra.mxu0 %vm301_vm0, %v231_v33 }
  0x2e   : > { %1392 = vmatmul.msk.f32.gmra.mxu3 %vm301_vm0, %v240_v34  ;;  %1380 = vmatmul.msk.f32.gmra.mxu1 %vm301_vm0, %v234_v35 }
  0x33   : > { %1408 = vmatmul.msk.f32.vlgmr.msrb.gmra.mxu2 %vm301_vm0, %v247_v36 }
  0x34   : > { %1396 = vmatmul.msk.f32.vlgmr.msrb.gmra.mxu0 %vm301_vm0, %v241_v37 }
  0x36   : > { %1414 = vmatmul.msk.f32.vlgmr.msrb.gmra.mxu3 %vm301_vm0, %v250_v38  ;;  %1402 = vmatmul.msk.f32.vlgmr.msrb.gmra.mxu1 %vm301_vm0, %v244_v39 }
  0x3b   : > { %1409 = vmatmul.msk.f32.gmra.mxu2 %vm301_vm0, %v248_v40 }
  0x3c   : > { %1397 = vmatmul.msk.f32.gmra.mxu0 %vm301_vm0, %v242_v41 }
  0x3e   : > { %1415 = vmatmul.msk.f32.gmra.mxu3 %vm301_vm0, %v251_v42  ;;  %1403 = vmatmul.msk.f32.gmra.mxu1 %vm301_vm0, %v245_v43 }
  0x43   : > { %1410 = vmatmul.msk.f32.gmra.mxu2 %vm301_vm0, %v249_v45 }
  0x44   : > { %1398 = vmatmul.msk.f32.gmra.mxu0 %vm301_vm0, %v243_v44 }
  0x46   : > { %1416 = vmatmul.msk.f32.gmra.mxu3 %vm301_vm0, %v252_v46  ;;  %1404 = vmatmul.msk.f32.gmra.mxu1 %vm301_vm0, %v246_v47 }
  0x98   : > { %v337_v48 = vpop.f32.mrf.mxu0 }
  0x99   : > { %v1702_v49 = vmul.f32 0.17677669, %v337_v48 }
  0x9b   : > { %v381_v50 = vpop.f32.mrf.mxu1  ;;  %v679_v51 = vsel %vm678_vm1, %v1702_v49, -inf }
  0x9c   : > { %680 = vmax.xlane.f32.xlu1 %v679_v51  ;;  %v1706_v52 = vmul.f32 0.17677669, %v381_v50 }
  0x9e   : > { %v425_v53 = vpop.f32.mrf.mxu2  ;;  %v689_v58 = vsel %vm678_vm1, %v1706_v52, -inf }
  0x9f   : > { %v1708_v54 = vmul.f32 0.17677669, %v425_v53  ;;  %v469_v55 = vpop.f32.mrf.mxu3 }
  0xa0   : > { %v1714_v60 = vmul.f32 0.17677669, %v469_v55 }
  0xa1   : > { %v340_v56 = vpop.f32.mrf.mxu0  ;;  %v698_v57 = vsel %vm678_vm1, %v1708_v54, -inf }
  0xa2   : > { %699 = vmax.xlane.f32.xlu0 %v698_v57  ;;  %v707_v1 = vsel %vm678_vm1, %v1714_v60, -inf  ;;  %v1726_v5 = vmul.f32 0.17677669, %v340_v56 }
  0xa3   : > { %v384_v59 = vpop.f32.mrf.mxu1 }
  0xa4   : > { %690 = vmax.xlane.f32.xlu1 %v689_v58  ;;  %v1716_v61 = vmul.f32 0.17677669, %v384_v59  ;;  %v682_v12 = vsel %vm678_vm1, %v1726_v5, -inf  ;;  %v279_v59 = vld [vmem:[%s1802_s24 + $0x10] sm:$0x1] }
  0xa5   : > { %1417 = vmatpush.msk.msra.mxu0 %vm905_vm3, %v279_v59 }
  0xa6   : > { %v428_v62 = vpop.f32.mrf.mxu2  ;;  %v692_v3 = vsel %vm678_vm1, %v1716_v61, -inf }
  0xa7   : > { %v1718_v63 = vmul.f32 0.17677669, %v428_v62  ;;  %v278_v62 = vld [vmem:[%s1802_s24 + $0x8] sm:$0xff] }
  0xa8   : > { %923 = vmatpush.msra.mxu0 %v278_v62  ;;  %v290_v62 = vld [vmem:[%s1802_s24 + $0x68] sm:$0xff] }
  0xa9   : > { %v472_v0 = vpop.f32.mrf.mxu3  ;;  %v701_v2 = vsel %vm678_vm1, %v1718_v63, -inf  ;;  %v343_v4 = vpop.f32.mrf.mxu0 }
  0xaa   : > { %708 = vmax.xlane.f32.xlu0 %v707_v1  ;;  %702 = vmax.xlane.f32.xlu2 %v701_v2  ;;  %v1728_v6 = vmul.f32 0.17677669, %v472_v0  ;;  %v1730_v7 = vmul.f32 0.17677669, %v343_v4  ;;  %v277_v0 = vld [vmem:[%s1802_s24] sm:$0xff] }
  0xab   : > { %v387_v9 = vpop.f32.mrf.mxu1  ;;  %924 = vmatpush.msra.mxu0 %v277_v0  ;;  %v285_v1 = vld [vmem:[%s1802_s24 + $0x40] sm:$0x1]  ;;  %v282_v2 = vld [vmem:[%s1802_s24 + $0x28] sm:$0x1]  ;;  %v296_v0 = vld [vmem:[%s1802_s24 + $0x98] sm:$0xff] }
  0xac   : > { %693 = vmax.xlane.f32.xlu1 %v692_v3  ;;  %v710_v11 = vsel %vm678_vm1, %v1728_v6, -inf  ;;  %v686_v13 = vsel %vm685_vm2, %v1730_v7, -inf  ;;  %v1740_v15 = vmul.f32 0.17677669, %v387_v9  ;;  %1425 = vmatpush.msk.msra.mxu2 %vm905_vm3, %v285_v1  ;;  %v284_v3 = vld [vmem:[%s1802_s24 + $0x38] sm:$0xff]  ;;  %v281_v4 = vld [vmem:[%s1802_s24 + $0x20] sm:$0xff] }
  0xad   : > { %1421 = vmatpush.msk.msra.mxu1 %vm905_vm3, %v282_v2  ;;  %v280_v9 = vld [vmem:[%s1802_s24 + $0x18] sm:$0xff] }
  0xae   : > { %v431_v8 = vpop.f32.mrf.mxu2  ;;  %v695_v19 = vsel %vm685_vm2, %v1740_v15, -inf  ;;  %999 = vmatpush.msra.mxu2 %v284_v3 }
  0xaf   : > { %v1752_v25 = vmul.f32 0.17677669, %v431_v8  ;;  %v283_v8 = vld [vmem:[%s1802_s24 + $0x30] sm:$0xff]  ;;  %961 = vmatpush.msra.mxu1 %v281_v4 }
  0xb0   : > { %1000 = vmatpush.msra.mxu2 %v283_v8 }
  0xb1   : > { %v475_v10 = vpop.f32.mrf.mxu3  ;;  %v513_v17 = vpop.f32.mrf.mxu0  ;;  %v704_v30 = vsel %vm685_vm2, %v1752_v25, -inf  ;;  %962 = vmatpush.msra.mxu1 %v280_v9  ;;  %v289_v9 = vld [vmem:[%s1802_s24 + $0x60] sm:$0xff] }
  0xb2   : > { %711 = vmax.xlane.f32.xlu2 %v710_v11  ;;  %683 = vmax.xlane.f32.xlu0 %v682_v12  ;;  %v1738_v14 = vmul.f32 0.17677669, %v475_v10  ;;  %v1762_v33 = vmul.f32 0.17677669, %v513_v17  ;;  %v288_v10 = vld [vmem:[%s1802_s24 + $0x58] sm:$0x1] }
  0xb3   : > { %v557_v22 = vpop.f32.mrf.mxu1  ;;  %1429 = vmatpush.msk.msra.mxu3 %vm905_vm3, %v288_v10  ;;  %v287_v11 = vld [vmem:[%s1802_s24 + $0x50] sm:$0xff]  ;;  %v286_v12 = vld [vmem:[%s1802_s24 + $0x48] sm:$0xff] }
  0xb4   : > { %687 = vmax.xlane.f32.xlu1 %v686_v13  ;;  %v713_v20 = vsel %vm685_vm2, %v1738_v14, -inf  ;;  %v1750_v24 = vmul.f32 0.17677669, %v557_v22  ;;  %v716_v37 = vsel %vm678_vm1, %v1762_v33, -inf  ;;  %v295_v10 = vld [vmem:[%s1802_s24 + $0x90] sm:$0xff] }
  0xb5   : > { %1037 = vmatpush.msra.mxu3 %v287_v11 }
  0xb6   : > { %v601_v16 = vpop.f32.mrf.mxu2  ;;  %v725_v28 = vsel %vm678_vm1, %v1750_v24, -inf }
  0xb7   : > { %v1764_v34 = vmul.f32 0.17677669, %v601_v16  ;;  %1038 = vmatpush.msra.mxu3 %v286_v12 }
  0xb9   : > { %v645_v18 = vpop.f32.mrf.mxu3  ;;  %v516_v29 = vpop.f32.mrf.mxu0  ;;  %v734_v38 = vsel %vm678_vm1, %v1764_v34, -inf }
  0xba   : > { %v1746_v21 = vmul.f32 0.17677669, %v645_v18  ;;  %696 = vmax.xlane.f32.xlu2 %v695_v19  ;;  %714 = vmax.xlane.f32.xlu0 %v713_v20  ;;  %v1774_v41 = vmul.f32 0.17677669, %v516_v29 }
  0xbb   : > { %v560_v32 = vpop.f32.mrf.mxu1 }
  0xbc   : > { %v743_v23 = vsel %vm678_vm1, %v1746_v21, -inf  ;;  %v1766_v35 = vmul.f32 0.17677669, %v560_v32  ;;  %v719_v45 = vsel %vm678_vm1, %v1774_v41, -inf }
  0xbd   : > { %744 = vmax.xlane.f32.xlu1 %v743_v23 }
  0xbe   : > { %v604_v26 = vpop.f32.mrf.mxu2  ;;  %v728_v39 = vsel %vm678_vm1, %v1766_v35, -inf }
  0xbf   : > { %v1754_v27 = vmul.f32 0.17677669, %v604_v26 }
  0xc1   : > { %v737_v31 = vsel %vm678_vm1, %v1754_v27, -inf  ;;  %v648_v36 = vpop.f32.mrf.mxu3  ;;  %v519_v40 = vpop.f32.mrf.mxu0 }
  0xc2   : > { %705 = vmax.xlane.f32.xlu2 %v704_v30  ;;  %726 = vmax.xlane.f32.xlu0 %v725_v28  ;;  %v1776_v42 = vmul.f32 0.17677669, %v648_v36  ;;  %v1778_v43 = vmul.f32 0.17677669, %v519_v40  ;;  %v300_v30 = vld [vmem:[%s1802_s24 + $0xb8] sm:$0x1] }
  0xc3   : > { %v563_v56 = vpop.f32.mrf.mxu1  ;;  %1445 = vmatpush.msk.msrb.mxu3 %vm905_vm3, %v300_v30  ;;  %v293_v36 = vld [vmem:[%s1802_s24 + $0x80] sm:$0xff] }
  0xc4   : > { %v746_v44 = vsel %vm678_vm1, %v1776_v42, -inf  ;;  %v722_v48 = vsel %vm685_vm2, %v1778_v43, -inf  ;;  %v1794_v57 = vmul.f32 0.17677669, %v563_v56 }
  0xc5   : > { %738 = vmax.xlane.f32.xlu1 %v737_v31 }
  0xc6   : > { %v607_v46 = vpop.f32.mrf.mxu2  ;;  %v731_v58 = vsel %vm685_vm2, %v1794_v57, -inf }
  0xc7   : > { %v1786_v50 = vmul.f32 0.17677669, %v607_v46  ;;  %v292_v46 = vld [vmem:[%s1802_s24 + $0x78] sm:$0xff] }
  0xc9   : > { %v651_v47 = vpop.f32.mrf.mxu3  ;;  %v740_v53 = vsel %vm685_vm2, %v1786_v50, -inf }
  0xca   : > { %735 = vmax.xlane.f32.xlu0 %v734_v38  ;;  %717 = vmax.xlane.f32.xlu2 %v716_v37  ;;  %v1788_v51 = vmul.f32 0.17677669, %v651_v47  ;;  %v299_v37 = vld [vmem:[%s1802_s24 + $0xb0] sm:$0xff]  ;;  %v298_v47 = vld [vmem:[%s1802_s24 + $0xa8] sm:$0xff] }
  0xcb   : > { %1189 = vmatpush.msrb.mxu3 %v299_v37 }
  0xcc   : > { %v749_v55 = vsel %vm685_vm2, %v1788_v51, -inf }
  0xcd   : > { %729 = vmax.xlane.f32.xlu1 %v728_v39  ;;  %1190 = vmatpush.msrb.mxu3 %v298_v47 }
  0xd2   : > { %747 = vmax.xlane.f32.xlu2 %v746_v44  ;;  %720 = vmax.xlane.f32.xlu0 %v719_v45 }
  0xd5   : > { %723 = vmax.xlane.f32.xlu1 %v722_v48 }
  0xda   : > { %741 = vmax.xlane.f32.xlu2 %v740_v53  ;;  %750 = vmax.xlane.f32.xlu0 %v749_v55  ;;  %v297_v53 = vld [vmem:[%s1802_s24 + $0xa0] sm:$0x1] }
  0xdb   : > { %1441 = vmatpush.msk.msrb.mxu2 %vm905_vm3, %v297_v53 }
  0xdd   : > { %1151 = vmatpush.msrb.mxu2 %v296_v0 }
  0xdf   : > { %1152 = vmatpush.msrb.mxu2 %v295_v10 }
  0xe2   : > { %732 = vmax.xlane.f32.xlu2 %v731_v58 }
 0x10f   : > { %v681_v13 = vpop.xlane.xlu1 %680 }
 0x110   : > { %v752_v16 = vsub.f32 %v1702_v49, %v681_v13  ;;  %v294_v49 = vld [vmem:[%s1802_s24 + $0x88] sm:$0x1] }
 0x111   : > { %1437 = vmatpush.msk.msrb.mxu1 %vm905_vm3, %v294_v49 }
 0x112   : > { %v776_v17 = vmul.f32 1.442695, %v752_v16 }
 0x113   : > { %1113 = vmatpush.msrb.mxu1 %v293_v36 }
 0x114   : > { %1460 = vpow2.f32 %v776_v17 }
 0x115   : > { %v700_v18 = vpop.xlane.xlu0 %699  ;;  %1114 = vmatpush.msrb.mxu1 %v292_v46 }
 0x116   : > { %v758_v19 = vsub.f32 %v1708_v54, %v700_v18 }
 0x117   : > { %v691_v20 = vpop.xlane.xlu1 %690 }
 0x118   : > { %v788_v22 = vmul.f32 1.442695, %v758_v19  ;;  %v755_v23 = vsub.f32 %v1706_v52, %v691_v20 }
 0x11a   : > { %v1461_v26 = vpop.eup %1460  ;;  %1462 = vpow2.f32 %v788_v22  ;;  %v782_v28 = vmul.f32 1.442695, %v755_v23 }
 0x11b   : > { %1418 = vmatmul.msk.f32.vlgmr.msra.gmra.mxu0 %vm678_vm1, %v1461_v26  ;;  %v824_v29 = vsel %vm678_vm1, %v1461_v26, 0.0 }
 0x11c   : > { %1464 = vpow2.f32 %v782_v28  ;;  %825 = vadd.xlane.f32.xlu0 %v824_v29 }
 0x11d   : > { %v709_v31 = vpop.xlane.xlu0 %708  ;;  %v703_v54 = vpop.xlane.xlu2 %702 }
 0x11e   : > { %v761_v52 = vsub.f32 %v1714_v60, %v709_v31  ;;  %v759_v32 = vsub.f32 %v1718_v63, %v703_v54 }
 0x11f   : > { %v694_v38 = vpop.xlane.xlu1 %693 }
 0x120   : > { %v1463_v39 = vpop.eup %1462  ;;  %v794_v40 = vmul.f32 1.442695, %v761_v52  ;;  %v790_v44 = vmul.f32 1.442695, %v759_v32  ;;  %v756_v45 = vsub.f32 %v1716_v61, %v694_v38  ;;  %v291_v61 = vld [vmem:[%s1802_s24 + $0x70] sm:$0x1] }
 0x121   : > { %1426 = vmatmul.msk.f32.vlgmr.msra.gmra.mxu2 %vm678_vm1, %v1463_v39  ;;  %1433 = vmatpush.msk.msrb.mxu0 %vm905_vm3, %v291_v61  ;;  %v842_v12 = vsel %vm678_vm1, %v1463_v39, 0.0 }
 0x122   : > { %v1465_v60 = vpop.eup %1464  ;;  %1466 = vpow2.f32 %v794_v40  ;;  %v784_v63 = vmul.f32 1.442695, %v756_v45 }
 0x123   : > { %1468 = vpow2.f32 %v790_v44  ;;  %1422 = vmatmul.msk.f32.vlgmr.msra.gmra.mxu1 %vm678_vm1, %v1465_v60  ;;  %v833_v48 = vsel %vm678_vm1, %v1465_v60, 0.0  ;;  %1075 = vmatpush.msrb.mxu0 %v290_v62 }
 0x124   : > { %1470 = vpow2.f32 %v784_v63  ;;  %834 = vadd.xlane.f32.xlu0 %v833_v48 }
 0x125   : > { %v712_v55 = vpop.xlane.xlu2 %711  ;;  %v684_v56 = vpop.xlane.xlu0 %683  ;;  %1076 = vmatpush.msrb.mxu0 %v289_v9 }
 0x126   : > { %v762_v58 = vsub.f32 %v1728_v6, %v712_v55  ;;  %v753_v59 = vsub.f32 %v1726_v5, %v684_v56 }
 0x127   : > { %v688_v1 = vpop.xlane.xlu1 %687 }
 0x128   : > { %v1467_v2 = vpop.eup %1466  ;;  %v796_v3 = vmul.f32 1.442695, %v762_v58  ;;  %v778_v4 = vmul.f32 1.442695, %v753_v59  ;;  %v754_v8 = vsub.f32 %v1730_v7, %v688_v1 }
 0x129   : > { %v1850_v11 = vpop.eup %1468  ;;  %1430 = vmatmul.msk.f32.vlgmr.msra.gmra.mxu3 %vm678_vm1, %v1467_v2 }
 0x12a   : > { %v1471_v6 = vpop.eup %1470  ;;  %1472 = vpow2.f32 %v796_v3  ;;  %v780_v5 = vmul.f32 1.442695, %v754_v8  ;;  %1427 = vmatmul.msk.f32.gmra.mxu2 %vm678_vm1, %v1850_v11 }
 0x12b   : > { %1474 = vpow2.f32 %v778_v4  ;;  %1423 = vmatmul.msk.f32.gmra.mxu1 %vm678_vm1, %v1471_v6  ;;  %v836_v39 = vsel %vm678_vm1, %v1471_v6, 0.0 }
 0x12c   : > { %1476 = vpow2.f32 %v780_v5  ;;  %843 = vadd.xlane.f32.xlu0 %v842_v12 }
 0x12d   : > { %v697_v7 = vpop.xlane.xlu2 %696  ;;  %v715_v13 = vpop.xlane.xlu0 %714 }
 0x12e   : > { %v757_v16 = vsub.f32 %v1740_v15, %v697_v7  ;;  %v763_v17 = vsub.f32 %v1738_v14, %v715_v13  ;;  %v851_v15 = vsel %vm678_vm1, %v1467_v2, 0.0 }
 0x130   : > { %v745_v18 = vpop.xlane.xlu1 %744  ;;  %v1859_v19 = vpop.eup %1472  ;;  %v786_v20 = vmul.f32 1.442695, %v757_v16  ;;  %v798_v22 = vmul.f32 1.442695, %v763_v17 }
 0x131   : > { %v1475_v23 = vpop.eup %1474  ;;  %v773_v26 = vsub.f32 %v1746_v21, %v745_v18  ;;  %1431 = vmatmul.msk.f32.gmra.mxu3 %vm678_vm1, %v1859_v19 }
 0x132   : > { %v1477_v28 = vpop.eup %1476  ;;  %1478 = vpow2.f32 %v786_v20  ;;  %1419 = vmatmul.msk.f32.gmra.mxu0 %vm678_vm1, %v1475_v23  ;;  %v827_v29 = vsel %vm678_vm1, %v1475_v23, 0.0 }
 0x133   : > { %1480 = vpow2.f32 %v798_v22  ;;  %828 = vadd.xlane.f32.xlu1 %v827_v29  ;;  %v830_v14 = vsel %vm685_vm2, %v1477_v28, 0.0  ;;  %v818_v49 = vmul.f32 1.442695, %v773_v26 }
 0x134   : > { %831 = vadd.xlane.f32.xlu2 %v830_v14  ;;  %852 = vadd.xlane.f32.xlu0 %v851_v15 }
 0x135   : > { %v706_v30 = vpop.xlane.xlu2 %705  ;;  %v727_v21 = vpop.xlane.xlu0 %726  ;;  %1482 = vpow2.f32 %v818_v49 }
 0x136   : > { %v760_v31 = vsub.f32 %v1752_v25, %v706_v30  ;;  %v767_v54 = vsub.f32 %v1750_v24, %v727_v21 }
 0x138   : > { %v739_v52 = vpop.xlane.xlu1 %738  ;;  %v1479_v32 = vpop.eup %1478  ;;  %v792_v36 = vmul.f32 1.442695, %v760_v31  ;;  %v806_v37 = vmul.f32 1.442695, %v767_v54 }
 0x139   : > { %v1481_v38 = vpop.eup %1480  ;;  %1424 = vmatmul.msk.f32.gmra.mxu1 %vm678_vm1, %v1479_v32  ;;  %v839_v25 = vsel %vm685_vm2, %v1479_v32, 0.0  ;;  %v771_v55 = vsub.f32 %v1754_v27, %v739_v52 }
 0x13a   : > { %1484 = vpow2.f32 %v792_v36  ;;  %1420 = vmatmul.msk.f32.gmra.mxu0 %vm678_vm1, %v1477_v28  ;;  %1432 = vmatmul.msk.f32.gmra.mxu3 %vm678_vm1, %v1481_v38 }
 0x13b   : > { %1486 = vpow2.f32 %v806_v37  ;;  %837 = vadd.xlane.f32.xlu1 %v836_v39  ;;  %v1877_v46 = vpop.eup %1482 }
 0x13c   : > { %840 = vadd.xlane.f32.xlu2 %v839_v25  ;;  %v887_v30 = vsel %vm678_vm1, %v1877_v46, 0.0 }
 0x13d   : > { %v736_v24 = vpop.xlane.xlu0 %735  ;;  %v718_v40 = vpop.xlane.xlu2 %717 }
 0x13e   : > { %v770_v44 = vsub.f32 %v1764_v34, %v736_v24  ;;  %v764_v45 = vsub.f32 %v1762_v33, %v718_v40  ;;  %v845_v33 = vsel %vm678_vm1, %v1850_v11, 0.0 }
 0x140   : > { %v730_v47 = vpop.xlane.xlu1 %729  ;;  %v1485_v60 = vpop.eup %1484  ;;  %v812_v63 = vmul.f32 1.442695, %v770_v44  ;;  %v800_v48 = vmul.f32 1.442695, %v764_v45 }
 0x141   : > { %v768_v53 = vsub.f32 %v1766_v35, %v730_v47  ;;  %v1487_v61 = vpop.eup %1486  ;;  %1428 = vmatmul.msk.f32.gmra.mxu2 %vm678_vm1, %v1485_v60  ;;  %v848_v34 = vsel %vm685_vm2, %v1485_v60, 0.0  ;;  %v814_v35 = vmul.f32 1.442695, %v771_v55 }
 0x142   : > { %1488 = vpow2.f32 %v812_v63  ;;  %1438 = vmatmul.msk.f32.vlgmr.msrb.gmra.mxu1 %vm678_vm1, %v1487_v61  ;;  %1446 = vmatmul.msk.f32.vlgmr.msrb.gmra.mxu3 %vm678_vm1, %v1877_v46  ;;  %v869_v20 = vsel %vm678_vm1, %v1487_v61, 0.0 }
 0x143   : > { %v808_v56 = vmul.f32 1.442695, %v768_v53  ;;  %1490 = vpow2.f32 %v800_v48  ;;  %846 = vadd.xlane.f32.xlu1 %v845_v33 }
 0x144   : > { %849 = vadd.xlane.f32.xlu2 %v848_v34 }
 0x145   : > { %1492 = vpow2.f32 %v808_v56  ;;  %v748_v27 = vpop.xlane.xlu2 %747  ;;  %v721_v58 = vpop.xlane.xlu0 %720 }
 0x146   : > { %v774_v59 = vsub.f32 %v1776_v42, %v748_v27  ;;  %v765_v62 = vsub.f32 %v1774_v41, %v721_v58  ;;  %1494 = vpow2.f32 %v814_v35  ;;  %v854_v41 = vsel %vm678_vm1, %v1859_v19, 0.0 }
 0x147   : > { %v857_v42 = vsel %vm685_vm2, %v1481_v38, 0.0 }
 0x148   : > { %v724_v0 = vpop.xlane.xlu1 %723  ;;  %v1489_v1 = vpop.eup %1488  ;;  %v820_v2 = vmul.f32 1.442695, %v774_v59  ;;  %v802_v3 = vmul.f32 1.442695, %v765_v62 }
 0x149   : > { %v766_v4 = vsub.f32 %v1778_v43, %v724_v0  ;;  %v1491_v8 = vpop.eup %1490  ;;  %1442 = vmatmul.msk.f32.vlgmr.msrb.gmra.mxu2 %vm678_vm1, %v1489_v1  ;;  %v878_v14 = vsel %vm678_vm1, %v1489_v1, 0.0 }
 0x14a   : > { %1496 = vpow2.f32 %v820_v2  ;;  %1434 = vmatmul.msk.f32.vlgmr.msrb.gmra.mxu0 %vm678_vm1, %v1491_v8  ;;  %v860_v11 = vsel %vm678_vm1, %v1491_v8, 0.0 }
 0x14b   : > { %v1493_v9 = vpop.eup %1492  ;;  %v804_v10 = vmul.f32 1.442695, %v766_v4  ;;  %1498 = vpow2.f32 %v802_v3  ;;  %861 = vadd.xlane.f32.xlu0 %v860_v11  ;;  %855 = vadd.xlane.f32.xlu1 %v854_v41 }
 0x14c   : > { %1439 = vmatmul.msk.f32.gmra.mxu1 %vm678_vm1, %v1493_v9  ;;  %858 = vadd.xlane.f32.xlu2 %v857_v42  ;;  %v1495_v7 = vpop.eup %1494  ;;  %v872_v15 = vsel %vm678_vm1, %v1493_v9, 0.0 }
 0x14d   : > { %1500 = vpow2.f32 %v804_v10  ;;  %v742_v43 = vpop.xlane.xlu2 %741  ;;  %v751_v6 = vpop.xlane.xlu0 %750  ;;  %v881_v21 = vsel %vm678_vm1, %v1495_v7, 0.0 }
 0x14e   : > { %v772_v5 = vsub.f32 %v1786_v50, %v742_v43  ;;  %v775_v12 = vsub.f32 %v1788_v51, %v751_v6 }
 0x150   : > { %v1497_v13 = vpop.eup %1496  ;;  %v816_v16 = vmul.f32 1.442695, %v772_v5  ;;  %v822_v17 = vmul.f32 1.442695, %v775_v12 }
 0x151   : > { %v1499_v18 = vpop.eup %1498  ;;  %1443 = vmatmul.msk.f32.gmra.mxu2 %vm678_vm1, %v1495_v7  ;;  %1447 = vmatmul.msk.f32.gmra.mxu3 %vm678_vm1, %v1497_v13  ;;  %v890_v54 = vsel %vm678_vm1, %v1497_v13, 0.0 }
 0x152   : > { %1502 = vpow2.f32 %v816_v16  ;;  %1435 = vmatmul.msk.f32.gmra.mxu0 %vm678_vm1, %v1499_v18  ;;  %v863_v22 = vsel %vm678_vm1, %v1499_v18, 0.0 }
 0x153   : > { %v1501_v19 = vpop.eup %1500  ;;  %1504 = vpow2.f32 %v822_v17  ;;  %870 = vadd.xlane.f32.xlu0 %v869_v20  ;;  %864 = vadd.xlane.f32.xlu1 %v863_v22 }
 0x154   : > { %v866_v50 = vsel %vm685_vm2, %v1501_v19, 0.0 }
 0x155   : > { %867 = vadd.xlane.f32.xlu2 %v866_v50  ;;  %v733_v51 = vpop.xlane.xlu2 %732 }
 0x156   : > { %v769_v23 = vsub.f32 %v1794_v57, %v733_v51 }
 0x158   : > { %v1503_v26 = vpop.eup %1502  ;;  %v810_v28 = vmul.f32 1.442695, %v769_v23 }
 0x159   : > { %v1505_v29 = vpop.eup %1504  ;;  %1444 = vmatmul.msk.f32.gmra.mxu2 %vm678_vm1, %v1503_v26  ;;  %v884_v31 = vsel %vm685_vm2, %v1503_v26, 0.0 }
 0x15a   : > { %1506 = vpow2.f32 %v810_v28  ;;  %1436 = vmatmul.msk.f32.gmra.mxu0 %vm678_vm1, %v1501_v19  ;;  %1448 = vmatmul.msk.f32.gmra.mxu3 %vm678_vm1, %v1505_v29  ;;  %v893_v52 = vsel %vm685_vm2, %v1505_v29, 0.0 }
 0x15b   : > { %879 = vadd.xlane.f32.xlu0 %v878_v14  ;;  %873 = vadd.xlane.f32.xlu1 %v872_v15 }
 0x160   : > { %v1507_v49 = vpop.eup %1506 }
 0x161   : > { %1440 = vmatmul.msk.f32.gmra.mxu1 %vm678_vm1, %v1507_v49  ;;  %v875_v57 = vsel %vm685_vm2, %v1507_v49, 0.0 }
 0x162   : > { %876 = vadd.xlane.f32.xlu2 %v875_v57 }
 0x163   : > { %888 = vadd.xlane.f32.xlu0 %v887_v30  ;;  %882 = vadd.xlane.f32.xlu1 %v881_v21 }
 0x16a   : > { %885 = vadd.xlane.f32.xlu2 %v884_v31 }
 0x16b   : > { %891 = vadd.xlane.f32.xlu1 %v890_v54 }
 0x172   : > { %894 = vadd.xlane.f32.xlu2 %v893_v52 }
 0x18f   : > { %v826_v32 = vpop.xlane.xlu0 %825 }
 0x190   : > { %1508 = vrcp.f32 %v826_v32 }
 0x196   : > { %v1509_v37 = vpop.eup %1508 }
 0x197   : > { %v835_v36 = vpop.xlane.xlu0 %834 }
 0x198   : > { %v926_v38 = vpop.f32.mrf.mxu0  ;;  %1510 = vrcp.f32 %v835_v36 }
 0x199   : > { %v1225_v39 = vmul.f32 %v1509_v37, %v926_v38 }
 0x19b   : > { %1249 = vst.msk [vmem:[%s1924_s27] sm:$0xff] %vm301_vm0, %v1225_v39 }
 0x19e   : > { %v1511_v24 = vpop.eup %1510 }
 0x19f   : > { %v844_v25 = vpop.xlane.xlu0 %843 }
 0x1a0   : > { %1512 = vrcp.f32 %v844_v25  ;;  %v964_v40 = vpop.f32.mrf.mxu1 }
 0x1a1   : > { %v1228_v44 = vmul.f32 %v1511_v24, %v964_v40 }
 0x1a3   : > { %1253 = vst.msk [vmem:[%s1924_s27 + $0x18] sm:$0xff] %vm301_vm0, %v1228_v44 }
 0x1a4   : > { %v1002_v46 = vpop.f32.mrf.mxu2 }
 0x1a6   : > { %v1513_v45 = vpop.eup %1512  ;;  %v829_v47 = vpop.xlane.xlu1 %828 }
 0x1a7   : > { %v1231_v60 = vmul.f32 %v1513_v45, %v1002_v46  ;;  %v832_v63 = vpop.xlane.xlu2 %831  ;;  %v853_v48 = vpop.xlane.xlu0 %852  ;;  %1514 = vrcp.f32 %v829_v47 }
 0x1a8   : > { %1516 = vrcp.f32 %v853_v48  ;;  %v967_v53 = vpop.f32.mrf.mxu1 }
 0x1a9   : > { %1256 = vst.msk [vmem:[%s1924_s27 + $0x30] sm:$0xff] %vm301_vm0, %v1231_v60 }
 0x1ac   : > { %v1040_v55 = vpop.f32.mrf.mxu3 }
 0x1ad   : > { %v1515_v61 = vpop.eup %1514  ;;  %v1005_v11 = vpop.f32.mrf.mxu2 }
 0x1ae   : > { %v838_v56 = vpop.xlane.xlu1 %837  ;;  %v1517_v33 = vpop.eup %1516 }
 0x1af   : > { %1518 = vrcp.f32 %v838_v56  ;;  %v929_v34 = vpop.f32.mrf.mxu0  ;;  %v841_v35 = vpop.xlane.xlu2 %840  ;;  %v1234_v27 = vmul.f32 %v1517_v33, %v1040_v55 }
 0x1b0   : > { %v1226_v58 = vmul.f32 %v1515_v61, %v929_v34  ;;  %1520 = vrcp.f32 %v841_v35 }
 0x1b1   : > { %1522 = vrcp.f32 %v832_v63  ;;  %1259 = vst.msk [vmem:[%s1924_s27 + $0x48] sm:$0xff] %vm301_vm0, %v1234_v27 }
 0x1b2   : > { %1250 = vst.msk [vmem:[%s1924_s27 + $0x8] sm:$0xff] %vm301_vm0, %v1226_v58 }
 0x1b4   : > { %v1043_v42 = vpop.f32.mrf.mxu3 }
 0x1b5   : > { %v1519_v59 = vpop.eup %1518 }
 0x1b6   : > { %v1521_v62 = vpop.eup %1520  ;;  %v1229_v0 = vmul.f32 %v1519_v59, %v967_v53  ;;  %v847_v1 = vpop.xlane.xlu1 %846 }
 0x1b7   : > { %v970_v2 = vpop.f32.mrf.mxu1  ;;  %v1523_v3 = vpop.eup %1522  ;;  %1524 = vrcp.f32 %v847_v1 }
 0x1b8   : > { %v932_v4 = vpop.f32.mrf.mxu0  ;;  %v1230_v8 = vmul.f32 %v1521_v62, %v970_v2  ;;  %v850_v9 = vpop.xlane.xlu2 %849  ;;  %1254 = vst.msk [vmem:[%s1924_s27 + $0x20] sm:$0xff] %vm301_vm0, %v1229_v0 }
 0x1b9   : > { %v1227_v10 = vmul.f32 %v1523_v3, %v932_v4  ;;  %1526 = vrcp.f32 %v850_v9 }
 0x1ba   : > { %1255 = vst.msk [vmem:[%s1924_s27 + $0x28] sm:$0x1] %vm1251_vm4, %v1230_v8 }
 0x1bb   : > { %1252 = vst.msk [vmem:[%s1924_s27 + $0x10] sm:$0x1] %vm1251_vm4, %v1227_v10 }
 0x1bd   : > { %v1525_v41 = vpop.eup %1524  ;;  %v1046_v50 = vpop.f32.mrf.mxu3 }
 0x1be   : > { %v1232_v43 = vmul.f32 %v1525_v41, %v1005_v11  ;;  %v862_v6 = vpop.xlane.xlu0 %861  ;;  %v856_v5 = vpop.xlane.xlu1 %855 }
 0x1bf   : > { %1528 = vrcp.f32 %v862_v6  ;;  %v1527_v7 = vpop.eup %1526  ;;  %v1116_v14 = vpop.f32.mrf.mxu1 }
 0x1c0   : > { %v859_v12 = vpop.xlane.xlu2 %858  ;;  %1257 = vst.msk [vmem:[%s1924_s27 + $0x38] sm:$0xff] %vm301_vm0, %v1232_v43  ;;  %1530 = vrcp.f32 %v856_v5 }
 0x1c1   : > { %1532 = vrcp.f32 %v859_v12 }
 0x1c4   : > { %v1008_v13 = vpop.f32.mrf.mxu2 }
 0x1c5   : > { %v1529_v16 = vpop.eup %1528  ;;  %v1233_v17 = vmul.f32 %v1527_v7, %v1008_v13  ;;  %v1192_v47 = vpop.f32.mrf.mxu3 }
 0x1c6   : > { %v1531_v18 = vpop.eup %1530  ;;  %v871_v19 = vpop.xlane.xlu0 %870 }
 0x1c7   : > { %v865_v20 = vpop.xlane.xlu1 %864  ;;  %v1533_v22 = vpop.eup %1532  ;;  %v1235_v51 = vmul.f32 %v1531_v18, %v1043_v42  ;;  %1258 = vst.msk [vmem:[%s1924_s27 + $0x40] sm:$0x1] %vm1251_vm4, %v1233_v17  ;;  %1534 = vrcp.f32 %v871_v19 }
 0x1c8   : > { %v1078_v23 = vpop.f32.mrf.mxu0  ;;  %v1236_v26 = vmul.f32 %v1533_v22, %v1046_v50  ;;  %1536 = vrcp.f32 %v865_v20  ;;  %v868_v15 = vpop.xlane.xlu2 %867 }
 0x1c9   : > { %v1237_v28 = vmul.f32 %v1529_v16, %v1078_v23  ;;  %1260 = vst.msk [vmem:[%s1924_s27 + $0x50] sm:$0xff] %vm301_vm0, %v1235_v51  ;;  %v1119_v36 = vpop.f32.mrf.mxu1 }
 0x1ca   : > { %1261 = vst.msk [vmem:[%s1924_s27 + $0x58] sm:$0x1] %vm1251_vm4, %v1236_v26 }
 0x1cb   : > { %1262 = vst.msk [vmem:[%s1924_s27 + $0x60] sm:$0xff] %vm301_vm0, %v1237_v28 }
 0x1cc   : > { %v1154_v54 = vpop.f32.mrf.mxu2 }
 0x1cd   : > { %v1535_v29 = vpop.eup %1534 }
 0x1ce   : > { %v1240_v49 = vmul.f32 %v1535_v29, %v1116_v14  ;;  %v880_v57 = vpop.xlane.xlu0 %879  ;;  %v1537_v21 = vpop.eup %1536 }
 0x1cf   : > { %v874_v30 = vpop.xlane.xlu1 %873  ;;  %1538 = vrcp.f32 %v880_v57 }
 0x1d0   : > { %v1081_v31 = vpop.f32.mrf.mxu0  ;;  %1265 = vst.msk [vmem:[%s1924_s27 + $0x78] sm:$0xff] %vm301_vm0, %v1240_v49  ;;  %1540 = vrcp.f32 %v874_v30 }
 0x1d1   : > { %v1238_v52 = vmul.f32 %v1537_v21, %v1081_v31  ;;  %1542 = vrcp.f32 %v868_v15 }
 0x1d3   : > { %1263 = vst.msk [vmem:[%s1924_s27 + $0x68] sm:$0xff] %vm301_vm0, %v1238_v52 }
 0x1d4   : > { %v1157_v60 = vpop.f32.mrf.mxu2  ;;  %v1195_v27 = vpop.f32.mrf.mxu3 }
 0x1d5   : > { %v1539_v32 = vpop.eup %1538  ;;  %v877_v37 = vpop.xlane.xlu2 %876 }
 0x1d6   : > { %v1541_v38 = vpop.eup %1540  ;;  %v1243_v39 = vmul.f32 %v1539_v32, %v1154_v54  ;;  %v889_v25 = vpop.xlane.xlu0 %888  ;;  %1544 = vrcp.f32 %v877_v37 }
 0x1d7   : > { %v883_v24 = vpop.xlane.xlu1 %882  ;;  %v1543_v40 = vpop.eup %1542  ;;  %v1241_v44 = vmul.f32 %v1541_v38, %v1119_v36  ;;  %1546 = vrcp.f32 %v889_v25 }
 0x1d8   : > { %v1084_v45 = vpop.f32.mrf.mxu0  ;;  %1268 = vst.msk [vmem:[%s1924_s27 + $0x90] sm:$0xff] %vm301_vm0, %v1243_v39  ;;  %1548 = vrcp.f32 %v883_v24 }
 0x1d9   : > { %v1239_v46 = vmul.f32 %v1543_v40, %v1084_v45  ;;  %1266 = vst.msk [vmem:[%s1924_s27 + $0x80] sm:$0xff] %vm301_vm0, %v1241_v44 }
 0x1db   : > { %1264 = vst.msk [vmem:[%s1924_s27 + $0x70] sm:$0x1] %vm1251_vm4, %v1239_v46 }
 0x1dc   : > { %v1545_v63 = vpop.eup %1544  ;;  %v1160_v59 = vpop.f32.mrf.mxu2 }
 0x1dd   : > { %v1547_v48 = vpop.eup %1546  ;;  %v886_v53 = vpop.xlane.xlu2 %885 }
 0x1de   : > { %v1549_v61 = vpop.eup %1548  ;;  %v1246_v55 = vmul.f32 %v1547_v48, %v1192_v47  ;;  %1550 = vrcp.f32 %v886_v53  ;;  %v1122_v33 = vpop.f32.mrf.mxu1 }
 0x1df   : > { %v892_v56 = vpop.xlane.xlu1 %891  ;;  %v1244_v34 = vmul.f32 %v1549_v61, %v1157_v60  ;;  %v1242_v35 = vmul.f32 %v1545_v63, %v1122_v33  ;;  %v1198_v4 = vpop.f32.mrf.mxu3 }
 0x1e0   : > { %1552 = vrcp.f32 %v892_v56  ;;  %1271 = vst.msk [vmem:[%s1924_s27 + $0xa8] sm:$0xff] %vm301_vm0, %v1246_v55 }
 0x1e1   : > { %1269 = vst.msk [vmem:[%s1924_s27 + $0x98] sm:$0xff] %vm301_vm0, %v1244_v34 }
 0x1e2   : > { %1267 = vst.msk [vmem:[%s1924_s27 + $0x88] sm:$0x1] %vm1251_vm4, %v1242_v35 }
 0x1e4   : > { %v1551_v58 = vpop.eup %1550 }
 0x1e5   : > { %v1245_v0 = vmul.f32 %v1551_v58, %v1160_v59  ;;  %v895_v1 = vpop.xlane.xlu2 %894 }
 0x1e6   : > { %v1553_v62 = vpop.eup %1552  ;;  %1554 = vrcp.f32 %v895_v1 }
 0x1e7   : > { %v1247_v2 = vmul.f32 %v1553_v62, %v1195_v27  ;;  %1270 = vst.msk [vmem:[%s1924_s27 + $0xa0] sm:$0x1] %vm1251_vm4, %v1245_v0 }
 0x1e9   : > { %1272 = vst.msk [vmem:[%s1924_s27 + $0xb0] sm:$0xff] %vm301_vm0, %v1247_v2 }
 0x1ec   : > { %v1555_v3 = vpop.eup %1554 }
 0x1ed   : > { %v1248_v8 = vmul.f32 %v1555_v3, %v1198_v4 }
 0x1ef   : > { %1273 = vst.msk [vmem:[%s1924_s27 + $0xb8] sm:$0x1] %vm1251_vm4, %v1248_v8 }
 0x1f0 PF: > { %s13_s12 = sadd.s32 1, %s1562_s12  }
 0x1f1   : > { %p10_p4 = scmp.ge.s32.totalorder %s13_s12, 7  }
 0x1f3   :  { %12 = sbr.rel (!%p10_p4) target bundleno = 1 (0x1), region = 68 }

// kernel: cf_tower_s2_forward.11
= control target key start
LH: loop header
LB: loop body
LE: loop exit
PB: predicated region body
PF: predicated region fallthrough
CT: control target
= control target key end

     0   :  { %s730_s15 = smov 0   ;;  %s732_s16 = smov 0   ;;  %s845_s0 = inlined_call_operand.vmem [shape: f32[192,128], index: 0, kind: input, shape index: {}]   ;;  %s846_s1 = inlined_call_operand.vmem [shape: f32[128,128], index: 1, kind: input, shape index: {}]   ;;  %s847_s2 = inlined_call_operand.vmem [shape: f32[1,128], index: 2, kind: input, shape index: {}]   ;;  %s848_s3 = inlined_call_operand.vmem [shape: f32[192,128], index: 3, kind: input, shape index: {}]   ;;  %s849_s4 = inlined_call_operand.vmem [shape: f32[192,128], index: 4, kind: output, shape index: {}]  }
   0x1   :  { %s734_s17 = smov 0  }
   0x2 LB: > { %s33_s18 = sadd.s32 1, %s699_s16  ;;  %p599_p0 = scmp.ge.s32.totalorder %s703_s17, 1  ;;  %s703_s17 = sphi %s734_s17, %s14_s17   ;;  %s699_s16 = sphi %s732_s16, %s851_s16   ;;  %s695_s15 = sphi %s730_s15, %s850_s15  }
   0x3   : > { %p35_p1 = scmp.ge.s32.totalorder %s33_s18, 3  ;;  %p229_p2 = scmp.lt.s32.totalorder %s703_s17, 4 }
   0x5   : > { %s853_s18 = smov (%p35_p1, %s33_s18), 0  ;;  %p230_p3 = pnand %p599_p0, %p229_p2 }
   0x6   : > { %s600_s9 = sshll.u32 (!%p230_p3), %s695_s15, 3 }
   0x7   : > { %233 = sbr.rel (%p230_p3) target bundleno = 190 (0xbe), region = 36  ;;  %p281_p4 = scmp.lt.s32.totalorder (!%p230_p3), %s600_s9, 23 }
   0xc   : > { %v362_v0 = vld [vmem:[%s846_s1 + $0x78] sm:$0xff]  ;;  %v361_v1 = vld [vmem:[%s846_s1 + $0x70] sm:$0xff]  ;;  %v360_v2 = vld [vmem:[%s846_s1 + $0x68] sm:$0xff]  ;;  %s855_s9 = smov (!%p281_p4, %s600_s9), 23 }
   0xd   : > { %609 = vmatpush.msra.mxu2 %v362_v0  ;;  %610 = vmatpush.msra.mxu3 %v362_v0  ;;  %v359_v3 = vld [vmem:[%s846_s1 + $0x60] sm:$0xff]  ;;  %v358_v4 = vld [vmem:[%s846_s1 + $0x58] sm:$0xff]  ;;  %v357_v5 = vld [vmem:[%s846_s1 + $0x50] sm:$0xff]  ;;  %s790_s23 = sshll.u32 %s855_s9, 3 }
   0xe   : > { %363 = vmatpush.msra.mxu0 %v362_v0  ;;  %608 = vmatpush.msra.mxu1 %v362_v0  ;;  %v356_v6 = vld [vmem:[%s846_s1 + $0x48] sm:$0xff]  ;;  %v355_v7 = vld [vmem:[%s846_s1 + $0x40] sm:$0xff]  ;;  %v354_v8 = vld [vmem:[%s846_s1 + $0x38] sm:$0xff]  ;;  %s287_s30 = scalar_lea.vmem %s845_s0, %s790_s23  ;;  %s809_s9 = scalar_lea.vmem %s848_s3, %s790_s23 }
   0xf   : > { %612 = vmatpush.msra.mxu2 %v361_v1  ;;  %613 = vmatpush.msra.mxu3 %v361_v1  ;;  %v353_v9 = vld [vmem:[%s846_s1 + $0x30] sm:$0xff]  ;;  %v352_v10 = vld [vmem:[%s846_s1 + $0x28] sm:$0xff]  ;;  %v351_v11 = vld [vmem:[%s846_s1 + $0x20] sm:$0xff]  ;;  %s820_s14 = scalar_lea.vmem %s849_s4, %s790_s23 }
  0x10   : > { %364 = vmatpush.msra.mxu0 %v361_v1  ;;  %611 = vmatpush.msra.mxu1 %v361_v1  ;;  %v350_v12 = vld [vmem:[%s846_s1 + $0x18] sm:$0xff]  ;;  %v349_v13 = vld [vmem:[%s846_s1 + $0x10] sm:$0xff]  ;;  %v348_v14 = vld [vmem:[%s846_s1 + $0x8] sm:$0xff] }
  0x11   : > { %615 = vmatpush.msra.mxu2 %v360_v2  ;;  %616 = vmatpush.msra.mxu3 %v360_v2  ;;  %v347_v15 = vld [vmem:[%s846_s1] sm:$0xff]  ;;  %v345_v17 = vld [vmem:[%s287_s30 + $0x30] sm:$0xff]  ;;  %v344_v20 = vld [vmem:[%s287_s30 + $0x28] sm:$0xff] }
  0x12   : > { %365 = vmatpush.msra.mxu0 %v360_v2  ;;  %614 = vmatpush.msra.mxu1 %v360_v2  ;;  %v343_v16 = vld [vmem:[%s287_s30 + $0x20] sm:$0xff]  ;;  %v341_v19 = vld [vmem:[%s287_s30 + $0x10] sm:$0xff]  ;;  %v346_v21 = vld [vmem:[%s287_s30 + $0x38] sm:$0xff] }
  0x13   : > { %618 = vmatpush.msra.mxu2 %v359_v3  ;;  %619 = vmatpush.msra.mxu3 %v359_v3  ;;  %v339_v18 = vld [vmem:[%s287_s30] sm:$0xff]  ;;  %v340_v22 = vld [vmem:[%s287_s30 + $0x8] sm:$0xff]  ;;  %v342_v23 = vld [vmem:[%s287_s30 + $0x18] sm:$0xff] }
  0x14   : > { %366 = vmatpush.msra.mxu0 %v359_v3  ;;  %617 = vmatpush.msra.mxu1 %v359_v3  ;;  %v680_v24 = vld [vmem:[%s847_s2] ss:$0 sm:$0xff]  ;;  %v445_v28 = vld [vmem:[%s809_s9 + $0x10] sm:$0xff]  ;;  %v444_v42 = vld [vmem:[%s809_s9 + $0x8] sm:$0xff] }
  0x15   : > { %621 = vmatpush.msra.mxu2 %v358_v4  ;;  %622 = vmatpush.msra.mxu3 %v358_v4  ;;  %v443_v26 = vld [vmem:[%s809_s9] sm:$0xff]  ;;  %v449_v36 = vld [vmem:[%s809_s9 + $0x30] sm:$0xff]  ;;  %v446_v44 = vld [vmem:[%s809_s9 + $0x18] sm:$0xff] }
  0x16   : > { %367 = vmatpush.msra.mxu0 %v358_v4  ;;  %620 = vmatpush.msra.mxu1 %v358_v4  ;;  %v447_v34 = vld [vmem:[%s809_s9 + $0x20] sm:$0xff]  ;;  %v448_v50 = vld [vmem:[%s809_s9 + $0x28] sm:$0xff]  ;;  %v450_v52 = vld [vmem:[%s809_s9 + $0x38] sm:$0xff] }
  0x17   : > { %624 = vmatpush.msra.mxu2 %v357_v5  ;;  %625 = vmatpush.msra.mxu3 %v357_v5 }
  0x18   : > { %368 = vmatpush.msra.mxu0 %v357_v5  ;;  %623 = vmatpush.msra.mxu1 %v357_v5 }
  0x19   : > { %627 = vmatpush.msra.mxu2 %v356_v6  ;;  %628 = vmatpush.msra.mxu3 %v356_v6 }
  0x1a   : > { %369 = vmatpush.msra.mxu0 %v356_v6  ;;  %626 = vmatpush.msra.mxu1 %v356_v6 }
  0x1b   : > { %630 = vmatpush.msra.mxu2 %v355_v7  ;;  %631 = vmatpush.msra.mxu3 %v355_v7 }
  0x1c   : > { %370 = vmatpush.msra.mxu0 %v355_v7  ;;  %629 = vmatpush.msra.mxu1 %v355_v7 }
  0x1d   : > { %633 = vmatpush.msra.mxu2 %v354_v8  ;;  %634 = vmatpush.msra.mxu3 %v354_v8 }
  0x1e   : > { %371 = vmatpush.msra.mxu0 %v354_v8  ;;  %632 = vmatpush.msra.mxu1 %v354_v8 }
  0x1f   : > { %636 = vmatpush.msra.mxu2 %v353_v9  ;;  %637 = vmatpush.msra.mxu3 %v353_v9 }
  0x20   : > { %372 = vmatpush.msra.mxu0 %v353_v9  ;;  %635 = vmatpush.msra.mxu1 %v353_v9 }
  0x21   : > { %639 = vmatpush.msra.mxu2 %v352_v10  ;;  %640 = vmatpush.msra.mxu3 %v352_v10 }
  0x22   : > { %373 = vmatpush.msra.mxu0 %v352_v10  ;;  %638 = vmatpush.msra.mxu1 %v352_v10 }
  0x23   : > { %642 = vmatpush.msra.mxu2 %v351_v11  ;;  %643 = vmatpush.msra.mxu3 %v351_v11 }
  0x24   : > { %374 = vmatpush.msra.mxu0 %v351_v11  ;;  %641 = vmatpush.msra.mxu1 %v351_v11 }
  0x25   : > { %645 = vmatpush.msra.mxu2 %v350_v12  ;;  %646 = vmatpush.msra.mxu3 %v350_v12 }
  0x26   : > { %375 = vmatpush.msra.mxu0 %v350_v12  ;;  %644 = vmatpush.msra.mxu1 %v350_v12 }
  0x27   : > { %648 = vmatpush.msra.mxu2 %v349_v13  ;;  %649 = vmatpush.msra.mxu3 %v349_v13 }
  0x28   : > { %376 = vmatpush.msra.mxu0 %v349_v13  ;;  %647 = vmatpush.msra.mxu1 %v349_v13 }
  0x29   : > { %651 = vmatpush.msra.mxu2 %v348_v14  ;;  %652 = vmatpush.msra.mxu3 %v348_v14 }
  0x2a   : > { %377 = vmatpush.msra.mxu0 %v348_v14  ;;  %650 = vmatpush.msra.mxu1 %v348_v14 }
  0x2b   : > { %654 = vmatpush.msra.mxu2 %v347_v15  ;;  %655 = vmatpush.msra.mxu3 %v347_v15 }
  0x2c   : > { %391 = vmatmul.f32.vlgmr.msra.gmra.mxu2 %v343_v16  ;;  %397 = vmatmul.f32.vlgmr.msra.gmra.mxu3 %v345_v17 }
  0x2d   : > { %378 = vmatpush.msra.mxu0 %v347_v15  ;;  %653 = vmatpush.msra.mxu1 %v347_v15 }
  0x2e   : > { %379 = vmatmul.f32.vlgmr.msra.gmra.mxu0 %v339_v18  ;;  %385 = vmatmul.f32.vlgmr.msra.gmra.mxu1 %v341_v19 }
  0x34   : > { %394 = vmatmul.f32.gmra.mxu2 %v344_v20  ;;  %400 = vmatmul.f32.gmra.mxu3 %v346_v21 }
  0x36   : > { %382 = vmatmul.f32.gmra.mxu0 %v340_v22  ;;  %388 = vmatmul.f32.gmra.mxu1 %v342_v23 }
  0xab   : > { %v380_v25 = vpop.f32.mrf.mxu0  ;;  %v386_v27 = vpop.f32.mrf.mxu1 }
  0xac   : > { %v435_v29 = vadd.f32 %v680_v24, %v380_v25  ;;  %v437_v30 = vadd.f32 %v680_v24, %v386_v27 }
  0xae   : > { %v451_v31 = vadd.f32 %v443_v26, %v435_v29  ;;  %v453_v32 = vadd.f32 %v445_v28, %v437_v30 }
  0xaf   : > { %v392_v33 = vpop.f32.mrf.mxu2  ;;  %v398_v35 = vpop.f32.mrf.mxu3 }
  0xb0   : > { %459 = vst [vmem:[%s820_s14] sm:$0xff] %v451_v31  ;;  %v439_v37 = vadd.f32 %v680_v24, %v392_v33  ;;  %v441_v38 = vadd.f32 %v680_v24, %v398_v35 }
  0xb1   : > { %461 = vst [vmem:[%s820_s14 + $0x10] sm:$0xff] %v453_v32 }
  0xb2   : > { %v455_v39 = vadd.f32 %v447_v34, %v439_v37  ;;  %v457_v40 = vadd.f32 %v449_v36, %v441_v38 }
  0xb3   : > { %v383_v41 = vpop.f32.mrf.mxu0  ;;  %v389_v43 = vpop.f32.mrf.mxu1 }
  0xb4   : > { %463 = vst [vmem:[%s820_s14 + $0x20] sm:$0xff] %v455_v39  ;;  %v436_v45 = vadd.f32 %v680_v24, %v383_v41  ;;  %v438_v46 = vadd.f32 %v680_v24, %v389_v43 }
  0xb5   : > { %465 = vst [vmem:[%s820_s14 + $0x30] sm:$0xff] %v457_v40 }
  0xb6   : > { %v452_v47 = vadd.f32 %v444_v42, %v436_v45  ;;  %v454_v48 = vadd.f32 %v446_v44, %v438_v46 }
  0xb7   : > { %v395_v49 = vpop.f32.mrf.mxu2  ;;  %v401_v51 = vpop.f32.mrf.mxu3 }
  0xb8   : > { %460 = vst [vmem:[%s820_s14 + $0x8] sm:$0xff] %v452_v47  ;;  %v440_v53 = vadd.f32 %v680_v24, %v395_v49  ;;  %v442_v54 = vadd.f32 %v680_v24, %v401_v51 }
  0xb9   : > { %462 = vst [vmem:[%s820_s14 + $0x18] sm:$0xff] %v454_v48 }
  0xba   : > { %v456_v55 = vadd.f32 %v448_v50, %v440_v53  ;;  %v458_v56 = vadd.f32 %v450_v52, %v442_v54 }
  0xbc   : > { %464 = vst [vmem:[%s820_s14 + $0x28] sm:$0xff] %v456_v55 }
  0xbd   : > { %466 = vst [vmem:[%s820_s14 + $0x38] sm:$0xff] %v458_v56 }
  0xbe PF: > { %s14_s17 = sadd.s32 1, %s703_s17   ;;  %s850_s15 = smov %s699_s16 }
  0xbf   : > { %p11_p5 = scmp.ge.s32.totalorder %s14_s17, 5   ;;  %s851_s16 = smov %s853_s18 }
  0xc1   :  { %13 = sbr.rel (!%p11_p5) target bundleno = 2 (0x2), region = 83 }

// kernel: cf_tower_s2_forward.12
= control target key start
LH: loop header
LB: loop body
LE: loop exit
PB: predicated region body
PF: predicated region fallthrough
CT: control target
= control target key end

     0   :  { %s1268_s18 = smov 0   ;;  %s1270_s19 = smov 0   ;;  %s1671_s0 = inlined_call_operand.vmem [shape: f32[192,128], index: 0, kind: input, shape index: {}]   ;;  %s1672_s1 = inlined_call_operand.vmem [shape: f32[1,128], index: 1, kind: input, shape index: {}]   ;;  %s1673_s2 = inlined_call_operand.vmem [shape: f32[1,128], index: 2, kind: input, shape index: {}]   ;;  %s1674_s3 = inlined_call_operand.vmem [shape: f32[128,512], index: 3, kind: input, shape index: {}]   ;;  %s1675_s4 = inlined_call_operand.vmem [shape: f32[1,512], index: 4, kind: input, shape index: {}]   ;;  %s1676_s5 = inlined_call_operand.vmem [shape: f32[192,512], index: 5, kind: output, shape index: {}]  }
   0x1   :  { %s1272_s20 = smov 0   ;;  %s1274_s21 = smov 0  }
   0x2   :  { %s1276_s22 = smov 0   ;;  %s1278_s23 = smov 0  }
   0x3   :  { %s1280_s24 = smov 0   ;;  %s1282_s25 = smov 0  }
   0x4   :  { %s1284_s26 = smov 0  }
   0x5 LB: > { %s965_s27 = sadd.s32 4294967295, %s1235_s26   ;;  %s24_s28 = sadd.s32 1, %s1227_s24  ;;  %s1235_s26 = sphi %s1284_s26, %s15_s26   ;;  %s1231_s25 = sphi %s1282_s25, %s1693_s25   ;;  %s1227_s24 = sphi %s1280_s24, %s1692_s24   ;;  %s1223_s23 = sphi %s1278_s23, %s1691_s23   ;;  %s1219_s22 = sphi %s1276_s22, %s1690_s22   ;;  %s1215_s21 = sphi %s1274_s21, %s1689_s21   ;;  %s1211_s20 = sphi %s1272_s20, %s1688_s20   ;;  %s1207_s19 = sphi %s1270_s19, %s1687_s19   ;;  %s1203_s18 = sphi %s1268_s18, %s1686_s18  }
   0x6   : > { %p25_p0 = scmp.ge.s32.totalorder %s24_s28, 4  ;;  %s27_s29 = sadd.s32 1, %s1231_s25 }
   0x7   : > { %s102_s30 = sadd.s32 1, %s1215_s21  ;;  %p109_p1 = scmp.ne.s32.totalorder %s1215_s21, %s1211_s20 }
   0x8   : > { %s1695_s28 = smov (%p25_p0, %s24_s28), 0  ;;  %s1697_s29 = smov (!%p25_p0, %s27_s29), %s1231_s25 }
   0x9   : > { %s99_s6 = ssub.s32 %s1227_s24, %s1695_s28  ;;  %p110_p2 = scmp.eq.s32.totalorder %s1235_s26, 0 }
   0xa   : > { %p29_p3 = scmp.ge.s32.totalorder %s1697_s29, 3  ;;  %p100_p4 = scmp.eq.s32.totalorder %s99_s6, 0 }
   0xb   : > { %p111_p5 = por %p110_p2, %p109_p1  ;;  %s156_s7 = sadd.s32 1, %s1207_s19 }
   0xc   : > { %s1699_s29 = smov (%p29_p3, %s1697_s29), 0  ;;  %p166_p6 = scmp.ne.s32.totalorder %s1207_s19, %s1203_s18 }
   0xd   : > { %s1329_s8 = scalar_select %p100_p4, %s1215_s21, %s102_s30  }
   0xe   : > { %s151_s9 = ssub.s32 %s1231_s25, %s1699_s29  ;;  %p167_p7 = scmp.eq.s32.totalorder %s965_s27, 11 }
   0xf   : > { %s153_s10 = sor.u32 %s151_s9, %s99_s6  ;;  %p968_p10 = scmp.ge.s32.totalorder %s1235_s26, 12 }
  0x10   : > { %p154_p8 = scmp.eq.s32.totalorder %s153_s10, 0  ;;  %p1335_p9 = por %p167_p7, %p166_p6 }
  0x11   : > { %195 = sbr.rel (%p968_p10) target bundleno = 42 (0x2a), region = 24 }
  0x12   : > { %s1340_s12 = scalar_select %p154_p8, %s1207_s19, %s156_s7  }
  0x16   : > { %207 = sbr.rel (!%p111_p5) target bundleno = 42 (0x2a), region = 32  ;;  %s209_s13 = sand.u32 (%p111_p5), 1, %s1215_s21  }
  0x17   : > { %s970_s14 = sshll.u32 (%p111_p5), %s1227_s24, 3  ;;  %s969_s15 = sshll.u32 (%p111_p5), %s209_s13, 7 }
  0x18   : > { %s1348_s27 = scalar_lea.vmem (%p111_p5), %s1674_s3, %s970_s14  ;;  %s211_s30 = scalar_lea.vmem (%p111_p5), [#allocation2], %s969_s15 }
  0x19   : > { %v272_v0 = vld [vmem:[%s1348_s27] sm:$0xff] (%p111_p5) }
  0x1a   : > { %v274_v1 = vld [vmem:[%s1348_s27 + $0x20] sm:$0xff] (%p111_p5)  ;;  %273 = vst [vmem:[%s211_s30] sm:$0xff] (%p111_p5), %v272_v0 }
  0x1b   : > { %v276_v2 = vld [vmem:[%s1348_s27 + $0x40] sm:$0xff]  ;;  %275 = vst [vmem:[%s211_s30 + $0x8] sm:$0xff] %v274_v1 }
  0x1c   : > { %v278_v3 = vld [vmem:[%s1348_s27 + $0x60] sm:$0xff]  ;;  %277 = vst [vmem:[%s211_s30 + $0x10] sm:$0xff] %v276_v2 }
  0x1d   : > { %v280_v4 = vld [vmem:[%s1348_s27 + $0x80] sm:$0xff]  ;;  %279 = vst [vmem:[%s211_s30 + $0x18] sm:$0xff] %v278_v3 }
  0x1e   : > { %v282_v5 = vld [vmem:[%s1348_s27 + $0xa0] sm:$0xff]  ;;  %281 = vst [vmem:[%s211_s30 + $0x20] sm:$0xff] %v280_v4 }
  0x1f   : > { %v284_v6 = vld [vmem:[%s1348_s27 + $0xc0] sm:$0xff]  ;;  %283 = vst [vmem:[%s211_s30 + $0x28] sm:$0xff] %v282_v5 }
  0x20   : > { %v286_v7 = vld [vmem:[%s1348_s27 + $0xe0] sm:$0xff]  ;;  %285 = vst [vmem:[%s211_s30 + $0x30] sm:$0xff] %v284_v6 }
  0x21   : > { %v288_v8 = vld [vmem:[%s1348_s27 + $0x100] sm:$0xff]  ;;  %287 = vst [vmem:[%s211_s30 + $0x38] sm:$0xff] %v286_v7 }
  0x22   : > { %v290_v9 = vld [vmem:[%s1348_s27 + $0x120] sm:$0xff]  ;;  %289 = vst [vmem:[%s211_s30 + $0x40] sm:$0xff] %v288_v8 }
  0x23   : > { %v292_v10 = vld [vmem:[%s1348_s27 + $0x140] sm:$0xff]  ;;  %291 = vst [vmem:[%s211_s30 + $0x48] sm:$0xff] %v290_v9 }
  0x24   : > { %v294_v11 = vld [vmem:[%s1348_s27 + $0x160] sm:$0xff]  ;;  %293 = vst [vmem:[%s211_s30 + $0x50] sm:$0xff] %v292_v10 }
  0x25   : > { %v296_v12 = vld [vmem:[%s1348_s27 + $0x180] sm:$0xff]  ;;  %295 = vst [vmem:[%s211_s30 + $0x58] sm:$0xff] %v294_v11 }
  0x26   : > { %v298_v13 = vld [vmem:[%s1348_s27 + $0x1a0] sm:$0xff]  ;;  %297 = vst [vmem:[%s211_s30 + $0x60] sm:$0xff] %v296_v12 }
  0x27   : > { %v300_v14 = vld [vmem:[%s1348_s27 + $0x1c0] sm:$0xff]  ;;  %299 = vst [vmem:[%s211_s30 + $0x68] sm:$0xff] %v298_v13 }
  0x28   : > { %v302_v15 = vld [vmem:[%s1348_s27 + $0x1e0] sm:$0xff]  ;;  %301 = vst [vmem:[%s211_s30 + $0x70] sm:$0xff] %v300_v14 }
  0x29   : > { %303 = vst [vmem:[%s211_s30 + $0x78] sm:$0xff] %v302_v15 }
  0x2a PF: > { %p971_p11 = scmp.ge.s32.totalorder %s1235_s26, 1  ;;  %p314_p12 = scmp.lt.s32.totalorder %s1235_s26, 13 }
  0x2c   : > { %p315_p13 = pnand %p971_p11, %p314_p12 }
  0x2d   : > { %s974_s6 = sshll.u32 (!%p315_p13), %s1223_s23, 3  ;;  %s321_s14 = sand.u32 (!%p315_p13), 1, %s1211_s20  }
  0x2e   : > { %318 = sbr.rel (%p315_p13) target bundleno = 522 (0x20a), region = 74  ;;  %p356_p0 = scmp.lt.s32.totalorder (!%p315_p13), %s974_s6, 23 }
  0x2f   : > { %s972_s15 = sshll.u32 (!%p315_p13), %s321_s14, 7  ;;  %p361_p1 = scmp.lt.s32.totalorder (!%p315_p13), %s1219_s22, 3 }
  0x30   : > { %s1375_s16 = scalar_lea.vmem (!%p315_p13), [#allocation2], %s972_s15  ;;  %s352_s15 = sand.u32 (!%p315_p13), 1, %s1203_s18  }
  0x33   : > { %s1701_s6 = smov (!%p356_p0, %s974_s6), 23  ;;  %v1237_v24 = vmov 128.0   ;;  %v579_v31 = vld [vmem:[%s1375_s16 + $0x78] sm:$0xff]  ;;  %v578_v0 = vld [vmem:[%s1375_s16 + $0x70] sm:$0xff]  ;;  %v577_v1 = vld [vmem:[%s1375_s16 + $0x68] sm:$0xff] }
  0x34   : > { %s975_s7 = sshll.u32 %s1701_s6, 3  ;;  %1115 = vrcp.f32 %v1237_v24  ;;  %584 = vmatpush.msra.mxu0 %v579_v31  ;;  %992 = vmatpush.msra.mxu2 %v579_v31  ;;  %v576_v2 = vld [vmem:[%s1375_s16 + $0x60] sm:$0xff]  ;;  %v575_v3 = vld [vmem:[%s1375_s16 + $0x58] sm:$0xff]  ;;  %v574_v4 = vld [vmem:[%s1375_s16 + $0x50] sm:$0xff] }
  0x35   : > { %s359_s13 = scalar_lea.vmem %s1671_s0, %s975_s7  ;;  %991 = vmatpush.msra.mxu1 %v579_v31  ;;  %993 = vmatpush.msra.mxu3 %v579_v31  ;;  %v573_v5 = vld [vmem:[%s1375_s16 + $0x48] sm:$0xff]  ;;  %v572_v6 = vld [vmem:[%s1375_s16 + $0x40] sm:$0xff]  ;;  %v571_v7 = vld [vmem:[%s1375_s16 + $0x38] sm:$0xff] }
  0x36   : > { %v370_v16 = vld [vmem:[%s359_s13 + $0x28] sm:$0xff]  ;;  %v369_v17 = vld [vmem:[%s359_s13 + $0x20] sm:$0xff]  ;;  %v372_v19 = vld [vmem:[%s359_s13 + $0x38] sm:$0xff]  ;;  %s1420_s20 = scalar_select %p361_p1, %s1219_s22, 3  ;;  %585 = vmatpush.msra.mxu0 %v578_v0  ;;  %995 = vmatpush.msra.mxu2 %v578_v0 }
  0x37   : > { %v365_v18 = vld [vmem:[%s359_s13] sm:$0xff]  ;;  %383 = vadd.xlane.f32.xlu2 %v370_v16  ;;  %381 = vadd.xlane.f32.xlu0 %v369_v17  ;;  %v371_v20 = vld [vmem:[%s359_s13 + $0x30] sm:$0xff]  ;;  %v366_v22 = vld [vmem:[%s359_s13 + $0x8] sm:$0xff] }
  0x38   : > { %373 = vadd.xlane.f32.xlu1 %v365_v18  ;;  %v367_v21 = vld [vmem:[%s359_s13 + $0x10] sm:$0xff]  ;;  %v368_v23 = vld [vmem:[%s359_s13 + $0x18] sm:$0xff]  ;;  %s363_s30 = scalar_lea.vmem %s1675_s4, %s1420_s20  ;;  %994 = vmatpush.msra.mxu1 %v578_v0  ;;  %v569_v9 = vld [vmem:[%s1375_s16 + $0x28] sm:$0xff]  ;;  %s990_s20 = sshll.u32 (%p1335_p9), %s1223_s23, 5 }
  0x39   : > { %996 = vmatpush.msra.mxu3 %v578_v0  ;;  %586 = vmatpush.msra.mxu0 %v577_v1  ;;  %v570_v8 = vld [vmem:[%s1375_s16 + $0x30] sm:$0xff]  ;;  %v568_v10 = vld [vmem:[%s1375_s16 + $0x20] sm:$0xff]  ;;  %v567_v11 = vld [vmem:[%s1375_s16 + $0x18] sm:$0xff]  ;;  %s810_s17 = sadd.s32 (%p1335_p9), %s1219_s22, %s990_s20 }
  0x3a   : > { %v1116_v25 = vpop.eup %1115  ;;  %998 = vmatpush.msra.mxu2 %v577_v1  ;;  %997 = vmatpush.msra.mxu1 %v577_v1  ;;  %v566_v12 = vld [vmem:[%s1375_s16 + $0x10] sm:$0xff]  ;;  %v565_v13 = vld [vmem:[%s1375_s16 + $0x8] sm:$0xff]  ;;  %v564_v14 = vld [vmem:[%s1375_s16] sm:$0xff]  ;;  %s973_s16 = sshll.u32 %s352_s15, 6  ;;  %s987_s27 = sshll.u32 (%p1335_p9), %s810_s17, 3 }
  0x3b   : > { %v390_v26 = vmul.f32 128.0, %v1116_v25  ;;  %vm394_vm0 = vweird.f32 %v1116_v25  ;;  %999 = vmatpush.msra.mxu3 %v577_v1  ;;  %587 = vmatpush.msra.mxu0 %v576_v2  ;;  %v1475_v0 = vld [vmem:[%s1672_s1] ss:$0 sm:$0xff]  ;;  %s1581_s18 = scalar_lea.vmem [#allocation3], %s973_s16  ;;  %s812_s11 = scalar_lea.vmem (%p1335_p9), %s1676_s5, %s987_s27 }
  0x3c   : > { %1001 = vmatpush.msra.mxu2 %v576_v2  ;;  %1000 = vmatpush.msra.mxu1 %v576_v2 }
  0x3d   : > { %v391_v27 = vsub.f32 1.0, %v390_v26  ;;  %1002 = vmatpush.msra.mxu3 %v576_v2  ;;  %588 = vmatpush.msra.mxu0 %v575_v3 }
  0x3e   : > { %1004 = vmatpush.msra.mxu2 %v575_v3  ;;  %1003 = vmatpush.msra.mxu1 %v575_v3 }
  0x3f   : > { %387 = vadd.xlane.f32.xlu2 %v372_v19  ;;  %385 = vadd.xlane.f32.xlu0 %v371_v20  ;;  %v392_v28 = vmul.f32 %v1116_v25, %v391_v27 }
  0x40   : > { %377 = vadd.xlane.f32.xlu1 %v367_v21  ;;  %1005 = vmatpush.msra.mxu3 %v575_v3 }
  0x41   : > { %v393_v29 = vadd.f32 %v1116_v25, %v392_v28  ;;  %589 = vmatpush.msra.mxu0 %v574_v4  ;;  %1007 = vmatpush.msra.mxu2 %v574_v4 }
  0x42   : > { %1006 = vmatpush.msra.mxu1 %v574_v4  ;;  %1008 = vmatpush.msra.mxu3 %v574_v4 }
  0x43   : > { %v1373_v30 = vsel %vm394_vm0, %v1116_v25, %v393_v29  ;;  %590 = vmatpush.msra.mxu0 %v573_v5  ;;  %1010 = vmatpush.msra.mxu2 %v573_v5 }
  0x44   : > { %1009 = vmatpush.msra.mxu1 %v573_v5  ;;  %1011 = vmatpush.msra.mxu3 %v573_v5 }
  0x45   : > { %591 = vmatpush.msra.mxu0 %v572_v6  ;;  %1013 = vmatpush.msra.mxu2 %v572_v6 }
  0x46   : > { %1012 = vmatpush.msra.mxu1 %v572_v6  ;;  %1014 = vmatpush.msra.mxu3 %v572_v6 }
  0x47   : > { %375 = vadd.xlane.f32.xlu0 %v366_v22  ;;  %592 = vmatpush.msra.mxu0 %v571_v7 }
  0x48   : > { %379 = vadd.xlane.f32.xlu1 %v368_v23  ;;  %1016 = vmatpush.msra.mxu2 %v571_v7 }
  0x49   : > { %1015 = vmatpush.msra.mxu1 %v571_v7  ;;  %1017 = vmatpush.msra.mxu3 %v571_v7 }
  0x4a   : > { %593 = vmatpush.msra.mxu0 %v570_v8  ;;  %1019 = vmatpush.msra.mxu2 %v570_v8 }
  0x4b   : > { %1018 = vmatpush.msra.mxu1 %v570_v8  ;;  %1020 = vmatpush.msra.mxu3 %v570_v8 }
  0x4c   : > { %594 = vmatpush.msra.mxu0 %v569_v9  ;;  %1022 = vmatpush.msra.mxu2 %v569_v9 }
  0x4d   : > { %1021 = vmatpush.msra.mxu1 %v569_v9  ;;  %1023 = vmatpush.msra.mxu3 %v569_v9 }
  0x4e   : > { %595 = vmatpush.msra.mxu0 %v568_v10  ;;  %1025 = vmatpush.msra.mxu2 %v568_v10 }
  0x4f   : > { %1024 = vmatpush.msra.mxu1 %v568_v10  ;;  %1026 = vmatpush.msra.mxu3 %v568_v10  ;;  %v1486_v10 = vld [vmem:[%s1673_s2] ss:$0 sm:$0xff] }
  0x50   : > { %596 = vmatpush.msra.mxu0 %v567_v11  ;;  %1028 = vmatpush.msra.mxu2 %v567_v11 }
  0x51   : > { %1027 = vmatpush.msra.mxu1 %v567_v11  ;;  %1029 = vmatpush.msra.mxu3 %v567_v11 }
  0x52   : > { %597 = vmatpush.msra.mxu0 %v566_v12  ;;  %1031 = vmatpush.msra.mxu2 %v566_v12 }
  0x53   : > { %1030 = vmatpush.msra.mxu1 %v566_v12  ;;  %1032 = vmatpush.msra.mxu3 %v566_v12 }
  0x54   : > { %598 = vmatpush.msra.mxu0 %v565_v13  ;;  %1034 = vmatpush.msra.mxu2 %v565_v13 }
  0x55   : > { %1033 = vmatpush.msra.mxu1 %v565_v13  ;;  %1035 = vmatpush.msra.mxu3 %v565_v13 }
  0x56   : > { %599 = vmatpush.msra.mxu0 %v564_v14  ;;  %1037 = vmatpush.msra.mxu2 %v564_v14 }
  0x57   : > { %1036 = vmatpush.msra.mxu1 %v564_v14  ;;  %1038 = vmatpush.msra.mxu3 %v564_v14 }
  0xaa   : > { %v384_v32 = vpop.xlane.xlu2 %383  ;;  %v382_v33 = vpop.xlane.xlu0 %381 }
  0xab   : > { %v400_v34 = vmul.f32 %v1373_v30, %v382_v33  ;;  %v374_v35 = vpop.xlane.xlu1 %373  ;;  %v401_v50 = vmul.f32 %v1373_v30, %v384_v32 }
  0xac   : > { %v396_v36 = vmul.f32 %v1373_v30, %v374_v35 }
  0xad   : > { %v1380_v37 = vsub.f32 %v369_v17, %v400_v34  ;;  %v1404_v55 = vsub.f32 %v370_v16, %v401_v50 }
  0xae   : > { %v1382_v38 = vsub.f32 %v365_v18, %v396_v36 }
  0xaf   : > { %v416_v39 = vmul.f32 %v1380_v37, %v1380_v37  ;;  %v417_v60 = vmul.f32 %v1404_v55, %v1404_v55 }
  0xb0   : > { %v412_v40 = vmul.f32 %v1382_v38, %v1382_v38 }
  0xb1   : > { %428 = vadd.xlane.f32.xlu2 %v416_v39 }
  0xb2   : > { %420 = vadd.xlane.f32.xlu1 %v412_v40  ;;  %v388_v41 = vpop.xlane.xlu2 %387  ;;  %v386_v42 = vpop.xlane.xlu0 %385 }
  0xb3   : > { %v403_v43 = vmul.f32 %v1373_v30, %v388_v41  ;;  %v402_v44 = vmul.f32 %v1373_v30, %v386_v42  ;;  %v378_v45 = vpop.xlane.xlu1 %377 }
  0xb4   : > { %v398_v46 = vmul.f32 %v1373_v30, %v378_v45 }
  0xb5   : > { %v1391_v47 = vsub.f32 %v372_v19, %v403_v43  ;;  %v1393_v48 = vsub.f32 %v371_v20, %v402_v44 }
  0xb6   : > { %v1395_v49 = vsub.f32 %v367_v21, %v398_v46 }
  0xb7   : > { %v418_v51 = vmul.f32 %v1393_v48, %v1393_v48  ;;  %v419_v52 = vmul.f32 %v1391_v47, %v1391_v47 }
  0xb8   : > { %v414_v53 = vmul.f32 %v1395_v49, %v1395_v49 }
  0xb9   : > { %432 = vadd.xlane.f32.xlu0 %v418_v51 }
  0xba   : > { %434 = vadd.xlane.f32.xlu1 %v419_v52  ;;  %424 = vadd.xlane.f32.xlu2 %v414_v53  ;;  %v376_v54 = vpop.xlane.xlu0 %375 }
  0xbb   : > { %v397_v56 = vmul.f32 %v1373_v30, %v376_v54  ;;  %v380_v57 = vpop.xlane.xlu1 %379 }
  0xbc   : > { %v399_v59 = vmul.f32 %v1373_v30, %v380_v57 }
  0xbd   : > { %v1407_v58 = vsub.f32 %v366_v22, %v397_v56 }
  0xbe   : > { %v1414_v62 = vsub.f32 %v368_v23, %v399_v59 }
  0xbf   : > { %v413_v61 = vmul.f32 %v1407_v58, %v1407_v58 }
  0xc0   : > { %v415_v63 = vmul.f32 %v1414_v62, %v1414_v62 }
  0xc1   : > { %430 = vadd.xlane.f32.xlu0 %v417_v60 }
  0xc2   : > { %422 = vadd.xlane.f32.xlu2 %v413_v61 }
  0xc9   : > { %426 = vadd.xlane.f32.xlu0 %v415_v63 }
 0x124   : > { %v429_v15 = vpop.xlane.xlu2 %428 }
 0x125   : > { %v440_v16 = vmul.f32 %v429_v15, %v1373_v30  ;;  %v421_v17 = vpop.xlane.xlu1 %420 }
 0x126   : > { %v436_v18 = vmul.f32 %v421_v17, %v1373_v30 }
 0x127   : > { %v448_v19 = vadd.f32 1e-05, %v440_v16 }
 0x128   : > { %v444_v20 = vadd.f32 1e-05, %v436_v18 }
 0x129   : > { %1117 = vrsqrt.f32 %v448_v19  ;;  %vm498_vm4 = vweird.f32 %v448_v19 }
 0x12a   : > { %1119 = vrsqrt.f32 %v444_v20  ;;  %vm458_vm1 = vweird.f32 %v444_v20 }
 0x12c   : > { %v433_v21 = vpop.xlane.xlu0 %432 }
 0x12d   : > { %v442_v22 = vmul.f32 %v433_v21, %v1373_v30  ;;  %v425_v23 = vpop.xlane.xlu2 %424  ;;  %v435_v24 = vpop.xlane.xlu1 %434 }
 0x12e   : > { %v438_v25 = vmul.f32 %v425_v23, %v1373_v30  ;;  %v443_v26 = vmul.f32 %v435_v24, %v1373_v30 }
 0x12f   : > { %v1118_v27 = vpop.eup %1117  ;;  %v1446_v28 = vadd.f32 1e-05, %v442_v22 }
 0x130   : > { %v1120_v29 = vpop.eup %1119  ;;  %v493_v31 = vmul.f32 %v1118_v27, %v448_v19  ;;  %v1448_v32 = vadd.f32 1e-05, %v438_v25  ;;  %v1450_v33 = vadd.f32 1e-05, %v443_v26  ;;  %vm499_vm3 = vweird.f32 %v1118_v27 }
 0x131   : > { %v453_v34 = vmul.f32 %v1120_v29, %v444_v20  ;;  %1121 = vrsqrt.f32 %v1446_v28  ;;  %vm459_vm2 = vweird.f32 %v1120_v29  ;;  %vm500_vm6 = vmor %vm498_vm4, %vm499_vm3  ;;  %vm518_vm7 = vweird.f32 %v1446_v28 }
 0x132   : > { %v494_v35 = vmul.f32 %v1118_v27, %v493_v31  ;;  %1123 = vrsqrt.f32 %v1448_v32  ;;  %vm460_vm5 = vmor %vm458_vm1, %vm459_vm2  ;;  %vm478_vm8 = vweird.f32 %v1448_v32  ;;  %vm528_vm11 = vweird.f32 %v1450_v33 }
 0x133   : > { %v454_v36 = vmul.f32 %v1120_v29, %v453_v34  ;;  %1125 = vrsqrt.f32 %v1450_v33 }
 0x134   : > { %v495_v39 = vmul.f32 0.5, %v494_v35  ;;  %v431_v40 = vpop.xlane.xlu0 %430 }
 0x135   : > { %v455_v41 = vmul.f32 0.5, %v454_v36  ;;  %v441_v42 = vmul.f32 %v431_v40, %v1373_v30  ;;  %v423_v43 = vpop.xlane.xlu2 %422 }
 0x136   : > { %v496_v44 = vsub.f32 1.5, %v495_v39  ;;  %v437_v45 = vmul.f32 %v423_v43, %v1373_v30 }
 0x137   : > { %v1457_v46 = vpop.eup %1121  ;;  %v456_v50 = vsub.f32 1.5, %v455_v41  ;;  %v1459_v51 = vadd.f32 1e-05, %v441_v42 }
 0x138   : > { %v1124_v52 = vpop.eup %1123  ;;  %v497_v53 = vmul.f32 %v1118_v27, %v496_v44  ;;  %v513_v54 = vmul.f32 %v1457_v46, %v1446_v28  ;;  %v1463_v56 = vadd.f32 1e-05, %v437_v45  ;;  %vm519_vm9 = vweird.f32 %v1457_v46 }
 0x139   : > { %v1465_v57 = vpop.eup %1125  ;;  %v457_v59 = vmul.f32 %v1120_v29, %v456_v50  ;;  %v473_v60 = vmul.f32 %v1124_v52, %v1448_v32  ;;  %1127 = vrsqrt.f32 %v1459_v51  ;;  %vm479_vm10 = vweird.f32 %v1124_v52  ;;  %vm1497_vm12 = vmor %vm518_vm7, %vm519_vm9 }
 0x13a   : > { %v514_v61 = vmul.f32 %v1457_v46, %v513_v54  ;;  %v523_v63 = vmul.f32 %v1465_v57, %v1450_v33  ;;  %1129 = vrsqrt.f32 %v1463_v56  ;;  %v501_v7 = vsel %vm500_vm6, %v1118_v27, %v497_v53  ;;  %vm480_vm14 = vmor %vm478_vm8, %vm479_vm10 }
 0x13b   : > { %v474_v1 = vmul.f32 %v1124_v52, %v473_v60  ;;  %v461_v2 = vsel %vm460_vm5, %v1120_v29, %v457_v59  ;;  %v536_v11 = vmul.f32 %v501_v7, %v1380_v37  ;;  %vm529_vm13 = vweird.f32 %v1465_v57 }
 0x13c   : > { %v515_v3 = vmul.f32 0.5, %v514_v61  ;;  %v524_v4 = vmul.f32 %v1465_v57, %v523_v63  ;;  %v427_v5 = vpop.xlane.xlu0 %426  ;;  %v532_v6 = vmul.f32 %v461_v2, %v1382_v38  ;;  %vm1513_vm15 = vmor %vm528_vm11, %vm529_vm13  ;;  %vm508_vm1 = vweird.f32 %v1459_v51 }
 0x13d   : > { %v475_v8 = vmul.f32 0.5, %v474_v1  ;;  %v439_v9 = vmul.f32 %v427_v5, %v1373_v30  ;;  %v548_v17 = vmul.f32 %v1475_v0, %v536_v11  ;;  %vm468_vm2 = vweird.f32 %v1463_v56 }
 0x13e   : > { %v516_v12 = vsub.f32 1.5, %v515_v3  ;;  %v525_v13 = vmul.f32 0.5, %v524_v4  ;;  %v544_v14 = vmul.f32 %v1475_v0, %v532_v6  ;;  %v1114_v6 = vld [vmem:[%s363_s30] ss:$0 sm:$0xff] }
 0x13f   : > { %v1128_v38 = vpop.eup %1127  ;;  %v476_v15 = vsub.f32 1.5, %v475_v8  ;;  %v447_v16 = vadd.f32 1e-05, %v439_v9  ;;  %v560_v26 = vadd.f32 %v1486_v10, %v548_v17 }
 0x140   : > { %v517_v30 = vmul.f32 %v1457_v46, %v516_v12  ;;  %v526_v18 = vsub.f32 1.5, %v525_v13  ;;  %v503_v19 = vmul.f32 %v1128_v38, %v1459_v51  ;;  %v1130_v37 = vpop.eup %1129  ;;  %v556_v22 = vadd.f32 %v1486_v10, %v544_v14 }
 0x141   : > { %v477_v21 = vmul.f32 %v1124_v52, %v476_v15  ;;  %1131 = vrsqrt.f32 %v447_v16  ;;  %v463_v25 = vmul.f32 %v1130_v37, %v1463_v56  ;;  %vm509_vm0 = vweird.f32 %v1128_v38  ;;  %612 = vmatmul.f32.vlgmr.msra.gmra.mxu2 %v560_v26 }
 0x142   : > { %v527_v23 = vmul.f32 %v1465_v57, %v526_v18  ;;  %v504_v24 = vmul.f32 %v1128_v38, %v503_v19  ;;  %600 = vmatmul.f32.vlgmr.msra.gmra.mxu0 %v556_v22  ;;  %v521_v28 = vsel %vm1497_vm12, %v1457_v46, %v517_v30  ;;  %vm469_vm3 = vweird.f32 %v1130_v37  ;;  %vm510_vm4 = vmor %vm508_vm1, %vm509_vm0 }
 0x143   : > { %v481_v27 = vsel %vm480_vm14, %v1124_v52, %v477_v21  ;;  %v464_v32 = vmul.f32 %v1130_v37, %v463_v25  ;;  %v538_v35 = vmul.f32 %v521_v28, %v1393_v48  ;;  %vm470_vm5 = vmor %vm468_vm2, %vm469_vm3  ;;  %vm488_vm7 = vweird.f32 %v447_v16 }
 0x144   : > { %v505_v31 = vmul.f32 0.5, %v504_v24  ;;  %v534_v34 = vmul.f32 %v481_v27, %v1395_v49  ;;  %v531_v36 = vsel %vm1513_vm15, %v1465_v57, %v527_v23 }
 0x145   : > { %v465_v40 = vmul.f32 0.5, %v464_v32  ;;  %v550_v41 = vmul.f32 %v1475_v0, %v538_v35  ;;  %v539_v46 = vmul.f32 %v531_v36, %v1391_v47 }
 0x146   : > { %v506_v39 = vsub.f32 1.5, %v505_v31  ;;  %v546_v33 = vmul.f32 %v1475_v0, %v534_v34 }
 0x147   : > { %v1132_v42 = vpop.eup %1131  ;;  %v466_v43 = vsub.f32 1.5, %v465_v40  ;;  %v562_v45 = vadd.f32 %v1486_v10, %v550_v41  ;;  %v551_v60 = vmul.f32 %v1475_v0, %v539_v46 }
 0x148   : > { %v507_v49 = vmul.f32 %v1128_v38, %v506_v39  ;;  %v483_v48 = vmul.f32 %v1132_v42, %v447_v16  ;;  %v558_v44 = vadd.f32 %v1486_v10, %v546_v33  ;;  %vm489_vm6 = vweird.f32 %v1132_v42 }
 0x149   : > { %v467_v50 = vmul.f32 %v1130_v37, %v466_v43  ;;  %618 = vmatmul.f32.vlgmr.msra.gmra.mxu3 %v562_v45  ;;  %vm490_vm8 = vmor %vm488_vm7, %vm489_vm6  ;;  %v563_v2 = vadd.f32 %v1486_v10, %v551_v60 }
 0x14a   : > { %v484_v52 = vmul.f32 %v1132_v42, %v483_v48  ;;  %v511_v53 = vsel %vm510_vm4, %v1128_v38, %v507_v49  ;;  %606 = vmatmul.f32.vlgmr.msra.gmra.mxu1 %v558_v44 }
 0x14b   : > { %v537_v51 = vmul.f32 %v511_v53, %v1404_v55  ;;  %v471_v56 = vsel %vm470_vm5, %v1130_v37, %v467_v50 }
 0x14c   : > { %v485_v54 = vmul.f32 0.5, %v484_v52  ;;  %v533_v57 = vmul.f32 %v471_v56, %v1407_v58 }
 0x14d   : > { %v549_v59 = vmul.f32 %v1475_v0, %v537_v51 }
 0x14e   : > { %v486_v61 = vsub.f32 1.5, %v485_v54  ;;  %v545_v47 = vmul.f32 %v1475_v0, %v533_v57 }
 0x14f   : > { %v561_v63 = vadd.f32 %v1486_v10, %v549_v59 }
 0x150   : > { %v487_v1 = vmul.f32 %v1132_v42, %v486_v61  ;;  %v557_v55 = vadd.f32 %v1486_v10, %v545_v47 }
 0x151   : > { %615 = vmatmul.f32.gmra.mxu2 %v561_v63  ;;  %621 = vmatmul.f32.gmra.mxu3 %v563_v2 }
 0x152   : > { %v491_v58 = vsel %vm490_vm8, %v1132_v42, %v487_v1  ;;  %603 = vmatmul.f32.gmra.mxu0 %v557_v55 }
 0x153   : > { %v535_v3 = vmul.f32 %v491_v58, %v1414_v62 }
 0x155   : > { %v547_v4 = vmul.f32 %v1475_v0, %v535_v3 }
 0x157   : > { %v559_v5 = vadd.f32 %v1486_v10, %v547_v4 }
 0x159   : > { %609 = vmatmul.f32.gmra.mxu1 %v559_v5 }
 0x1bf   : > { %v601_v7 = vpop.f32.mrf.mxu0 }
 0x1c0   : > { %v1545_v8 = vadd.f32 %v1114_v6, %v601_v7 }
 0x1c2   : > { %v976_v9 = vmul.f32 -1.702, %v1545_v8 }
 0x1c4   : > { %v641_v11 = vmul.f32 1.442695, %v976_v9  ;;  %v613_v12 = vpop.f32.mrf.mxu2 }
 0x1c5   : > { %v1548_v62 = vadd.f32 %v1114_v6, %v613_v12 }
 0x1c6   : > { %1133 = vpow2.f32 %v641_v11 }
 0x1c7   : > { %v607_v13 = vpop.f32.mrf.mxu1  ;;  %v980_v10 = vmul.f32 -1.702, %v1548_v62 }
 0x1c8   : > { %v1550_v0 = vadd.f32 %v1114_v6, %v607_v13 }
 0x1c9   : > { %v649_v15 = vmul.f32 1.442695, %v980_v10 }
 0x1ca   : > { %v978_v14 = vmul.f32 -1.702, %v1550_v0 }
 0x1cb   : > { %1135 = vpow2.f32 %v649_v15 }
 0x1cc   : > { %v1134_v38 = vpop.eup %1133  ;;  %v645_v16 = vmul.f32 1.442695, %v978_v14  ;;  %v619_v30 = vpop.f32.mrf.mxu3 }
 0x1cd   : > { %v657_v17 = vadd.f32 1.0, %v1134_v38  ;;  %v1554_v18 = vadd.f32 %v1114_v6, %v619_v30 }
 0x1cf   : > { %1137 = vrcp.f32 %v657_v17  ;;  %v604_v19 = vpop.f32.mrf.mxu0  ;;  %v982_v37 = vmul.f32 -1.702, %v1554_v18  ;;  %v676_v41 = vand.u32 2147483648, %v657_v17  ;;  %v674_v43 = vand.u32 2147483647, %v657_v17 }
 0x1d0   : > { %1139 = vpow2.f32 %v645_v16  ;;  %v1557_v20 = vadd.f32 %v1114_v6, %v604_v19  ;;  %vm670_vm10 = vweird.f32 %v657_v17 }
 0x1d1   : > { %v653_v21 = vmul.f32 1.442695, %v982_v37  ;;  %v1136_v24 = vpop.eup %1135  ;;  %v677_v53 = vor.u32 1.1754944e-38, %v676_v41  ;;  %vm675_vm12 = vcmp.eq.f32.partialorder %v674_v43, 8.507059e+37 }
 0x1d2   : > { %v977_v22 = vmul.f32 -1.702, %v1557_v20  ;;  %v661_v28 = vadd.f32 1.0, %v1136_v24 }
 0x1d3   : > { %1141 = vpow2.f32 %v653_v21 }
 0x1d4   : > { %v616_v23 = vpop.f32.mrf.mxu2  ;;  %v643_v25 = vmul.f32 1.442695, %v977_v22  ;;  %v622_v29 = vpop.f32.mrf.mxu3  ;;  %v734_v56 = vand.u32 2147483647, %v661_v28  ;;  %v736_v55 = vand.u32 2147483648, %v661_v28  ;;  %vm730_vm13 = vweird.f32 %v661_v28 }
 0x1d5   : > { %v1560_v26 = vadd.f32 %v1114_v6, %v616_v23  ;;  %v1138_v27 = vpop.eup %1137  ;;  %v1565_v40 = vadd.f32 %v1114_v6, %v622_v29 }
 0x1d6   : > { %v1140_v31 = vpop.eup %1139  ;;  %v666_v32 = vmul.f32 %v1138_v27, %v657_v17  ;;  %1143 = vpow2.f32 %v643_v25  ;;  %v610_v33 = vpop.f32.mrf.mxu1  ;;  %vm671_vm9 = vweird.f32 %v1138_v27  ;;  %vm1587_vm15 = vcmp.eq.f32.partialorder %v734_v56, 8.507059e+37 }
 0x1d7   : > { %v981_v34 = vmul.f32 -1.702, %v1560_v26  ;;  %1145 = vrcp.f32 %v661_v28  ;;  %v1563_v36 = vadd.f32 1.0, %v1140_v31  ;;  %v983_v44 = vmul.f32 -1.702, %v1565_v40  ;;  %vm672_vm11 = vmor %vm670_vm10, %vm671_vm9 }
 0x1d8   : > { %v667_v35 = vsub.f32 1.0, %v666_v32  ;;  %v1572_v45 = vadd.f32 %v1114_v6, %v610_v33  ;;  %v737_v12 = vor.u32 1.1754944e-38, %v736_v55 }
 0x1d9   : > { %v651_v39 = vmul.f32 1.442695, %v981_v34  ;;  %v1142_v42 = vpop.eup %1141  ;;  %1147 = vrcp.f32 %v1563_v36  ;;  %v655_v60 = vmul.f32 1.442695, %v983_v44  ;;  %v706_v4 = vand.u32 2147483648, %v1563_v36 }
 0x1da   : > { %v668_v49 = vmul.f32 %v1138_v27, %v667_v35  ;;  %v1569_v48 = vadd.f32 1.0, %v1142_v42  ;;  %v979_v61 = vmul.f32 -1.702, %v1572_v45  ;;  %v704_v13 = vand.u32 2147483647, %v1563_v36 }
 0x1db   : > { %1149 = vpow2.f32 %v651_v39  ;;  %vm700_vm2 = vweird.f32 %v1563_v36  ;;  %v707_v16 = vor.u32 1.1754944e-38, %v706_v4 }
 0x1dc   : > { %v1144_v46 = vpop.eup %1143  ;;  %v669_v50 = vadd.f32 %v1138_v27, %v668_v49  ;;  %1151 = vrcp.f32 %v1569_v48  ;;  %v647_v9 = vmul.f32 1.442695, %v979_v61  ;;  %v764_v38 = vand.u32 2147483647, %v1569_v48 }
 0x1dd   : > { %v1146_v52 = vpop.eup %1145  ;;  %v1575_v59 = vadd.f32 1.0, %v1144_v46  ;;  %v766_v21 = vand.u32 2147483648, %v1569_v48  ;;  %vm705_vm5 = vcmp.eq.f32.partialorder %v704_v13, 8.507059e+37  ;;  %vm760_vm6 = vweird.f32 %v1569_v48 }
 0x1de   : > { %v673_v51 = vsel %vm672_vm11, %v1138_v27, %v669_v50  ;;  %v726_v54 = vmul.f32 %v1146_v52, %v661_v28  ;;  %vm731_vm14 = vweird.f32 %v1146_v52  ;;  %vm1603_vm7 = vcmp.eq.f32.partialorder %v764_v38, 8.507059e+37 }
 0x1df   : > { %v678_v57 = vsel %vm675_vm12, %v677_v53, %v673_v51  ;;  %v1148_v47 = vpop.eup %1147  ;;  %1153 = vrcp.f32 %v1575_v59  ;;  %vm732_vm0 = vmor %vm730_vm13, %vm731_vm14  ;;  %v689_v39 = vand.u32 2147483647, %v1575_v59  ;;  %v691_v33 = vand.u32 2147483648, %v1575_v59 }
 0x1e0   : > { %v785_v63 = vmul.f32 %v678_v57, %v1545_v8  ;;  %v727_v1 = vsub.f32 1.0, %v726_v54  ;;  %v696_v58 = vmul.f32 %v1148_v47, %v1563_v36  ;;  %1155 = vpow2.f32 %v655_v60 }
 0x1e1   : > { %v1150_v2 = vpop.eup %1149  ;;  %vm701_vm1 = vweird.f32 %v1148_v47  ;;  %v767_v36 = vor.u32 1.1754944e-38, %v766_v21  ;;  %vm685_vm10 = vweird.f32 %v1575_v59  ;;  %vm690_vm12 = vcmp.eq.f32.partialorder %v689_v39, 8.507059e+37 }
 0x1e2   : > { %793 = vst [vmem:[%s1581_s18] sm:$0xff] %v785_v63  ;;  %v728_v3 = vmul.f32 %v1146_v52, %v727_v1  ;;  %v1585_v5 = vadd.f32 1.0, %v1150_v2  ;;  %v1152_v6 = vpop.eup %1151  ;;  %v697_v8 = vsub.f32 1.0, %v696_v58  ;;  %vm702_vm3 = vmor %vm700_vm2, %vm701_vm1  ;;  %v692_v50 = vor.u32 1.1754944e-38, %v691_v33 }
 0x1e3   : > { %v756_v10 = vmul.f32 %v1152_v6, %v1569_v48  ;;  %vm761_vm4 = vweird.f32 %v1152_v6 }
 0x1e4   : > { %v729_v11 = vadd.f32 %v1146_v52, %v728_v3  ;;  %v698_v14 = vmul.f32 %v1148_v47, %v697_v8  ;;  %1157 = vrcp.f32 %v1585_v5  ;;  %vm762_vm8 = vmor %vm760_vm6, %vm761_vm4  ;;  %v749_v56 = vand.u32 2147483647, %v1585_v5 }
 0x1e5   : > { %v757_v17 = vsub.f32 1.0, %v756_v10  ;;  %v1154_v30 = vpop.eup %1153  ;;  %1159 = vpow2.f32 %v647_v9  ;;  %vm745_vm14 = vweird.f32 %v1585_v5 }
 0x1e6   : > { %v733_v15 = vsel %vm732_vm0, %v1146_v52, %v729_v11  ;;  %v699_v37 = vadd.f32 %v1148_v47, %v698_v14  ;;  %v681_v24 = vmul.f32 %v1154_v30, %v1575_v59  ;;  %v1156_v25 = vpop.eup %1155  ;;  %vm686_vm9 = vweird.f32 %v1154_v30 }
 0x1e7   : > { %v738_v19 = vsel %vm1587_vm15, %v737_v12, %v733_v15  ;;  %v758_v23 = vmul.f32 %v1152_v6, %v757_v17  ;;  %vm687_vm11 = vmor %vm685_vm10, %vm686_vm9  ;;  %v751_v52 = vand.u32 2147483648, %v1585_v5  ;;  %vm750_vm0 = vcmp.eq.f32.partialorder %v749_v56, 8.507059e+37 }
 0x1e8   : > { %v789_v22 = vmul.f32 %v738_v19, %v1548_v62  ;;  %v703_v27 = vsel %vm702_vm3, %v1148_v47, %v699_v37  ;;  %v682_v32 = vsub.f32 1.0, %v681_v24  ;;  %v664_v62 = vadd.f32 1.0, %v1156_v25 }
 0x1e9   : > { %v708_v29 = vsel %vm705_vm5, %v707_v16, %v703_v27  ;;  %v759_v31 = vadd.f32 %v1152_v6, %v758_v23  ;;  %v752_v61 = vor.u32 1.1754944e-38, %v751_v52 }
 0x1ea   : > { %797 = vst [vmem:[%s1581_s18 + $0x20] sm:$0xff] %v789_v22  ;;  %v1158_v34 = vpop.eup %1157  ;;  %v787_v35 = vmul.f32 %v708_v29, %v1550_v0  ;;  %v683_v42 = vmul.f32 %v1154_v30, %v682_v32  ;;  %1161 = vrcp.f32 %v664_v62  ;;  %v779_v3 = vand.u32 2147483647, %v664_v62 }
 0x1eb   : > { %v763_v41 = vsel %vm762_vm8, %v1152_v6, %v759_v31  ;;  %v741_v49 = vmul.f32 %v1158_v34, %v1585_v5  ;;  %v1160_v43 = vpop.eup %1159  ;;  %vm746_vm13 = vweird.f32 %v1158_v34  ;;  %v781_v4 = vand.u32 2147483648, %v664_v62 }
 0x1ec   : > { %795 = vst [vmem:[%s1581_s18 + $0x10] sm:$0xff] %v787_v35  ;;  %v768_v48 = vsel %vm1603_vm7, %v767_v36, %v763_v41  ;;  %v684_v44 = vadd.f32 %v1154_v30, %v683_v42  ;;  %v660_v53 = vadd.f32 1.0, %v1160_v43  ;;  %vm747_vm15 = vmor %vm745_vm14, %vm746_vm13  ;;  %vm775_vm2 = vweird.f32 %v664_v62 }
 0x1ed   : > { %v791_v0 = vmul.f32 %v768_v48, %v1554_v18  ;;  %v742_v46 = vsub.f32 1.0, %v741_v49  ;;  %vm780_vm4 = vcmp.eq.f32.partialorder %v779_v3, 8.507059e+37  ;;  %v782_v8 = vor.u32 1.1754944e-38, %v781_v4 }
 0x1ee   : > { %v688_v51 = vsel %vm687_vm11, %v1154_v30, %v684_v44  ;;  %1163 = vrcp.f32 %v660_v53  ;;  %v721_v9 = vand.u32 2147483648, %v660_v53  ;;  %vm715_vm6 = vweird.f32 %v660_v53 }
 0x1ef   : > { %799 = vst [vmem:[%s1581_s18 + $0x30] sm:$0xff] %v791_v0  ;;  %v743_v54 = vmul.f32 %v1158_v34, %v742_v46  ;;  %v693_v57 = vsel %vm690_vm12, %v692_v50, %v688_v51 }
 0x1f0   : > { %v786_v18 = vmul.f32 %v693_v57, %v1557_v20  ;;  %v1162_v60 = vpop.eup %1161  ;;  %v722_v38 = vor.u32 1.1754944e-38, %v721_v9 }
 0x1f1   : > { %v744_v59 = vadd.f32 %v1158_v34, %v743_v54  ;;  %v771_v63 = vmul.f32 %v1162_v60, %v664_v62  ;;  %vm776_vm1 = vweird.f32 %v1162_v60  ;;  %v863_v37 = vld [vmem:[%s1581_s18 + $0x20] sm:$0xff] (%p1335_p9) }
 0x1f2   : > { %794 = vst [vmem:[%s1581_s18 + $0x8] sm:$0xff] %v786_v18  ;;  %vm777_vm3 = vmor %vm775_vm2, %vm776_vm1 }
 0x1f3   : > { %v748_v47 = vsel %vm747_vm15, %v1158_v34, %v744_v59  ;;  %v772_v2 = vsub.f32 1.0, %v771_v63  ;;  %864 = vst [vmem:[%s812_s11 + $0x80] sm:$0xff] (%p1335_p9), %v863_v37 }
 0x1f4   : > { %v753_v1 = vsel %vm750_vm0, %v752_v61, %v748_v47  ;;  %v1164_v58 = vpop.eup %1163 }
 0x1f5   : > { %v790_v55 = vmul.f32 %v753_v1, %v1560_v26  ;;  %v773_v20 = vmul.f32 %v1162_v60, %v772_v2  ;;  %v711_v6 = vmul.f32 %v1164_v58, %v660_v53  ;;  %vm716_vm5 = vweird.f32 %v1164_v58 }
 0x1f6   : > { %v719_v26 = vand.u32 2147483647, %v660_v53  ;;  %vm717_vm7 = vmor %vm715_vm6, %vm716_vm5  ;;  %v867_v22 = vld [vmem:[%s1581_s18 + $0x30] sm:$0xff] (%p1335_p9) }
 0x1f7   : > { %798 = vst [vmem:[%s1581_s18 + $0x28] sm:$0xff] %v790_v55  ;;  %v774_v7 = vadd.f32 %v1162_v60, %v773_v20  ;;  %v712_v5 = vsub.f32 1.0, %v711_v6 }
 0x1f8   : > { %vm720_vm8 = vcmp.eq.f32.partialorder %v719_v26, 8.507059e+37  ;;  %868 = vst [vmem:[%s812_s11 + $0xc0] sm:$0xff] (%p1335_p9), %v867_v22 }
 0x1f9   : > { %v778_v11 = vsel %vm777_vm3, %v1162_v60, %v774_v7  ;;  %v713_v12 = vmul.f32 %v1164_v58, %v712_v5  ;;  %v857_v30 = vld [vmem:[%s1581_s18 + $0x8] sm:$0xff] (%p1335_p9) }
 0x1fa   : > { %v783_v13 = vsel %vm780_vm4, %v782_v8, %v778_v11  ;;  %858 = vst [vmem:[%s812_s11 + $0x20] sm:$0xff] (%p1335_p9), %v857_v30 }
 0x1fb   : > { %v792_v10 = vmul.f32 %v783_v13, %v1565_v40  ;;  %v714_v14 = vadd.f32 %v1164_v58, %v713_v12  ;;  %v855_v40 = vld [vmem:[%s1581_s18] sm:$0xff] (%p1335_p9) }
 0x1fc   : > { %856 = vst [vmem:[%s812_s11] sm:$0xff] (%p1335_p9), %v855_v40 }
 0x1fd   : > { %800 = vst [vmem:[%s1581_s18 + $0x38] sm:$0xff] %v792_v10  ;;  %v718_v15 = vsel %vm717_vm7, %v1164_v58, %v714_v14  ;;  %807 = sbr.rel (!%p1335_p9) target bundleno = 522 (0x20a), region = 82 }
 0x1fe   : > { %v723_v16 = vsel %vm720_vm8, %v722_v38, %v718_v15  ;;  %v865_v21 = vld [vmem:[%s1581_s18 + $0x28] sm:$0xff] (%p1335_p9) }
 0x1ff   : > { %v788_v17 = vmul.f32 %v723_v16, %v1572_v45  ;;  %v859_v45 = vld [vmem:[%s1581_s18 + $0x10] sm:$0xff] (%p1335_p9)  ;;  %866 = vst [vmem:[%s812_s11 + $0xa0] sm:$0xff] (%p1335_p9), %v865_v21 }
 0x200   : > { %860 = vst [vmem:[%s812_s11 + $0x40] sm:$0xff] (%p1335_p9), %v859_v45 }
 0x201   : > { %796 = vst [vmem:[%s1581_s18 + $0x18] sm:$0xff] %v788_v17 }
 0x204   : > { %v869_v23 = vld [vmem:[%s1581_s18 + $0x38] sm:$0xff] }
 0x205   : > { %870 = vst [vmem:[%s812_s11 + $0xe0] sm:$0xff] %v869_v23 }
 0x208   : > { %v861_v19 = vld [vmem:[%s1581_s18 + $0x18] sm:$0xff] }
 0x209   : > { %862 = vst [vmem:[%s812_s11 + $0x60] sm:$0xff] %v861_v19 }
 0x20a PF: > { %s15_s26 = sadd.s32 1, %s1235_s26   ;;  %s1686_s18 = smov %s1207_s19 }
 0x20b   : > { %p12_p2 = scmp.ge.s32.totalorder %s15_s26, 14   ;;  %s1687_s19 = smov %s1340_s12 }
 0x20c   : > { %s1688_s20 = smov %s1215_s21  ;;  %s1689_s21 = smov %s1329_s8 }
 0x20d   : > { %s1690_s22 = smov %s1227_s24  ;;  %s1691_s23 = smov %s1231_s25 }
 0x20e   : > { %s1692_s24 = smov %s1695_s28  ;;  %s1693_s25 = smov %s1699_s29 }
 0x20f   :  { %14 = sbr.rel (!%p12_p2) target bundleno = 5 (0x5), region = 157 }

// kernel: cf_tower_s2_forward.13
= control target key start
LH: loop header
LB: loop body
LE: loop exit
PB: predicated region body
PF: predicated region fallthrough
CT: control target
= control target key end

     0   :  { %s904_s15 = smov 0   ;;  %s906_s16 = smov 0   ;;  %s1094_s0 = inlined_call_operand.vmem [shape: f32[192,512], index: 0, kind: input, shape index: {}]   ;;  %s1095_s1 = inlined_call_operand.vmem [shape: f32[512,128], index: 1, kind: input, shape index: {}]   ;;  %s1096_s2 = inlined_call_operand.vmem [shape: f32[1,128], index: 2, kind: input, shape index: {}]   ;;  %s1097_s3 = inlined_call_operand.vmem [shape: f32[192,128], index: 3, kind: input, shape index: {}]   ;;  %s1098_s4 = inlined_call_operand.vmem [shape: f32[192,128], index: 4, kind: output, shape index: {}]  }
   0x1   :  { %s908_s17 = smov 0   ;;  %s910_s18 = smov 0  }
   0x2   :  { %s912_s19 = smov 0   ;;  %s914_s20 = smov 0  }
   0x3   :  { %s916_s21 = smov 0  }
   0x4 LB: > { %s26_s22 = sadd.s32 1, %s868_s19  ;;  %s33_s23 = sadd.s32 1, %s872_s20  ;;  %s876_s21 = sphi %s916_s21, %s14_s21   ;;  %s872_s20 = sphi %s914_s20, %s1104_s20   ;;  %s868_s19 = sphi %s912_s19, %s1103_s19   ;;  %s864_s18 = sphi %s910_s18, %s1102_s18   ;;  %s860_s17 = sphi %s908_s17, %s1101_s17   ;;  %s856_s16 = sphi %s906_s16, %s1100_s16   ;;  %s852_s15 = sphi %s904_s15, %s1099_s15  }
   0x5   : > { %p27_p0 = scmp.ge.s32.totalorder %s26_s22, 2  ;;  %p49_p1 = scmp.ne.s32.totalorder %s856_s16, %s852_s15 }
   0x6   : > { %p50_p2 = scmp.eq.s32.totalorder %s876_s21, 0  ;;  %s42_s27 = sadd.s32 1, %s856_s16 }
   0x7   : > { %s1106_s22 = smov (%p27_p0, %s26_s22), 0  ;;  %s1108_s23 = smov (!%p27_p0, %s33_s23), %s872_s20 }
   0x8   : > { %p51_p3 = por %p50_p2, %p49_p1  ;;  %p35_p4 = scmp.ge.s32.totalorder %s1108_s23, 3 }
   0x9   : > { %s38_s24 = ssub.s32 %s868_s19, %s1106_s22  ;;  %p713_p6 = scmp.ge.s32.totalorder %s876_s21, 6 }
   0xa   : > { %s1110_s23 = smov (%p35_p4, %s1108_s23), 0 }
   0xb   : > { %s37_s25 = ssub.s32 %s872_s20, %s1110_s23  ;;  %191 = sbr.rel (%p713_p6) target bundleno = 39 (0x27), region = 20 }
   0xc   : > { %s39_s26 = sor.u32 %s38_s24, %s37_s25 }
   0xd   : > { %p40_p5 = scmp.eq.s32.totalorder %s39_s26, 0 }
   0xf   : > { %s955_s28 = scalar_select %p40_p5, %s856_s16, %s42_s27  }
  0x10   : > { %194 = sbr.rel (!%p51_p3) target bundleno = 39 (0x27), region = 24  ;;  %s196_s29 = sand.u32 (%p51_p3), 1, %s856_s16  }
  0x11   : > { %s716_s30 = sshll.u32 (%p51_p3), %s868_s19, 1  ;;  %s714_s5 = sshll.u32 (%p51_p3), %s196_s29, 7 }
  0x12   : > { %s731_s6 = sshll.u32 (%p51_p3), %s872_s20, 5  ;;  %s198_s12 = scalar_lea.vmem (%p51_p3), [#allocation3], %s714_s5 }
  0x13   : > { %s202_s7 = sadd.s32 (%p51_p3), %s731_s6, %s716_s30 }
  0x14   : > { %s718_s8 = sshll.u32 (%p51_p3), %s202_s7, 3 }
  0x15   : > { %s964_s11 = scalar_lea.vmem %s1094_s0, %s718_s8 }
  0x16   : > { %v217_v0 = vld [vmem:[%s964_s11] sm:$0xff]  ;;  %v219_v1 = vld [vmem:[%s964_s11 + $0x8] sm:$0xff] }
  0x17   : > { %v221_v2 = vld [vmem:[%s964_s11 + $0x20] sm:$0xff]  ;;  %218 = vst [vmem:[%s198_s12] sm:$0xff] %v217_v0  ;;  %v223_v3 = vld [vmem:[%s964_s11 + $0x28] sm:$0xff] }
  0x18   : > { %220 = vst [vmem:[%s198_s12 + $0x8] sm:$0xff] %v219_v1  ;;  %v225_v4 = vld [vmem:[%s964_s11 + $0x40] sm:$0xff]  ;;  %v227_v5 = vld [vmem:[%s964_s11 + $0x48] sm:$0xff] }
  0x19   : > { %222 = vst [vmem:[%s198_s12 + $0x10] sm:$0xff] %v221_v2  ;;  %v229_v6 = vld [vmem:[%s964_s11 + $0x60] sm:$0xff]  ;;  %v231_v7 = vld [vmem:[%s964_s11 + $0x68] sm:$0xff] }
  0x1a   : > { %224 = vst [vmem:[%s198_s12 + $0x18] sm:$0xff] %v223_v3  ;;  %v233_v8 = vld [vmem:[%s964_s11 + $0x80] sm:$0xff]  ;;  %v235_v9 = vld [vmem:[%s964_s11 + $0x88] sm:$0xff] }
  0x1b   : > { %226 = vst [vmem:[%s198_s12 + $0x20] sm:$0xff] %v225_v4  ;;  %v237_v10 = vld [vmem:[%s964_s11 + $0xa0] sm:$0xff]  ;;  %v239_v11 = vld [vmem:[%s964_s11 + $0xa8] sm:$0xff] }
  0x1c   : > { %228 = vst [vmem:[%s198_s12 + $0x28] sm:$0xff] %v227_v5  ;;  %v241_v12 = vld [vmem:[%s964_s11 + $0xc0] sm:$0xff]  ;;  %v243_v13 = vld [vmem:[%s964_s11 + $0xc8] sm:$0xff] }
  0x1d   : > { %230 = vst [vmem:[%s198_s12 + $0x30] sm:$0xff] %v229_v6  ;;  %v245_v14 = vld [vmem:[%s964_s11 + $0xe0] sm:$0xff]  ;;  %v247_v15 = vld [vmem:[%s964_s11 + $0xe8] sm:$0xff] }
  0x1e   : > { %232 = vst [vmem:[%s198_s12 + $0x38] sm:$0xff] %v231_v7 }
  0x1f   : > { %234 = vst [vmem:[%s198_s12 + $0x40] sm:$0xff] %v233_v8 }
  0x20   : > { %236 = vst [vmem:[%s198_s12 + $0x48] sm:$0xff] %v235_v9 }
  0x21   : > { %238 = vst [vmem:[%s198_s12 + $0x50] sm:$0xff] %v237_v10 }
  0x22   : > { %240 = vst [vmem:[%s198_s12 + $0x58] sm:$0xff] %v239_v11 }
  0x23   : > { %242 = vst [vmem:[%s198_s12 + $0x60] sm:$0xff] %v241_v12 }
  0x24   : > { %244 = vst [vmem:[%s198_s12 + $0x68] sm:$0xff] %v243_v13 }
  0x25   : > { %246 = vst [vmem:[%s198_s12 + $0x70] sm:$0xff] %v245_v14 }
  0x26   : > { %248 = vst [vmem:[%s198_s12 + $0x78] sm:$0xff] %v247_v15 }
  0x27 PF: > { %p719_p7 = scmp.ge.s32.totalorder %s876_s21, 1  ;;  %p277_p8 = scmp.lt.s32.totalorder %s876_s21, 7 }
  0x29   : > { %p278_p9 = pnand %p719_p7, %p277_p8 }
  0x2a   : > { %s284_s13 = sand.u32 (!%p278_p9), 1, %s852_s15   ;;  %s721_s14 = sshll.u32 (!%p278_p9), %s860_s17, 5 }
  0x2b   : > { %281 = sbr.rel (%p278_p9) target bundleno = 272 (0x110), region = 55  ;;  %s720_s24 = sshll.u32 (!%p278_p9), %s284_s13, 7 }
  0x2c   : > { %p334_p10 = scmp.lt.s32.totalorder (!%p278_p9), %s721_s14, 63  ;;  %s723_s25 = sshll.u32 (!%p278_p9), %s864_s18, 3 }
  0x2d   : > { %p346_p11 = scmp.lt.s32.totalorder (!%p278_p9), %s723_s25, 23  ;;  %s1002_s18 = scalar_lea.vmem (!%p278_p9), [#allocation3], %s720_s24 }
  0x2e   : > { %p727_p12 = scmp.ne.s32.totalorder (!%p278_p9), %s860_s17, 0 }
  0x30   : > { %s1112_s14 = smov (!%p334_p10, %s721_s14), 63  ;;  %s1114_s25 = smov (!%p346_p11, %s723_s25), 23 }
  0x31   : > { %s722_s26 = sshll.u32 %s1112_s14, 3  ;;  %s724_s5 = sshll.u32 %s1114_s25, 3 }
  0x32   : > { %s990_s30 = scalar_lea.vmem %s1095_s1, %s722_s26  ;;  %s995_s8 = scalar_lea.vmem %s1097_s3, %s724_s5 }
  0x33   : > { %s1000_s10 = scalar_lea.vmem %s1098_s4, %s724_s5  ;;  %366 = sbr.rel (%p727_p12) target bundleno = 65 (0x41), region = 63 }
  0x38   : > { %v878_v16 = vmov 0.0  }
  0x39   : > { %367 = vst [vmem:[#allocation2 + $0x30] sm:$0xff] %v878_v16 }
  0x3a   : > { %368 = vst [vmem:[#allocation2] sm:$0xff] %v878_v16 }
  0x3b   : > { %369 = vst [vmem:[#allocation2 + $0x18] sm:$0xff] %v878_v16 }
  0x3c   : > { %370 = vst [vmem:[#allocation2 + $0x10] sm:$0xff] %v878_v16 }
  0x3d   : > { %371 = vst [vmem:[#allocation2 + $0x8] sm:$0xff] %v878_v16 }
  0x3e   : > { %372 = vst [vmem:[#allocation2 + $0x20] sm:$0xff] %v878_v16 }
  0x3f   : > { %373 = vst [vmem:[#allocation2 + $0x28] sm:$0xff] %v878_v16 }
  0x40   : > { %374 = vst [vmem:[#allocation2 + $0x38] sm:$0xff] %v878_v16 }
  0x41 PF: > { %v414_v17 = vld [vmem:[%s990_s30 + $0x78] sm:$0xff]  ;;  %v413_v19 = vld [vmem:[%s990_s30 + $0x70] sm:$0xff]  ;;  %v412_v21 = vld [vmem:[%s990_s30 + $0x68] sm:$0xff]  ;;  %p728_p13 = scmp.ne.s32.totalorder %s860_s17, 1 }
  0x42   : > { %v430_v18 = vld [vmem:[%s990_s30 + $0xf8] sm:$0xff]  ;;  %732 = vmatpush.msra.mxu2 %v414_v17  ;;  %v429_v20 = vld [vmem:[%s990_s30 + $0xf0] sm:$0xff]  ;;  %v428_v22 = vld [vmem:[%s990_s30 + $0xe8] sm:$0xff]  ;;  %431 = vmatpush.msra.mxu0 %v414_v17 }
  0x43   : > { %748 = vmatpush.msra.mxu3 %v430_v18  ;;  %472 = vmatpush.msra.mxu1 %v430_v18  ;;  %v411_v23 = vld [vmem:[%s990_s30 + $0x60] sm:$0xff]  ;;  %v410_v25 = vld [vmem:[%s990_s30 + $0x58] sm:$0xff]  ;;  %v409_v27 = vld [vmem:[%s990_s30 + $0x50] sm:$0xff] }
  0x44   : > { %733 = vmatpush.msra.mxu2 %v413_v19  ;;  %v427_v24 = vld [vmem:[%s990_s30 + $0xe0] sm:$0xff]  ;;  %432 = vmatpush.msra.mxu0 %v413_v19  ;;  %v426_v26 = vld [vmem:[%s990_s30 + $0xd8] sm:$0xff]  ;;  %v425_v28 = vld [vmem:[%s990_s30 + $0xd0] sm:$0xff] }
  0x45   : > { %749 = vmatpush.msra.mxu3 %v429_v20  ;;  %473 = vmatpush.msra.mxu1 %v429_v20  ;;  %v408_v29 = vld [vmem:[%s990_s30 + $0x48] sm:$0xff]  ;;  %v407_v31 = vld [vmem:[%s990_s30 + $0x40] sm:$0xff]  ;;  %v406_v33 = vld [vmem:[%s990_s30 + $0x38] sm:$0xff] }
  0x46   : > { %734 = vmatpush.msra.mxu2 %v412_v21  ;;  %433 = vmatpush.msra.mxu0 %v412_v21  ;;  %v424_v30 = vld [vmem:[%s990_s30 + $0xc8] sm:$0xff]  ;;  %v423_v32 = vld [vmem:[%s990_s30 + $0xc0] sm:$0xff]  ;;  %v422_v34 = vld [vmem:[%s990_s30 + $0xb8] sm:$0xff] }
  0x47   : > { %750 = vmatpush.msra.mxu3 %v428_v22  ;;  %474 = vmatpush.msra.mxu1 %v428_v22  ;;  %v405_v35 = vld [vmem:[%s990_s30 + $0x30] sm:$0xff]  ;;  %v404_v37 = vld [vmem:[%s990_s30 + $0x28] sm:$0xff]  ;;  %v403_v39 = vld [vmem:[%s990_s30 + $0x20] sm:$0xff] }
  0x48   : > { %735 = vmatpush.msra.mxu2 %v411_v23  ;;  %434 = vmatpush.msra.mxu0 %v411_v23  ;;  %v421_v36 = vld [vmem:[%s990_s30 + $0xb0] sm:$0xff]  ;;  %v420_v38 = vld [vmem:[%s990_s30 + $0xa8] sm:$0xff]  ;;  %v419_v40 = vld [vmem:[%s990_s30 + $0xa0] sm:$0xff] }
  0x49   : > { %751 = vmatpush.msra.mxu3 %v427_v24  ;;  %475 = vmatpush.msra.mxu1 %v427_v24  ;;  %v402_v41 = vld [vmem:[%s990_s30 + $0x18] sm:$0xff]  ;;  %v401_v43 = vld [vmem:[%s990_s30 + $0x10] sm:$0xff]  ;;  %v400_v45 = vld [vmem:[%s990_s30 + $0x8] sm:$0xff] }
  0x4a   : > { %736 = vmatpush.msra.mxu2 %v410_v25  ;;  %435 = vmatpush.msra.mxu0 %v410_v25  ;;  %v418_v42 = vld [vmem:[%s990_s30 + $0x98] sm:$0xff]  ;;  %v417_v44 = vld [vmem:[%s990_s30 + $0x90] sm:$0xff]  ;;  %v416_v46 = vld [vmem:[%s990_s30 + $0x88] sm:$0xff] }
  0x4b   : > { %752 = vmatpush.msra.mxu3 %v426_v26  ;;  %476 = vmatpush.msra.mxu1 %v426_v26  ;;  %v399_v47 = vld [vmem:[%s990_s30] sm:$0xff]  ;;  %v392_v50 = vld [vmem:[%s1002_s18 + $0x48] sm:$0xff]  ;;  %v393_v53 = vld [vmem:[%s1002_s18 + $0x50] sm:$0xff] }
  0x4c   : > { %737 = vmatpush.msra.mxu2 %v409_v27  ;;  %436 = vmatpush.msra.mxu0 %v409_v27  ;;  %v415_v48 = vld [vmem:[%s990_s30 + $0x80] sm:$0xff]  ;;  %v384_v52 = vld [vmem:[%s1002_s18 + $0x8] sm:$0xff]  ;;  %v394_v54 = vld [vmem:[%s1002_s18 + $0x58] sm:$0xff] }
  0x4d   : > { %753 = vmatpush.msra.mxu3 %v425_v28  ;;  %477 = vmatpush.msra.mxu1 %v425_v28  ;;  %v391_v49 = vld [vmem:[%s1002_s18 + $0x40] sm:$0xff]  ;;  %v385_v55 = vld [vmem:[%s1002_s18 + $0x10] sm:$0xff]  ;;  %v386_v56 = vld [vmem:[%s1002_s18 + $0x18] sm:$0xff] }
  0x4e   : > { %738 = vmatpush.msra.mxu2 %v408_v29  ;;  %437 = vmatpush.msra.mxu0 %v408_v29  ;;  %v383_v51 = vld [vmem:[%s1002_s18] sm:$0xff]  ;;  %v396_v58 = vld [vmem:[%s1002_s18 + $0x68] sm:$0xff]  ;;  %v397_v61 = vld [vmem:[%s1002_s18 + $0x70] sm:$0xff] }
  0x4f   : > { %754 = vmatpush.msra.mxu3 %v424_v30  ;;  %478 = vmatpush.msra.mxu1 %v424_v30  ;;  %v395_v57 = vld [vmem:[%s1002_s18 + $0x60] sm:$0xff]  ;;  %v388_v60 = vld [vmem:[%s1002_s18 + $0x28] sm:$0xff]  ;;  %v398_v62 = vld [vmem:[%s1002_s18 + $0x78] sm:$0xff] }
  0x50   : > { %739 = vmatpush.msra.mxu2 %v407_v31  ;;  %438 = vmatpush.msra.mxu0 %v407_v31  ;;  %v387_v59 = vld [vmem:[%s1002_s18 + $0x20] sm:$0xff]  ;;  %v389_v63 = vld [vmem:[%s1002_s18 + $0x30] sm:$0xff]  ;;  %v390_v0 = vld [vmem:[%s1002_s18 + $0x38] sm:$0xff] }
  0x51   : > { %755 = vmatpush.msra.mxu3 %v423_v32  ;;  %479 = vmatpush.msra.mxu1 %v423_v32  ;;  %v375_v2 = vld [vmem:[#allocation2 + $0x30] sm:$0xff]  ;;  %v379_v7 = vld [vmem:[#allocation2 + $0x8] sm:$0xff]  ;;  %v376_v12 = vld [vmem:[#allocation2] sm:$0xff] }
  0x52   : > { %740 = vmatpush.msra.mxu2 %v406_v33  ;;  %439 = vmatpush.msra.mxu0 %v406_v33  ;;  %v380_v17 = vld [vmem:[#allocation2 + $0x20] sm:$0xff]  ;;  %v377_v22 = vld [vmem:[#allocation2 + $0x18] sm:$0xff]  ;;  %v381_v27 = vld [vmem:[#allocation2 + $0x28] sm:$0xff] }
  0x53   : > { %756 = vmatpush.msra.mxu3 %v422_v34  ;;  %480 = vmatpush.msra.mxu1 %v422_v34  ;;  %v378_v32 = vld [vmem:[#allocation2 + $0x10] sm:$0xff] }
  0x54   : > { %741 = vmatpush.msra.mxu2 %v405_v35  ;;  %440 = vmatpush.msra.mxu0 %v405_v35 }
  0x55   : > { %757 = vmatpush.msra.mxu3 %v421_v36  ;;  %481 = vmatpush.msra.mxu1 %v421_v36 }
  0x56   : > { %742 = vmatpush.msra.mxu2 %v404_v37  ;;  %441 = vmatpush.msra.mxu0 %v404_v37  ;;  %v382_v37 = vld [vmem:[#allocation2 + $0x38] sm:$0xff] }
  0x57   : > { %758 = vmatpush.msra.mxu3 %v420_v38  ;;  %482 = vmatpush.msra.mxu1 %v420_v38 }
  0x58   : > { %743 = vmatpush.msra.mxu2 %v403_v39  ;;  %442 = vmatpush.msra.mxu0 %v403_v39 }
  0x59   : > { %759 = vmatpush.msra.mxu3 %v419_v40  ;;  %483 = vmatpush.msra.mxu1 %v419_v40 }
  0x5a   : > { %744 = vmatpush.msra.mxu2 %v402_v41  ;;  %443 = vmatpush.msra.mxu0 %v402_v41 }
  0x5b   : > { %760 = vmatpush.msra.mxu3 %v418_v42  ;;  %484 = vmatpush.msra.mxu1 %v418_v42 }
  0x5c   : > { %745 = vmatpush.msra.mxu2 %v401_v43  ;;  %444 = vmatpush.msra.mxu0 %v401_v43 }
  0x5d   : > { %761 = vmatpush.msra.mxu3 %v417_v44  ;;  %485 = vmatpush.msra.mxu1 %v417_v44 }
  0x5e   : > { %746 = vmatpush.msra.mxu2 %v400_v45  ;;  %445 = vmatpush.msra.mxu0 %v400_v45 }
  0x5f   : > { %762 = vmatpush.msra.mxu3 %v416_v46  ;;  %486 = vmatpush.msra.mxu1 %v416_v46 }
  0x60   : > { %747 = vmatpush.msra.mxu2 %v399_v47  ;;  %446 = vmatpush.msra.mxu0 %v399_v47 }
  0x61   : > { %763 = vmatpush.msra.mxu3 %v415_v48  ;;  %459 = vmatmul.f32.vlgmr.msra.gmra.mxu2 %v391_v49 }
  0x62   : > { %500 = vmatmul.f32.vlgmr.msra.gmra.mxu3 %v392_v50  ;;  %487 = vmatpush.msra.mxu1 %v415_v48 }
  0x63   : > { %447 = vmatmul.f32.vlgmr.msra.gmra.mxu0 %v383_v51  ;;  %488 = vmatmul.f32.vlgmr.msra.gmra.mxu1 %v384_v52 }
  0x69   : > { %462 = vmatmul.f32.gmra.mxu2 %v393_v53 }
  0x6a   : > { %503 = vmatmul.f32.gmra.mxu3 %v394_v54 }
  0x6b   : > { %450 = vmatmul.f32.gmra.mxu0 %v385_v55  ;;  %491 = vmatmul.f32.gmra.mxu1 %v386_v56 }
  0x71   : > { %465 = vmatmul.f32.gmra.mxu2 %v395_v57 }
  0x72   : > { %506 = vmatmul.f32.gmra.mxu3 %v396_v58 }
  0x73   : > { %453 = vmatmul.f32.gmra.mxu0 %v387_v59  ;;  %494 = vmatmul.f32.gmra.mxu1 %v388_v60 }
  0x79   : > { %468 = vmatmul.f32.gmra.mxu2 %v397_v61 }
  0x7a   : > { %509 = vmatmul.f32.gmra.mxu3 %v398_v62 }
  0x7b   : > { %456 = vmatmul.f32.gmra.mxu0 %v389_v63  ;;  %497 = vmatmul.f32.gmra.mxu1 %v390_v0 }
  0xe0   : > { %v448_v1 = vpop.f32.mrf.mxu0  ;;  %v489_v3 = vpop.f32.mrf.mxu1 }
  0xe1   : > { %v490_v4 = vadd.f32 %v489_v3, %v448_v1 }
  0xe3   : > { %v513_v5 = vadd.f32 %v490_v4, %v375_v2 }
  0xe4   : > { %v460_v6 = vpop.f32.mrf.mxu2 }
  0xe5   : > { %v501_v8 = vpop.f32.mrf.mxu3  ;;  %521 = vst [vmem:[#allocation2 + $0x30] sm:$0xff] %v513_v5 }
  0xe6   : > { %v502_v9 = vadd.f32 %v501_v8, %v460_v6 }
  0xe8   : > { %v517_v10 = vadd.f32 %v502_v9, %v379_v7  ;;  %v451_v11 = vpop.f32.mrf.mxu0  ;;  %v492_v13 = vpop.f32.mrf.mxu1 }
  0xe9   : > { %v493_v14 = vadd.f32 %v492_v13, %v451_v11 }
  0xea   : > { %525 = vst [vmem:[#allocation2 + $0x8] sm:$0xff] %v517_v10 }
  0xeb   : > { %v514_v15 = vadd.f32 %v493_v14, %v376_v12 }
  0xec   : > { %v463_v16 = vpop.f32.mrf.mxu2 }
  0xed   : > { %v504_v18 = vpop.f32.mrf.mxu3  ;;  %522 = vst [vmem:[#allocation2] sm:$0xff] %v514_v15 }
  0xee   : > { %v505_v19 = vadd.f32 %v504_v18, %v463_v16 }
  0xf0   : > { %v518_v20 = vadd.f32 %v505_v19, %v380_v17  ;;  %v454_v21 = vpop.f32.mrf.mxu0  ;;  %v495_v23 = vpop.f32.mrf.mxu1 }
  0xf1   : > { %v496_v24 = vadd.f32 %v495_v23, %v454_v21 }
  0xf2   : > { %526 = vst [vmem:[#allocation2 + $0x20] sm:$0xff] %v518_v20 }
  0xf3   : > { %v515_v25 = vadd.f32 %v496_v24, %v377_v22 }
  0xf4   : > { %v466_v26 = vpop.f32.mrf.mxu2 }
  0xf5   : > { %v507_v28 = vpop.f32.mrf.mxu3  ;;  %523 = vst [vmem:[#allocation2 + $0x18] sm:$0xff] %v515_v25 }
  0xf6   : > { %v508_v29 = vadd.f32 %v507_v28, %v466_v26 }
  0xf8   : > { %v519_v30 = vadd.f32 %v508_v29, %v381_v27  ;;  %v457_v31 = vpop.f32.mrf.mxu0  ;;  %v498_v33 = vpop.f32.mrf.mxu1 }
  0xf9   : > { %v499_v34 = vadd.f32 %v498_v33, %v457_v31 }
  0xfa   : > { %527 = vst [vmem:[#allocation2 + $0x28] sm:$0xff] %v519_v30 }
  0xfb   : > { %v516_v35 = vadd.f32 %v499_v34, %v378_v32 }
  0xfc   : > { %v469_v36 = vpop.f32.mrf.mxu2 }
  0xfd   : > { %v510_v38 = vpop.f32.mrf.mxu3  ;;  %524 = vst [vmem:[#allocation2 + $0x10] sm:$0xff] %v516_v35 }
  0xfe   : > { %v511_v39 = vadd.f32 %v510_v38, %v469_v36  ;;  %532 = sbr.rel (%p728_p13) target bundleno = 272 (0x110), region = 67 }
 0x100   : > { %v520_v40 = vadd.f32 %v511_v39, %v382_v37 }
 0x102   : > { %528 = vst [vmem:[#allocation2 + $0x38] sm:$0xff] %v520_v40 }
 0x103   : > { %v533_v41 = vld [vmem:[#allocation2 + $0x30] sm:$0xff]  ;;  %v821_v42 = vld [vmem:[%s1096_s2] ss:$0 sm:$0xff]  ;;  %v554_v45 = vld [vmem:[%s995_s8 + $0x8] sm:$0xff] }
 0x104   : > { %v553_v43 = vld [vmem:[%s995_s8] sm:$0xff]  ;;  %v545_v46 = vadd.f32 %v821_v42, %v533_v41  ;;  %v535_v48 = vld [vmem:[#allocation2 + $0x18] sm:$0xff]  ;;  %v555_v49 = vld [vmem:[%s995_s8 + $0x10] sm:$0xff] }
 0x105   : > { %v534_v44 = vld [vmem:[#allocation2] sm:$0xff]  ;;  %v536_v50 = vld [vmem:[#allocation2 + $0x10] sm:$0xff]  ;;  %v547_v51 = vadd.f32 %v821_v42, %v535_v48  ;;  %v556_v53 = vld [vmem:[%s995_s8 + $0x18] sm:$0xff] }
 0x106   : > { %v546_v47 = vadd.f32 %v821_v42, %v534_v44  ;;  %v548_v52 = vadd.f32 %v821_v42, %v536_v50  ;;  %v537_v54 = vld [vmem:[#allocation2 + $0x8] sm:$0xff]  ;;  %v557_v55 = vld [vmem:[%s995_s8 + $0x20] sm:$0xff]  ;;  %v561_v56 = vadd.f32 %v553_v43, %v545_v46  ;;  %v559_v2 = vld [vmem:[%s995_s8 + $0x30] sm:$0xff] }
 0x107   : > { %v549_v58 = vadd.f32 %v821_v42, %v537_v54  ;;  %v538_v59 = vld [vmem:[#allocation2 + $0x20] sm:$0xff]  ;;  %v558_v60 = vld [vmem:[%s995_s8 + $0x28] sm:$0xff]  ;;  %v563_v62 = vadd.f32 %v555_v49, %v547_v51  ;;  %v560_v6 = vld [vmem:[%s995_s8 + $0x38] sm:$0xff] }
 0x108   : > { %v562_v57 = vadd.f32 %v554_v45, %v546_v47  ;;  %v539_v61 = vld [vmem:[#allocation2 + $0x28] sm:$0xff]  ;;  %v564_v63 = vadd.f32 %v556_v53, %v548_v52  ;;  %v550_v0 = vadd.f32 %v821_v42, %v538_v59  ;;  %569 = vst [vmem:[%s1000_s10] sm:$0xff] %v561_v56 }
 0x109   : > { %v551_v1 = vadd.f32 %v821_v42, %v539_v61  ;;  %v540_v3 = vld [vmem:[#allocation2 + $0x38] sm:$0xff]  ;;  %v565_v4 = vadd.f32 %v557_v55, %v549_v58  ;;  %571 = vst [vmem:[%s1000_s10 + $0x10] sm:$0xff] %v563_v62 }
 0x10a   : > { %v552_v5 = vadd.f32 %v821_v42, %v540_v3  ;;  %570 = vst [vmem:[%s1000_s10 + $0x8] sm:$0xff] %v562_v57  ;;  %v566_v7 = vadd.f32 %v558_v60, %v550_v0 }
 0x10b   : > { %v567_v8 = vadd.f32 %v559_v2, %v551_v1  ;;  %572 = vst [vmem:[%s1000_s10 + $0x18] sm:$0xff] %v564_v63 }
 0x10c   : > { %v568_v9 = vadd.f32 %v560_v6, %v552_v5  ;;  %573 = vst [vmem:[%s1000_s10 + $0x20] sm:$0xff] %v565_v4 }
 0x10d   : > { %574 = vst [vmem:[%s1000_s10 + $0x28] sm:$0xff] %v566_v7 }
 0x10e   : > { %575 = vst [vmem:[%s1000_s10 + $0x30] sm:$0xff] %v567_v8 }
 0x10f   : > { %576 = vst [vmem:[%s1000_s10 + $0x38] sm:$0xff] %v568_v9 }
 0x110 PF: > { %s14_s21 = sadd.s32 1, %s876_s21   ;;  %s1099_s15 = smov %s856_s16 }
 0x111   : > { %p11_p0 = scmp.ge.s32.totalorder %s14_s21, 8   ;;  %s1100_s16 = smov %s955_s28 }
 0x112   : > { %s1101_s17 = smov %s868_s19  ;;  %s1102_s18 = smov %s872_s20 }
 0x113   : > { %s1103_s19 = smov %s1106_s22  ;;  %s1104_s20 = smov %s1110_s23 }
 0x114   :  { %13 = sbr.rel (!%p11_p0) target bundleno = 4 (0x4), region = 111 }

</bundles_post_ra>
